<compile_context>
chip_gen: v7x
topology: tpu7x:2x2x1
jax: 0.10.0
libtpu: 0.0.40
codegen_flags: <defaults>
</compile_context>

<pallas_src>
import functools

import jax
import jax.numpy as jnp
from jax.experimental import pallas as pl
from jax.experimental.pallas import tpu as pltpu

DOT_DTYPE = jnp.bfloat16     # MXU operand dtype (f32 accumulate)
MAX_ROW_TILE = 4096          # ~1-2 MB double-buffered working set at this size
ROW_GRAN = 128
VMEM_LIMIT = 32 * 1024 * 1024


def _leaky(h):
    # Reference MLP uses LeakyReLU(negative_slope=0.2)
    return jnp.where(h >= 0, h, 0.2 * h)


@functools.lru_cache(maxsize=1)
def _megacore():
    """True only for chips with 2 TensorCores behind one device (v7x/v4/v5p)."""
    try:
        kind = jax.devices()[0].device_kind.lower()
    except Exception:
        return False
    return any(t in kind for t in ("v7", "v4", "v5p"))


def _tile_rows(n_rows):
    """Pick a row tile (multiple of ROW_GRAN) and padded row count.

    Large tiles amortize ~0.35us/grid-step overhead.  The >=2-step guarantee
    (so the "parallel" axis can shard across TensorCores) is applied only on
    megacore chips; on v5e/v6e it is pure overhead.
    """
    n_pad = pl.cdiv(n_rows, ROW_GRAN) * ROW_GRAN
    steps = pl.cdiv(n_pad, MAX_ROW_TILE)
    if _megacore() and n_pad > ROW_GRAN:
        steps = max(steps, 2)
    tile = pl.cdiv(pl.cdiv(n_pad, steps), ROW_GRAN) * ROW_GRAN
    n_pad = pl.cdiv(n_rows, tile) * tile
    return tile, n_pad


# ---------------------------------------------------------------------------
# Pallas kernels
# ---------------------------------------------------------------------------
def _mlp4(x, w1_ref, bh_ref, w23_ref, w4_ref, b4_ref):
    """4-layer MLP (LeakyReLU 0.2 between hidden layers), f32 accumulation."""
    bh = bh_ref[...]                                            # (3, 32) f32
    h = _leaky(jnp.dot(x, w1_ref[...],
                       preferred_element_type=jnp.float32) + bh[0:1])
    h = _leaky(jnp.dot(h.astype(DOT_DTYPE), w23_ref[0],
                       preferred_element_type=jnp.float32) + bh[1:2])
    h = _leaky(jnp.dot(h.astype(DOT_DTYPE), w23_ref[1],
                       preferred_element_type=jnp.float32) + bh[2:3])
    return (jnp.dot(h.astype(DOT_DTYPE), w4_ref[...],
                    preferred_element_type=jnp.float32) + b4_ref[...])


def msg_kernel(x_ref, w1_ref, bh_ref, w23_ref, w4_ref, b4_ref, out_ref):
    """MLP_msg + sigmoid gate, per edge tile.

    x_ref: [tile, 2*in_nf+in_ef] bf16 (pre-concatenated src|dst|ef features).
    Head weights are packed with the gate as the LAST column, so the stored
    [f1|f2] block stays lane-aligned at columns 0..h1+h2-1.
    """
    y = _mlp4(x_ref[...], w1_ref, bh_ref, w23_ref, w4_ref, b4_ref)  # [tile, h1+h2+1]
    nf12 = out_ref.shape[1]                                         # h1 + h2
    k = jax.nn.sigmoid(y[:, nf12:nf12 + 1])                         # gate column (last)
    out_ref[...] = y[:, :nf12] * k                                  # [tile, h1+h2] f32


def reduce_kernel(x_ref, w1_ref, bh_ref, w23_ref, w4_ref, b4_ref, o_ref):
    """MLP_reduce, per node tile.  x_ref: [tile, in_nf+h1+h2] bf16."""
    o_ref[...] = _mlp4(x_ref[...], w1_ref, bh_ref, w23_ref, w4_ref, b4_ref)


def reduce_res_kernel(x_ref, res_ref, w1_ref, bh_ref, w23_ref, w4_ref, b4_ref,
                      o_ref):
    """MLP_reduce with fused residual add (mid layers)."""
    o_ref[...] = (_mlp4(x_ref[...], w1_ref, bh_ref, w23_ref, w4_ref, b4_ref)
                  + res_ref[...])


# ---------------------------------------------------------------------------
# Pallas wrappers
# ---------------------------------------------------------------------------
def _param_spec(p):
    # Whole (tiny) parameter array resident in VMEM every grid step.
    return pl.BlockSpec(p.shape, lambda i, nd=p.ndim: (0,) * nd)


def _pad_rows(x, n_pad):
    n = x.shape[0]
    return jnp.pad(x, ((0, n_pad - n), (0, 0)))


def _run_mlp(kernel, tiled_inputs, params, out_w):
    """Run one of the MLP kernels over a 1-D row grid.

    Padded rows pass through the biased MLP and produce nonzero garbage; this
    is harmless because the result is sliced back to the true row count before
    any segment reduction sees it.
    """
    rows = tiled_inputs[0].shape[0]
    tile, rows_pad = _tile_rows(rows)
    padded = [_pad_rows(t, rows_pad) for t in tiled_inputs]
    in_specs = ([pl.BlockSpec((tile, t.shape[1]), lambda i: (i, 0))
                 for t in padded]
                + [_param_spec(p) for p in params])
    out = pl.pallas_call(
        kernel,
        grid=(rows_pad // tile,),
        in_specs=in_specs,
        out_specs=pl.BlockSpec((tile, out_w), lambda i: (i, 0)),
        out_shape=jax.ShapeDtypeStruct((rows_pad, out_w), jnp.float32),
        compiler_params=pltpu.CompilerParams(
            dimension_semantics=("parallel",),
            vmem_limit_bytes=VMEM_LIMIT),
    )(*padded, *params)
    return out[:rows]


def run_msg(edge_x, mp):
    """edge_x: [E, 2*in_nf+in_ef] bf16 -> gated messages [E, h1+h2] f32."""
    out_w = mp["w4"].shape[1] - 1                        # gate column excluded
    return _run_mlp(msg_kernel, [edge_x],
                    (mp["w1"], mp["bh"], mp["w23"], mp["w4"], mp["b4"]), out_w)


def run_reduce(node_x, rp, residual=None):
    """node_x: [N, in_nf+h1+h2] bf16 (+ optional f32 residual) -> [N, out_nf] f32."""
    out_w = rp["w4"].shape[1]
    params = (rp["w1"], rp["bh"], rp["w23"], rp["w4"], rp["b4"])
    if residual is None:
        return _run_mlp(reduce_kernel, [node_x], params, out_w)
    return _run_mlp(reduce_res_kernel, [node_x, residual], params, out_w)


# ---------------------------------------------------------------------------
# Parameter construction (PyTorch-Linear-style uniform init)
# ---------------------------------------------------------------------------
def init_linear(key, fan_in, fan_out):
    kw, kb = jax.random.split(key)
    bound = 1.0 / (fan_in ** 0.5)
    w = jax.random.uniform(kw, (fan_in, fan_out), jnp.float32, -bound, bound)
    b = jax.random.uniform(kb, (1, fan_out), jnp.float32, -bound, bound)
    return w, b


def _init_mlp(key, sizes):
    keys = jax.random.split(key, len(sizes) - 1)
    return [init_linear(k, sizes[i], sizes[i + 1]) for i, k in enumerate(keys)]


def init_allconv(key, in_nf, out_nf, in_ef=12, h1=10, h2=10):
    k_msg, k_red = jax.random.split(key)

    # MLP_msg: (2*in_nf + in_ef, 32, 32, 32, 1 + h1 + h2)
    (w1, b1), (w2, b2), (w3, b3), (w4, b4) = _init_mlp(
        k_msg, (in_nf * 2 + in_ef, 32, 32, 32, 1 + h1 + h2))
    # PyTorch split order is [k | f1 | f2] (gate first).  Repack the head with
    # the gate LAST so the stored output [f1|f2] stays at lanes 0..h1+h2-1.
    w4p = jnp.concatenate([w4[:, 1:], w4[:, :1]], axis=1)       # (32, h1+h2+1)
    b4p = jnp.concatenate([b4[:, 1:], b4[:, :1]], axis=1)       # (1, h1+h2+1)
    msg_p = {
        "w1": w1.astype(DOT_DTYPE),                             # (2*in_nf+in_ef, 32)
        "bh": jnp.concatenate([b1, b2, b3], axis=0),            # (3, 32) f32
        "w23": jnp.stack([w2, w3], axis=0).astype(DOT_DTYPE),   # (2, 32, 32)
        "w4": w4p.astype(DOT_DTYPE),
        "b4": b4p,                                              # f32
    }

    # MLP_reduce: (in_nf + h1 + h2, 32, 32, 32, out_nf)
    (rw1, rb1), (rw2, rb2), (rw3, rb3), (rw4, rb4) = _init_mlp(
        k_red, (in_nf + h1 + h2, 32, 32, 32, out_nf))
    red_p = {
        "w1": rw1.astype(DOT_DTYPE),                            # (in_nf+h1+h2, 32)
        "bh": jnp.concatenate([rb1, rb2, rb3], axis=0),
        "w23": jnp.stack([rw2, rw3], axis=0).astype(DOT_DTYPE),
        "w4": rw4.astype(DOT_DTYPE),
        "b4": rb4,
    }
    return {"msg": msg_p, "reduce": red_p, "out_nf": out_nf, "h1": h1, "h2": h2}


def init_deepgcnii(key, n_layers=4, out_nf=8):
    keys = jax.random.split(key, n_layers)
    layer0 = init_allconv(keys[0], 10, 16)
    mids = [init_allconv(keys[i + 1], 26, 16) for i in range(n_layers - 2)]
    layern = init_allconv(keys[-1], 16, out_nf)
    return {"layer0": layer0, "mids": mids, "layern": layern}


# ---------------------------------------------------------------------------
# Forward pass
# ---------------------------------------------------------------------------
def all_conv(params, src, dst, ef_b, nf, num_nodes, residual=None):
    h1 = params["h1"]
    nf_b = nf.astype(DOT_DTYPE)                         # cast once; gather writes bf16
    # edge_udf: MLP_msg + sigmoid gate on concat([nf_src, nf_dst, ef])   (Pallas)
    edge_x = jnp.concatenate([nf_b[src], nf_b[dst], ef_b], axis=1)
    msg = run_msg(edge_x, params["msg"])                # [E, h1+h2] f32
    ef1, ef2 = msg[:, :h1], msg[:, h1:]                 # static lane split (free)
    # message reduction: sum(ef1), max(ef2) over destination nodes (JAX scatter)
    nf1 = jax.ops.segment_sum(ef1, dst, num_segments=num_nodes)
    nf2 = jax.ops.segment_max(ef2, dst, num_segments=num_nodes)
    deg = jax.ops.segment_sum(jnp.ones((dst.shape[0],), jnp.float32), dst,
                              num_segments=num_nodes)
    nf2 = jnp.where(deg[:, None] > 0, nf2, 0.0)   # DGL: zero-in-degree nodes get 0
    # node update: MLP_reduce on concat([nf, nf1, nf2]) (+ fused residual)  (Pallas)
    node_x = jnp.concatenate(
        [nf_b, nf1.astype(DOT_DTYPE), nf2.astype(DOT_DTYPE)], axis=1)
    return run_reduce(node_x, params["reduce"], residual=residual)


def deepgcnii_forward(params, nf, src, dst, ef):
    num_nodes = nf.shape[0]
    ef_b = ef.astype(DOT_DTYPE)     # hoisted: edge features never change per layer
    x = all_conv(params["layer0"], src, dst, ef_b, nf, num_nodes)
    for lp in params["mids"]:
        # residual add fused into the reduce kernel
        x = all_conv(lp, src, dst, ef_b, jnp.concatenate([x, nf], axis=1),
                     num_nodes, residual=x)
    x = all_conv(params["layern"], src, dst, ef_b, x, num_nodes)
    return x


if __name__ == "__main__":
    key = jax.random.PRNGKey(0)
    k_nf, k_ef, k_src, k_dst, k_par = jax.random.split(key, 5)

    N, E = 32, 64                       # small graph: 32 nodes, 64 edges
    nf = jax.random.normal(k_nf, (N, 10), jnp.float32)     # node features [N, 10]
    ef = jax.random.normal(k_ef, (E, 12), jnp.float32)     # edge features [E, 12]
    src = jax.random.randint(k_src, (E,), 0, N)
    dst = jax.random.randint(k_dst, (E,), 0, N)

    params = init_deepgcnii(k_par, n_layers=4, out_nf=8)

    fwd = jax.jit(functools.partial(deepgcnii_forward, params))
    out = fwd(nf, src, dst, ef)
    jax.block_until_ready(out)
    assert out.shape == (N, 8) and out.dtype == jnp.float32
    print("KERNEL_OK")
</pallas_src>

<mosaic_0001>
module attributes {stable_mosaic.version = 11 : i64} {
  func.func private @main(%arg0: i32) attributes {dimension_semantics = [#tpu.dimension_semantics<core_parallel>], iteration_bounds = array<i64: 2>, tpu.core_type = #tpu.core_type<sc_scalar_subcore>, window_params = []} {
    return
  }
}

module attributes {stable_mosaic.version = 11 : i64} {
  func.func private @main(%arg0: i32) attributes {dimension_semantics = [#tpu.dimension_semantics<core_parallel>], iteration_bounds = array<i64: 2>, tpu.core_type = #tpu.core_type<sc_scalar_subcore>, window_params = []} {
    return
  }
}

module attributes {stable_mosaic.version = 11 : i64} {
  func.func @msg_kernel(%arg0: i32, %arg1: memref<128x32xbf16, #tpu.memory_space<vmem>>, %arg2: memref<32x32xbf16, #tpu.memory_space<vmem>>, %arg3: memref<3x32xf32, #tpu.memory_space<vmem>>, %arg4: memref<2x32x32xbf16, #tpu.memory_space<vmem>>, %arg5: memref<32x21xbf16, #tpu.memory_space<vmem>>, %arg6: memref<1x21xf32, #tpu.memory_space<vmem>>, %arg7: memref<128x20xf32, #tpu.memory_space<vmem>>) attributes {dimension_semantics = [#tpu.dimension_semantics<parallel>], iteration_bounds = array<i64: 1>, scalar_prefetch = 0 : i64, scratch_operands = 0 : i64, tpu.core_type = #tpu.core_type<tc>, window_params = [{transform_indices = @transform_0, window_bounds = array<i64: 128, 32>}, {pipeline_mode = #tpu.pipeline_mode<synchronous>, transform_indices = @transform_1, window_bounds = array<i64: 32, 32>}, {pipeline_mode = #tpu.pipeline_mode<synchronous>, transform_indices = @transform_2, window_bounds = array<i64: 3, 32>}, {pipeline_mode = #tpu.pipeline_mode<synchronous>, transform_indices = @transform_3, window_bounds = array<i64: 2, 32, 32>}, {pipeline_mode = #tpu.pipeline_mode<synchronous>, transform_indices = @transform_4, window_bounds = array<i64: 32, 21>}, {pipeline_mode = #tpu.pipeline_mode<synchronous>, transform_indices = @transform_5, window_bounds = array<i64: 1, 21>}, {transform_indices = @transform_6, window_bounds = array<i64: 128, 20>}]} {
    %c0 = arith.constant 0 : index
    %c0_0 = arith.constant 0 : index
    %0 = vector.load %arg1[%c0, %c0_0] : memref<128x32xbf16, #tpu.memory_space<vmem>>, vector<128x32xbf16>
    %c0_1 = arith.constant 0 : index
    %c0_2 = arith.constant 0 : index
    %1 = vector.load %arg3[%c0_1, %c0_2] : memref<3x32xf32, #tpu.memory_space<vmem>>, vector<3x32xf32>
    %c0_3 = arith.constant 0 : index
    %c0_4 = arith.constant 0 : index
    %2 = vector.load %arg2[%c0_3, %c0_4] : memref<32x32xbf16, #tpu.memory_space<vmem>>, vector<32x32xbf16>
    %cst = arith.constant dense<0.000000e+00> : vector<128x32xf32>
    %3 = tpu.matmul %0, %2, %cst {dimension_numbers = #tpu.dot_dimension_numbers<[1], [0], [0], [1], [0, 0, 1, 1], [], []>} : vector<128x32xbf16>, vector<32x32xbf16>, vector<128x32xf32> -> vector<128x32xf32>
    %4 = vector.extract_strided_slice %1 {offsets = [0, 0], sizes = [1, 32], strides = [1, 1]} : vector<3x32xf32> to vector<1x32xf32>
    %5 = vector.broadcast %4 : vector<1x32xf32> to vector<128x32xf32>
    %6 = arith.addf %3, %5 : vector<128x32xf32>
    %cst_5 = arith.constant 0.000000e+00 : f32
    %7 = vector.broadcast %cst_5 : f32 to vector<128x32xf32>
    %8 = arith.cmpf oge, %6, %7 : vector<128x32xf32>
    %cst_6 = arith.constant 2.000000e-01 : f32
    %9 = vector.broadcast %cst_6 : f32 to vector<128x32xf32>
    %10 = arith.mulf %9, %6 : vector<128x32xf32>
    %11 = arith.select %8, %6, %10 : vector<128x32xi1>, vector<128x32xf32>
    %12 = arith.truncf %11 : vector<128x32xf32> to vector<128x32xbf16>
    %c0_7 = arith.constant 0 : index
    %c0_8 = arith.constant 0 : index
    %c0_9 = arith.constant 0 : index
    %13 = vector.load %arg4[%c0_7, %c0_8, %c0_9] : memref<2x32x32xbf16, #tpu.memory_space<vmem>>, vector<1x32x32xbf16>
    %14 = vector.shape_cast %13 : vector<1x32x32xbf16> to vector<32x32xbf16>
    %cst_10 = arith.constant dense<0.000000e+00> : vector<128x32xf32>
    %15 = tpu.matmul %12, %14, %cst_10 {dimension_numbers = #tpu.dot_dimension_numbers<[1], [0], [0], [1], [0, 0, 1, 1], [], []>} : vector<128x32xbf16>, vector<32x32xbf16>, vector<128x32xf32> -> vector<128x32xf32>
    %16 = vector.extract_strided_slice %1 {offsets = [1, 0], sizes = [1, 32], strides = [1, 1]} : vector<3x32xf32> to vector<1x32xf32>
    %17 = vector.broadcast %16 : vector<1x32xf32> to vector<128x32xf32>
    %18 = arith.addf %15, %17 : vector<128x32xf32>
    %cst_11 = arith.constant 0.000000e+00 : f32
    %19 = vector.broadcast %cst_11 : f32 to vector<128x32xf32>
    %20 = arith.cmpf oge, %18, %19 : vector<128x32xf32>
    %cst_12 = arith.constant 2.000000e-01 : f32
    %21 = vector.broadcast %cst_12 : f32 to vector<128x32xf32>
    %22 = arith.mulf %21, %18 : vector<128x32xf32>
    %23 = arith.select %20, %18, %22 : vector<128x32xi1>, vector<128x32xf32>
    %24 = arith.truncf %23 : vector<128x32xf32> to vector<128x32xbf16>
    %c1 = arith.constant 1 : index
    %c0_13 = arith.constant 0 : index
    %c0_14 = arith.constant 0 : index
    %25 = vector.load %arg4[%c1, %c0_13, %c0_14] : memref<2x32x32xbf16, #tpu.memory_space<vmem>>, vector<1x32x32xbf16>
    %26 = vector.shape_cast %25 : vector<1x32x32xbf16> to vector<32x32xbf16>
    %cst_15 = arith.constant dense<0.000000e+00> : vector<128x32xf32>
    %27 = tpu.matmul %24, %26, %cst_15 {dimension_numbers = #tpu.dot_dimension_numbers<[1], [0], [0], [1], [0, 0, 1, 1], [], []>} : vector<128x32xbf16>, vector<32x32xbf16>, vector<128x32xf32> -> vector<128x32xf32>
    %28 = vector.extract_strided_slice %1 {offsets = [2, 0], sizes = [1, 32], strides = [1, 1]} : vector<3x32xf32> to vector<1x32xf32>
    %29 = vector.broadcast %28 : vector<1x32xf32> to vector<128x32xf32>
    %30 = arith.addf %27, %29 : vector<128x32xf32>
    %cst_16 = arith.constant 0.000000e+00 : f32
    %31 = vector.broadcast %cst_16 : f32 to vector<128x32xf32>
    %32 = arith.cmpf oge, %30, %31 : vector<128x32xf32>
    %cst_17 = arith.constant 2.000000e-01 : f32
    %33 = vector.broadcast %cst_17 : f32 to vector<128x32xf32>
    %34 = arith.mulf %33, %30 : vector<128x32xf32>
    %35 = arith.select %32, %30, %34 : vector<128x32xi1>, vector<128x32xf32>
    %36 = arith.truncf %35 : vector<128x32xf32> to vector<128x32xbf16>
    %c0_18 = arith.constant 0 : index
    %c0_19 = arith.constant 0 : index
    %37 = vector.load %arg5[%c0_18, %c0_19] : memref<32x21xbf16, #tpu.memory_space<vmem>>, vector<32x21xbf16>
    %cst_20 = arith.constant dense<0.000000e+00> : vector<128x21xf32>
    %38 = tpu.matmul %36, %37, %cst_20 {dimension_numbers = #tpu.dot_dimension_numbers<[1], [0], [0], [1], [0, 0, 1, 1], [], []>} : vector<128x32xbf16>, vector<32x21xbf16>, vector<128x21xf32> -> vector<128x21xf32>
    %c0_21 = arith.constant 0 : index
    %c0_22 = arith.constant 0 : index
    %39 = vector.load %arg6[%c0_21, %c0_22] : memref<1x21xf32, #tpu.memory_space<vmem>>, vector<1x21xf32>
    %40 = vector.broadcast %39 : vector<1x21xf32> to vector<128x21xf32>
    %41 = arith.addf %38, %40 : vector<128x21xf32>
    %42 = vector.extract_strided_slice %41 {offsets = [0, 20], sizes = [128, 1], strides = [1, 1]} : vector<128x21xf32> to vector<128x1xf32>
    %43 = arith.negf %42 : vector<128x1xf32>
    %44 = math.exp %43 : vector<128x1xf32>
    %cst_23 = arith.constant 1.000000e+00 : f32
    %45 = vector.broadcast %cst_23 : f32 to vector<128x1xf32>
    %46 = arith.addf %45, %44 : vector<128x1xf32>
    %47 = arith.divf %45, %46 : vector<128x1xf32>
    %48 = vector.extract_strided_slice %41 {offsets = [0, 0], sizes = [128, 20], strides = [1, 1]} : vector<128x21xf32> to vector<128x20xf32>
    %49 = vector.broadcast %47 : vector<128x1xf32> to vector<128x20xf32>
    %50 = arith.mulf %48, %49 : vector<128x20xf32>
    %c0_24 = arith.constant 0 : index
    %c0_25 = arith.constant 0 : index
    %51 = vector.load %arg7[%c0_24, %c0_25] : memref<128x20xf32, #tpu.memory_space<vmem>>, vector<128x20xf32>
    tpu.vector_store %arg7[%c0_24, %c0_25], %50 {strides = array<i32>} : memref<128x20xf32, #tpu.memory_space<vmem>>, vector<128x20xf32>,
    return
  }
  func.func @transform_0(%arg0: i32) -> (i32, i32) {
    %c0_i32 = arith.constant 0 : i32
    %c0_i32_0 = arith.constant 0 : i32
    return %arg0, %c0_i32 : i32, i32
  }
  func.func @transform_1(%arg0: i32) -> (i32, i32) {
    %c0_i32 = arith.constant 0 : i32
    %c0_i32_0 = arith.constant 0 : i32
    %c0_i32_1 = arith.constant 0 : i32
    return %c0_i32, %c0_i32_0 : i32, i32
  }
  func.func @transform_2(%arg0: i32) -> (i32, i32) {
    %c0_i32 = arith.constant 0 : i32
    %c0_i32_0 = arith.constant 0 : i32
    %c0_i32_1 = arith.constant 0 : i32
    return %c0_i32, %c0_i32_0 : i32, i32
  }
  func.func @transform_3(%arg0: i32) -> (i32, i32, i32) {
    %c0_i32 = arith.constant 0 : i32
    %c0_i32_0 = arith.constant 0 : i32
    %c0_i32_1 = arith.constant 0 : i32
    %c0_i32_2 = arith.constant 0 : i32
    return %c0_i32, %c0_i32_0, %c0_i32_1 : i32, i32, i32
  }
  func.func @transform_4(%arg0: i32) -> (i32, i32) {
    %c0_i32 = arith.constant 0 : i32
    %c0_i32_0 = arith.constant 0 : i32
    %c0_i32_1 = arith.constant 0 : i32
    return %c0_i32, %c0_i32_0 : i32, i32
  }
  func.func @transform_5(%arg0: i32) -> (i32, i32) {
    %c0_i32 = arith.constant 0 : i32
    %c0_i32_0 = arith.constant 0 : i32
    %c0_i32_1 = arith.constant 0 : i32
    return %c0_i32, %c0_i32_0 : i32, i32
  }
  func.func @transform_6(%arg0: i32) -> (i32, i32) {
    %c0_i32 = arith.constant 0 : i32
    %c0_i32_0 = arith.constant 0 : i32
    return %arg0, %c0_i32 : i32, i32
  }
}

module attributes {stable_mosaic.version = 11 : i64} {
  func.func @msg_kernel(%arg0: i32, %arg1: memref<128x64xbf16, #tpu.memory_space<vmem>>, %arg2: memref<64x32xbf16, #tpu.memory_space<vmem>>, %arg3: memref<3x32xf32, #tpu.memory_space<vmem>>, %arg4: memref<2x32x32xbf16, #tpu.memory_space<vmem>>, %arg5: memref<32x21xbf16, #tpu.memory_space<vmem>>, %arg6: memref<1x21xf32, #tpu.memory_space<vmem>>, %arg7: memref<128x20xf32, #tpu.memory_space<vmem>>) attributes {dimension_semantics = [#tpu.dimension_semantics<parallel>], iteration_bounds = array<i64: 1>, scalar_prefetch = 0 : i64, scratch_operands = 0 : i64, tpu.core_type = #tpu.core_type<tc>, window_params = [{transform_indices = @transform_0, window_bounds = array<i64: 128, 64>}, {pipeline_mode = #tpu.pipeline_mode<synchronous>, transform_indices = @transform_1, window_bounds = array<i64: 64, 32>}, {pipeline_mode = #tpu.pipeline_mode<synchronous>, transform_indices = @transform_2, window_bounds = array<i64: 3, 32>}, {pipeline_mode = #tpu.pipeline_mode<synchronous>, transform_indices = @transform_3, window_bounds = array<i64: 2, 32, 32>}, {pipeline_mode = #tpu.pipeline_mode<synchronous>, transform_indices = @transform_4, window_bounds = array<i64: 32, 21>}, {pipeline_mode = #tpu.pipeline_mode<synchronous>, transform_indices = @transform_5, window_bounds = array<i64: 1, 21>}, {transform_indices = @transform_6, window_bounds = array<i64: 128, 20>}]} {
    %c0 = arith.constant 0 : index
    %c0_0 = arith.constant 0 : index
    %0 = vector.load %arg1[%c0, %c0_0] : memref<128x64xbf16, #tpu.memory_space<vmem>>, vector<128x64xbf16>
    %c0_1 = arith.constant 0 : index
    %c0_2 = arith.constant 0 : index
    %1 = vector.load %arg3[%c0_1, %c0_2] : memref<3x32xf32, #tpu.memory_space<vmem>>, vector<3x32xf32>
    %c0_3 = arith.constant 0 : index
    %c0_4 = arith.constant 0 : index
    %2 = vector.load %arg2[%c0_3, %c0_4] : memref<64x32xbf16, #tpu.memory_space<vmem>>, vector<64x32xbf16>
    %cst = arith.constant dense<0.000000e+00> : vector<128x32xf32>
    %3 = tpu.matmul %0, %2, %cst {dimension_numbers = #tpu.dot_dimension_numbers<[1], [0], [0], [1], [0, 0, 1, 1], [], []>} : vector<128x64xbf16>, vector<64x32xbf16>, vector<128x32xf32> -> vector<128x32xf32>
    %4 = vector.extract_strided_slice %1 {offsets = [0, 0], sizes = [1, 32], strides = [1, 1]} : vector<3x32xf32> to vector<1x32xf32>
    %5 = vector.broadcast %4 : vector<1x32xf32> to vector<128x32xf32>
    %6 = arith.addf %3, %5 : vector<128x32xf32>
    %cst_5 = arith.constant 0.000000e+00 : f32
    %7 = vector.broadcast %cst_5 : f32 to vector<128x32xf32>
    %8 = arith.cmpf oge, %6, %7 : vector<128x32xf32>
    %cst_6 = arith.constant 2.000000e-01 : f32
    %9 = vector.broadcast %cst_6 : f32 to vector<128x32xf32>
    %10 = arith.mulf %9, %6 : vector<128x32xf32>
    %11 = arith.select %8, %6, %10 : vector<128x32xi1>, vector<128x32xf32>
    %12 = arith.truncf %11 : vector<128x32xf32> to vector<128x32xbf16>
    %c0_7 = arith.constant 0 : index
    %c0_8 = arith.constant 0 : index
    %c0_9 = arith.constant 0 : index
    %13 = vector.load %arg4[%c0_7, %c0_8, %c0_9] : memref<2x32x32xbf16, #tpu.memory_space<vmem>>, vector<1x32x32xbf16>
    %14 = vector.shape_cast %13 : vector<1x32x32xbf16> to vector<32x32xbf16>
    %cst_10 = arith.constant dense<0.000000e+00> : vector<128x32xf32>
    %15 = tpu.matmul %12, %14, %cst_10 {dimension_numbers = #tpu.dot_dimension_numbers<[1], [0], [0], [1], [0, 0, 1, 1], [], []>} : vector<128x32xbf16>, vector<32x32xbf16>, vector<128x32xf32> -> vector<128x32xf32>
    %16 = vector.extract_strided_slice %1 {offsets = [1, 0], sizes = [1, 32], strides = [1, 1]} : vector<3x32xf32> to vector<1x32xf32>
    %17 = vector.broadcast %16 : vector<1x32xf32> to vector<128x32xf32>
    %18 = arith.addf %15, %17 : vector<128x32xf32>
    %cst_11 = arith.constant 0.000000e+00 : f32
    %19 = vector.broadcast %cst_11 : f32 to vector<128x32xf32>
    %20 = arith.cmpf oge, %18, %19 : vector<128x32xf32>
    %cst_12 = arith.constant 2.000000e-01 : f32
    %21 = vector.broadcast %cst_12 : f32 to vector<128x32xf32>
    %22 = arith.mulf %21, %18 : vector<128x32xf32>
    %23 = arith.select %20, %18, %22 : vector<128x32xi1>, vector<128x32xf32>
    %24 = arith.truncf %23 : vector<128x32xf32> to vector<128x32xbf16>
    %c1 = arith.constant 1 : index
    %c0_13 = arith.constant 0 : index
    %c0_14 = arith.constant 0 : index
    %25 = vector.load %arg4[%c1, %c0_13, %c0_14] : memref<2x32x32xbf16, #tpu.memory_space<vmem>>, vector<1x32x32xbf16>
    %26 = vector.shape_cast %25 : vector<1x32x32xbf16> to vector<32x32xbf16>
    %cst_15 = arith.constant dense<0.000000e+00> : vector<128x32xf32>
    %27 = tpu.matmul %24, %26, %cst_15 {dimension_numbers = #tpu.dot_dimension_numbers<[1], [0], [0], [1], [0, 0, 1, 1], [], []>} : vector<128x32xbf16>, vector<32x32xbf16>, vector<128x32xf32> -> vector<128x32xf32>
    %28 = vector.extract_strided_slice %1 {offsets = [2, 0], sizes = [1, 32], strides = [1, 1]} : vector<3x32xf32> to vector<1x32xf32>
    %29 = vector.broadcast %28 : vector<1x32xf32> to vector<128x32xf32>
    %30 = arith.addf %27, %29 : vector<128x32xf32>
    %cst_16 = arith.constant 0.000000e+00 : f32
    %31 = vector.broadcast %cst_16 : f32 to vector<128x32xf32>
    %32 = arith.cmpf oge, %30, %31 : vector<128x32xf32>
    %cst_17 = arith.constant 2.000000e-01 : f32
    %33 = vector.broadcast %cst_17 : f32 to vector<128x32xf32>
    %34 = arith.mulf %33, %30 : vector<128x32xf32>
    %35 = arith.select %32, %30, %34 : vector<128x32xi1>, vector<128x32xf32>
    %36 = arith.truncf %35 : vector<128x32xf32> to vector<128x32xbf16>
    %c0_18 = arith.constant 0 : index
    %c0_19 = arith.constant 0 : index
    %37 = vector.load %arg5[%c0_18, %c0_19] : memref<32x21xbf16, #tpu.memory_space<vmem>>, vector<32x21xbf16>
    %cst_20 = arith.constant dense<0.000000e+00> : vector<128x21xf32>
    %38 = tpu.matmul %36, %37, %cst_20 {dimension_numbers = #tpu.dot_dimension_numbers<[1], [0], [0], [1], [0, 0, 1, 1], [], []>} : vector<128x32xbf16>, vector<32x21xbf16>, vector<128x21xf32> -> vector<128x21xf32>
    %c0_21 = arith.constant 0 : index
    %c0_22 = arith.constant 0 : index
    %39 = vector.load %arg6[%c0_21, %c0_22] : memref<1x21xf32, #tpu.memory_space<vmem>>, vector<1x21xf32>
    %40 = vector.broadcast %39 : vector<1x21xf32> to vector<128x21xf32>
    %41 = arith.addf %38, %40 : vector<128x21xf32>
    %42 = vector.extract_strided_slice %41 {offsets = [0, 20], sizes = [128, 1], strides = [1, 1]} : vector<128x21xf32> to vector<128x1xf32>
    %43 = arith.negf %42 : vector<128x1xf32>
    %44 = math.exp %43 : vector<128x1xf32>
    %cst_23 = arith.constant 1.000000e+00 : f32
    %45 = vector.broadcast %cst_23 : f32 to vector<128x1xf32>
    %46 = arith.addf %45, %44 : vector<128x1xf32>
    %47 = arith.divf %45, %46 : vector<128x1xf32>
    %48 = vector.extract_strided_slice %41 {offsets = [0, 0], sizes = [128, 20], strides = [1, 1]} : vector<128x21xf32> to vector<128x20xf32>
    %49 = vector.broadcast %47 : vector<128x1xf32> to vector<128x20xf32>
    %50 = arith.mulf %48, %49 : vector<128x20xf32>
    %c0_24 = arith.constant 0 : index
    %c0_25 = arith.constant 0 : index
    %51 = vector.load %arg7[%c0_24, %c0_25] : memref<128x20xf32, #tpu.memory_space<vmem>>, vector<128x20xf32>
    tpu.vector_store %arg7[%c0_24, %c0_25], %50 {strides = array<i32>} : memref<128x20xf32, #tpu.memory_space<vmem>>, vector<128x20xf32>,
    return
  }
  func.func @transform_0(%arg0: i32) -> (i32, i32) {
    %c0_i32 = arith.constant 0 : i32
    %c0_i32_0 = arith.constant 0 : i32
    return %arg0, %c0_i32 : i32, i32
  }
  func.func @transform_1(%arg0: i32) -> (i32, i32) {
    %c0_i32 = arith.constant 0 : i32
    %c0_i32_0 = arith.constant 0 : i32
    %c0_i32_1 = arith.constant 0 : i32
    return %c0_i32, %c0_i32_0 : i32, i32
  }
  func.func @transform_2(%arg0: i32) -> (i32, i32) {
    %c0_i32 = arith.constant 0 : i32
    %c0_i32_0 = arith.constant 0 : i32
    %c0_i32_1 = arith.constant 0 : i32
    return %c0_i32, %c0_i32_0 : i32, i32
  }
  func.func @transform_3(%arg0: i32) -> (i32, i32, i32) {
    %c0_i32 = arith.constant 0 : i32
    %c0_i32_0 = arith.constant 0 : i32
    %c0_i32_1 = arith.constant 0 : i32
    %c0_i32_2 = arith.constant 0 : i32
    return %c0_i32, %c0_i32_0, %c0_i32_1 : i32, i32, i32
  }
  func.func @transform_4(%arg0: i32) -> (i32, i32) {
    %c0_i32 = arith.constant 0 : i32
    %c0_i32_0 = arith.constant 0 : i32
    %c0_i32_1 = arith.constant 0 : i32
    return %c0_i32, %c0_i32_0 : i32, i32
  }
  func.func @transform_5(%arg0: i32) -> (i32, i32) {
    %c0_i32 = arith.constant 0 : i32
    %c0_i32_0 = arith.constant 0 : i32
    %c0_i32_1 = arith.constant 0 : i32
    return %c0_i32, %c0_i32_0 : i32, i32
  }
  func.func @transform_6(%arg0: i32) -> (i32, i32) {
    %c0_i32 = arith.constant 0 : i32
    %c0_i32_0 = arith.constant 0 : i32
    return %arg0, %c0_i32 : i32, i32
  }
}

module attributes {stable_mosaic.version = 11 : i64} {
  func.func @reduce_kernel(%arg0: i32, %arg1: memref<128x30xbf16, #tpu.memory_space<vmem>>, %arg2: memref<30x32xbf16, #tpu.memory_space<vmem>>, %arg3: memref<3x32xf32, #tpu.memory_space<vmem>>, %arg4: memref<2x32x32xbf16, #tpu.memory_space<vmem>>, %arg5: memref<32x16xbf16, #tpu.memory_space<vmem>>, %arg6: memref<1x16xf32, #tpu.memory_space<vmem>>, %arg7: memref<128x16xf32, #tpu.memory_space<vmem>>) attributes {dimension_semantics = [#tpu.dimension_semantics<parallel>], iteration_bounds = array<i64: 1>, scalar_prefetch = 0 : i64, scratch_operands = 0 : i64, tpu.core_type = #tpu.core_type<tc>, window_params = [{transform_indices = @transform_0, window_bounds = array<i64: 128, 30>}, {pipeline_mode = #tpu.pipeline_mode<synchronous>, transform_indices = @transform_1, window_bounds = array<i64: 30, 32>}, {pipeline_mode = #tpu.pipeline_mode<synchronous>, transform_indices = @transform_2, window_bounds = array<i64: 3, 32>}, {pipeline_mode = #tpu.pipeline_mode<synchronous>, transform_indices = @transform_3, window_bounds = array<i64: 2, 32, 32>}, {pipeline_mode = #tpu.pipeline_mode<synchronous>, transform_indices = @transform_4, window_bounds = array<i64: 32, 16>}, {pipeline_mode = #tpu.pipeline_mode<synchronous>, transform_indices = @transform_5, window_bounds = array<i64: 1, 16>}, {transform_indices = @transform_6, window_bounds = array<i64: 128, 16>}]} {
    %c0 = arith.constant 0 : index
    %c0_0 = arith.constant 0 : index
    %0 = vector.load %arg1[%c0, %c0_0] : memref<128x30xbf16, #tpu.memory_space<vmem>>, vector<128x30xbf16>
    %c0_1 = arith.constant 0 : index
    %c0_2 = arith.constant 0 : index
    %1 = vector.load %arg3[%c0_1, %c0_2] : memref<3x32xf32, #tpu.memory_space<vmem>>, vector<3x32xf32>
    %c0_3 = arith.constant 0 : index
    %c0_4 = arith.constant 0 : index
    %2 = vector.load %arg2[%c0_3, %c0_4] : memref<30x32xbf16, #tpu.memory_space<vmem>>, vector<30x32xbf16>
    %cst = arith.constant dense<0.000000e+00> : vector<128x32xf32>
    %3 = tpu.matmul %0, %2, %cst {dimension_numbers = #tpu.dot_dimension_numbers<[1], [0], [0], [1], [0, 0, 1, 1], [], []>} : vector<128x30xbf16>, vector<30x32xbf16>, vector<128x32xf32> -> vector<128x32xf32>
    %4 = vector.extract_strided_slice %1 {offsets = [0, 0], sizes = [1, 32], strides = [1, 1]} : vector<3x32xf32> to vector<1x32xf32>
    %5 = vector.broadcast %4 : vector<1x32xf32> to vector<128x32xf32>
    %6 = arith.addf %3, %5 : vector<128x32xf32>
    %cst_5 = arith.constant 0.000000e+00 : f32
    %7 = vector.broadcast %cst_5 : f32 to vector<128x32xf32>
    %8 = arith.cmpf oge, %6, %7 : vector<128x32xf32>
    %cst_6 = arith.constant 2.000000e-01 : f32
    %9 = vector.broadcast %cst_6 : f32 to vector<128x32xf32>
    %10 = arith.mulf %9, %6 : vector<128x32xf32>
    %11 = arith.select %8, %6, %10 : vector<128x32xi1>, vector<128x32xf32>
    %12 = arith.truncf %11 : vector<128x32xf32> to vector<128x32xbf16>
    %c0_7 = arith.constant 0 : index
    %c0_8 = arith.constant 0 : index
    %c0_9 = arith.constant 0 : index
    %13 = vector.load %arg4[%c0_7, %c0_8, %c0_9] : memref<2x32x32xbf16, #tpu.memory_space<vmem>>, vector<1x32x32xbf16>
    %14 = vector.shape_cast %13 : vector<1x32x32xbf16> to vector<32x32xbf16>
    %cst_10 = arith.constant dense<0.000000e+00> : vector<128x32xf32>
    %15 = tpu.matmul %12, %14, %cst_10 {dimension_numbers = #tpu.dot_dimension_numbers<[1], [0], [0], [1], [0, 0, 1, 1], [], []>} : vector<128x32xbf16>, vector<32x32xbf16>, vector<128x32xf32> -> vector<128x32xf32>
    %16 = vector.extract_strided_slice %1 {offsets = [1, 0], sizes = [1, 32], strides = [1, 1]} : vector<3x32xf32> to vector<1x32xf32>
    %17 = vector.broadcast %16 : vector<1x32xf32> to vector<128x32xf32>
    %18 = arith.addf %15, %17 : vector<128x32xf32>
    %cst_11 = arith.constant 0.000000e+00 : f32
    %19 = vector.broadcast %cst_11 : f32 to vector<128x32xf32>
    %20 = arith.cmpf oge, %18, %19 : vector<128x32xf32>
    %cst_12 = arith.constant 2.000000e-01 : f32
    %21 = vector.broadcast %cst_12 : f32 to vector<128x32xf32>
    %22 = arith.mulf %21, %18 : vector<128x32xf32>
    %23 = arith.select %20, %18, %22 : vector<128x32xi1>, vector<128x32xf32>
    %24 = arith.truncf %23 : vector<128x32xf32> to vector<128x32xbf16>
    %c1 = arith.constant 1 : index
    %c0_13 = arith.constant 0 : index
    %c0_14 = arith.constant 0 : index
    %25 = vector.load %arg4[%c1, %c0_13, %c0_14] : memref<2x32x32xbf16, #tpu.memory_space<vmem>>, vector<1x32x32xbf16>
    %26 = vector.shape_cast %25 : vector<1x32x32xbf16> to vector<32x32xbf16>
    %cst_15 = arith.constant dense<0.000000e+00> : vector<128x32xf32>
    %27 = tpu.matmul %24, %26, %cst_15 {dimension_numbers = #tpu.dot_dimension_numbers<[1], [0], [0], [1], [0, 0, 1, 1], [], []>} : vector<128x32xbf16>, vector<32x32xbf16>, vector<128x32xf32> -> vector<128x32xf32>
    %28 = vector.extract_strided_slice %1 {offsets = [2, 0], sizes = [1, 32], strides = [1, 1]} : vector<3x32xf32> to vector<1x32xf32>
    %29 = vector.broadcast %28 : vector<1x32xf32> to vector<128x32xf32>
    %30 = arith.addf %27, %29 : vector<128x32xf32>
    %cst_16 = arith.constant 0.000000e+00 : f32
    %31 = vector.broadcast %cst_16 : f32 to vector<128x32xf32>
    %32 = arith.cmpf oge, %30, %31 : vector<128x32xf32>
    %cst_17 = arith.constant 2.000000e-01 : f32
    %33 = vector.broadcast %cst_17 : f32 to vector<128x32xf32>
    %34 = arith.mulf %33, %30 : vector<128x32xf32>
    %35 = arith.select %32, %30, %34 : vector<128x32xi1>, vector<128x32xf32>
    %36 = arith.truncf %35 : vector<128x32xf32> to vector<128x32xbf16>
    %c0_18 = arith.constant 0 : index
    %c0_19 = arith.constant 0 : index
    %37 = vector.load %arg5[%c0_18, %c0_19] : memref<32x16xbf16, #tpu.memory_space<vmem>>, vector<32x16xbf16>
    %cst_20 = arith.constant dense<0.000000e+00> : vector<128x16xf32>
    %38 = tpu.matmul %36, %37, %cst_20 {dimension_numbers = #tpu.dot_dimension_numbers<[1], [0], [0], [1], [0, 0, 1, 1], [], []>} : vector<128x32xbf16>, vector<32x16xbf16>, vector<128x16xf32> -> vector<128x16xf32>
    %c0_21 = arith.constant 0 : index
    %c0_22 = arith.constant 0 : index
    %39 = vector.load %arg6[%c0_21, %c0_22] : memref<1x16xf32, #tpu.memory_space<vmem>>, vector<1x16xf32>
    %40 = vector.broadcast %39 : vector<1x16xf32> to vector<128x16xf32>
    %41 = arith.addf %38, %40 : vector<128x16xf32>
    %c0_23 = arith.constant 0 : index
    %c0_24 = arith.constant 0 : index
    %42 = vector.load %arg7[%c0_23, %c0_24] : memref<128x16xf32, #tpu.memory_space<vmem>>, vector<128x16xf32>
    tpu.vector_store %arg7[%c0_23, %c0_24], %41 {strides = array<i32>} : memref<128x16xf32, #tpu.memory_space<vmem>>, vector<128x16xf32>,
    return
  }
  func.func @transform_0(%arg0: i32) -> (i32, i32) {
    %c0_i32 = arith.constant 0 : i32
    %c0_i32_0 = arith.constant 0 : i32
    return %arg0, %c0_i32 : i32, i32
  }
  func.func @transform_1(%arg0: i32) -> (i32, i32) {
    %c0_i32 = arith.constant 0 : i32
    %c0_i32_0 = arith.constant 0 : i32
    %c0_i32_1 = arith.constant 0 : i32
    return %c0_i32, %c0_i32_0 : i32, i32
  }
  func.func @transform_2(%arg0: i32) -> (i32, i32) {
    %c0_i32 = arith.constant 0 : i32
    %c0_i32_0 = arith.constant 0 : i32
    %c0_i32_1 = arith.constant 0 : i32
    return %c0_i32, %c0_i32_0 : i32, i32
  }
  func.func @transform_3(%arg0: i32) -> (i32, i32, i32) {
    %c0_i32 = arith.constant 0 : i32
    %c0_i32_0 = arith.constant 0 : i32
    %c0_i32_1 = arith.constant 0 : i32
    %c0_i32_2 = arith.constant 0 : i32
    return %c0_i32, %c0_i32_0, %c0_i32_1 : i32, i32, i32
  }
  func.func @transform_4(%arg0: i32) -> (i32, i32) {
    %c0_i32 = arith.constant 0 : i32
    %c0_i32_0 = arith.constant 0 : i32
    %c0_i32_1 = arith.constant 0 : i32
    return %c0_i32, %c0_i32_0 : i32, i32
  }
  func.func @transform_5(%arg0: i32) -> (i32, i32) {
    %c0_i32 = arith.constant 0 : i32
    %c0_i32_0 = arith.constant 0 : i32
    %c0_i32_1 = arith.constant 0 : i32
    return %c0_i32, %c0_i32_0 : i32, i32
  }
  func.func @transform_6(%arg0: i32) -> (i32, i32) {
    %c0_i32 = arith.constant 0 : i32
    %c0_i32_0 = arith.constant 0 : i32
    return %arg0, %c0_i32 : i32, i32
  }
}

module attributes {stable_mosaic.version = 11 : i64} {
  func.func @reduce_res_kernel(%arg0: i32, %arg1: memref<128x46xbf16, #tpu.memory_space<vmem>>, %arg2: memref<128x16xf32, #tpu.memory_space<vmem>>, %arg3: memref<46x32xbf16, #tpu.memory_space<vmem>>, %arg4: memref<3x32xf32, #tpu.memory_space<vmem>>, %arg5: memref<2x32x32xbf16, #tpu.memory_space<vmem>>, %arg6: memref<32x16xbf16, #tpu.memory_space<vmem>>, %arg7: memref<1x16xf32, #tpu.memory_space<vmem>>, %arg8: memref<128x16xf32, #tpu.memory_space<vmem>>) attributes {dimension_semantics = [#tpu.dimension_semantics<parallel>], iteration_bounds = array<i64: 1>, scalar_prefetch = 0 : i64, scratch_operands = 0 : i64, tpu.core_type = #tpu.core_type<tc>, window_params = [{transform_indices = @transform_0, window_bounds = array<i64: 128, 46>}, {transform_indices = @transform_1, window_bounds = array<i64: 128, 16>}, {pipeline_mode = #tpu.pipeline_mode<synchronous>, transform_indices = @transform_2, window_bounds = array<i64: 46, 32>}, {pipeline_mode = #tpu.pipeline_mode<synchronous>, transform_indices = @transform_3, window_bounds = array<i64: 3, 32>}, {pipeline_mode = #tpu.pipeline_mode<synchronous>, transform_indices = @transform_4, window_bounds = array<i64: 2, 32, 32>}, {pipeline_mode = #tpu.pipeline_mode<synchronous>, transform_indices = @transform_5, window_bounds = array<i64: 32, 16>}, {pipeline_mode = #tpu.pipeline_mode<synchronous>, transform_indices = @transform_6, window_bounds = array<i64: 1, 16>}, {transform_indices = @transform_7, window_bounds = array<i64: 128, 16>}]} {
    %c0 = arith.constant 0 : index
    %c0_0 = arith.constant 0 : index
    %0 = vector.load %arg1[%c0, %c0_0] : memref<128x46xbf16, #tpu.memory_space<vmem>>, vector<128x46xbf16>
    %c0_1 = arith.constant 0 : index
    %c0_2 = arith.constant 0 : index
    %1 = vector.load %arg4[%c0_1, %c0_2] : memref<3x32xf32, #tpu.memory_space<vmem>>, vector<3x32xf32>
    %c0_3 = arith.constant 0 : index
    %c0_4 = arith.constant 0 : index
    %2 = vector.load %arg3[%c0_3, %c0_4] : memref<46x32xbf16, #tpu.memory_space<vmem>>, vector<46x32xbf16>
    %cst = arith.constant dense<0.000000e+00> : vector<128x32xf32>
    %3 = tpu.matmul %0, %2, %cst {dimension_numbers = #tpu.dot_dimension_numbers<[1], [0], [0], [1], [0, 0, 1, 1], [], []>} : vector<128x46xbf16>, vector<46x32xbf16>, vector<128x32xf32> -> vector<128x32xf32>
    %4 = vector.extract_strided_slice %1 {offsets = [0, 0], sizes = [1, 32], strides = [1, 1]} : vector<3x32xf32> to vector<1x32xf32>
    %5 = vector.broadcast %4 : vector<1x32xf32> to vector<128x32xf32>
    %6 = arith.addf %3, %5 : vector<128x32xf32>
    %cst_5 = arith.constant 0.000000e+00 : f32
    %7 = vector.broadcast %cst_5 : f32 to vector<128x32xf32>
    %8 = arith.cmpf oge, %6, %7 : vector<128x32xf32>
    %cst_6 = arith.constant 2.000000e-01 : f32
    %9 = vector.broadcast %cst_6 : f32 to vector<128x32xf32>
    %10 = arith.mulf %9, %6 : vector<128x32xf32>
    %11 = arith.select %8, %6, %10 : vector<128x32xi1>, vector<128x32xf32>
    %12 = arith.truncf %11 : vector<128x32xf32> to vector<128x32xbf16>
    %c0_7 = arith.constant 0 : index
    %c0_8 = arith.constant 0 : index
    %c0_9 = arith.constant 0 : index
    %13 = vector.load %arg5[%c0_7, %c0_8, %c0_9] : memref<2x32x32xbf16, #tpu.memory_space<vmem>>, vector<1x32x32xbf16>
    %14 = vector.shape_cast %13 : vector<1x32x32xbf16> to vector<32x32xbf16>
    %cst_10 = arith.constant dense<0.000000e+00> : vector<128x32xf32>
    %15 = tpu.matmul %12, %14, %cst_10 {dimension_numbers = #tpu.dot_dimension_numbers<[1], [0], [0], [1], [0, 0, 1, 1], [], []>} : vector<128x32xbf16>, vector<32x32xbf16>, vector<128x32xf32> -> vector<128x32xf32>
    %16 = vector.extract_strided_slice %1 {offsets = [1, 0], sizes = [1, 32], strides = [1, 1]} : vector<3x32xf32> to vector<1x32xf32>
    %17 = vector.broadcast %16 : vector<1x32xf32> to vector<128x32xf32>
    %18 = arith.addf %15, %17 : vector<128x32xf32>
    %cst_11 = arith.constant 0.000000e+00 : f32
    %19 = vector.broadcast %cst_11 : f32 to vector<128x32xf32>
    %20 = arith.cmpf oge, %18, %19 : vector<128x32xf32>
    %cst_12 = arith.constant 2.000000e-01 : f32
    %21 = vector.broadcast %cst_12 : f32 to vector<128x32xf32>
    %22 = arith.mulf %21, %18 : vector<128x32xf32>
    %23 = arith.select %20, %18, %22 : vector<128x32xi1>, vector<128x32xf32>
    %24 = arith.truncf %23 : vector<128x32xf32> to vector<128x32xbf16>
    %c1 = arith.constant 1 : index
    %c0_13 = arith.constant 0 : index
    %c0_14 = arith.constant 0 : index
    %25 = vector.load %arg5[%c1, %c0_13, %c0_14] : memref<2x32x32xbf16, #tpu.memory_space<vmem>>, vector<1x32x32xbf16>
    %26 = vector.shape_cast %25 : vector<1x32x32xbf16> to vector<32x32xbf16>
    %cst_15 = arith.constant dense<0.000000e+00> : vector<128x32xf32>
    %27 = tpu.matmul %24, %26, %cst_15 {dimension_numbers = #tpu.dot_dimension_numbers<[1], [0], [0], [1], [0, 0, 1, 1], [], []>} : vector<128x32xbf16>, vector<32x32xbf16>, vector<128x32xf32> -> vector<128x32xf32>
    %28 = vector.extract_strided_slice %1 {offsets = [2, 0], sizes = [1, 32], strides = [1, 1]} : vector<3x32xf32> to vector<1x32xf32>
    %29 = vector.broadcast %28 : vector<1x32xf32> to vector<128x32xf32>
    %30 = arith.addf %27, %29 : vector<128x32xf32>
    %cst_16 = arith.constant 0.000000e+00 : f32
    %31 = vector.broadcast %cst_16 : f32 to vector<128x32xf32>
    %32 = arith.cmpf oge, %30, %31 : vector<128x32xf32>
    %cst_17 = arith.constant 2.000000e-01 : f32
    %33 = vector.broadcast %cst_17 : f32 to vector<128x32xf32>
    %34 = arith.mulf %33, %30 : vector<128x32xf32>
    %35 = arith.select %32, %30, %34 : vector<128x32xi1>, vector<128x32xf32>
    %36 = arith.truncf %35 : vector<128x32xf32> to vector<128x32xbf16>
    %c0_18 = arith.constant 0 : index
    %c0_19 = arith.constant 0 : index
    %37 = vector.load %arg6[%c0_18, %c0_19] : memref<32x16xbf16, #tpu.memory_space<vmem>>, vector<32x16xbf16>
    %cst_20 = arith.constant dense<0.000000e+00> : vector<128x16xf32>
    %38 = tpu.matmul %36, %37, %cst_20 {dimension_numbers = #tpu.dot_dimension_numbers<[1], [0], [0], [1], [0, 0, 1, 1], [], []>} : vector<128x32xbf16>, vector<32x16xbf16>, vector<128x16xf32> -> vector<128x16xf32>
    %c0_21 = arith.constant 0 : index
    %c0_22 = arith.constant 0 : index
    %39 = vector.load %arg7[%c0_21, %c0_22] : memref<1x16xf32, #tpu.memory_space<vmem>>, vector<1x16xf32>
    %40 = vector.broadcast %39 : vector<1x16xf32> to vector<128x16xf32>
    %41 = arith.addf %38, %40 : vector<128x16xf32>
    %c0_23 = arith.constant 0 : index
    %c0_24 = arith.constant 0 : index
    %42 = vector.load %arg2[%c0_23, %c0_24] : memref<128x16xf32, #tpu.memory_space<vmem>>, vector<128x16xf32>
    %43 = arith.addf %41, %42 : vector<128x16xf32>
    %c0_25 = arith.constant 0 : index
    %c0_26 = arith.constant 0 : index
    %44 = vector.load %arg8[%c0_25, %c0_26] : memref<128x16xf32, #tpu.memory_space<vmem>>, vector<128x16xf32>
    tpu.vector_store %arg8[%c0_25, %c0_26], %43 {strides = array<i32>} : memref<128x16xf32, #tpu.memory_space<vmem>>, vector<128x16xf32>,
    return
  }
  func.func @transform_0(%arg0: i32) -> (i32, i32) {
    %c0_i32 = arith.constant 0 : i32
    %c0_i32_0 = arith.constant 0 : i32
    return %arg0, %c0_i32 : i32, i32
  }
  func.func @transform_1(%arg0: i32) -> (i32, i32) {
    %c0_i32 = arith.constant 0 : i32
    %c0_i32_0 = arith.constant 0 : i32
    return %arg0, %c0_i32 : i32, i32
  }
  func.func @transform_2(%arg0: i32) -> (i32, i32) {
    %c0_i32 = arith.constant 0 : i32
    %c0_i32_0 = arith.constant 0 : i32
    %c0_i32_1 = arith.constant 0 : i32
    return %c0_i32, %c0_i32_0 : i32, i32
  }
  func.func @transform_3(%arg0: i32) -> (i32, i32) {
    %c0_i32 = arith.constant 0 : i32
    %c0_i32_0 = arith.constant 0 : i32
    %c0_i32_1 = arith.constant 0 : i32
    return %c0_i32, %c0_i32_0 : i32, i32
  }
  func.func @transform_4(%arg0: i32) -> (i32, i32, i32) {
    %c0_i32 = arith.constant 0 : i32
    %c0_i32_0 = arith.constant 0 : i32
    %c0_i32_1 = arith.constant 0 : i32
    %c0_i32_2 = arith.constant 0 : i32
    return %c0_i32, %c0_i32_0, %c0_i32_1 : i32, i32, i32
  }
  func.func @transform_5(%arg0: i32) -> (i32, i32) {
    %c0_i32 = arith.constant 0 : i32
    %c0_i32_0 = arith.constant 0 : i32
    %c0_i32_1 = arith.constant 0 : i32
    return %c0_i32, %c0_i32_0 : i32, i32
  }
  func.func @transform_6(%arg0: i32) -> (i32, i32) {
    %c0_i32 = arith.constant 0 : i32
    %c0_i32_0 = arith.constant 0 : i32
    %c0_i32_1 = arith.constant 0 : i32
    return %c0_i32, %c0_i32_0 : i32, i32
  }
  func.func @transform_7(%arg0: i32) -> (i32, i32) {
    %c0_i32 = arith.constant 0 : i32
    %c0_i32_0 = arith.constant 0 : i32
    return %arg0, %c0_i32 : i32, i32
  }
}

module attributes {stable_mosaic.version = 11 : i64} {
  func.func @msg_kernel(%arg0: i32, %arg1: memref<128x44xbf16, #tpu.memory_space<vmem>>, %arg2: memref<44x32xbf16, #tpu.memory_space<vmem>>, %arg3: memref<3x32xf32, #tpu.memory_space<vmem>>, %arg4: memref<2x32x32xbf16, #tpu.memory_space<vmem>>, %arg5: memref<32x21xbf16, #tpu.memory_space<vmem>>, %arg6: memref<1x21xf32, #tpu.memory_space<vmem>>, %arg7: memref<128x20xf32, #tpu.memory_space<vmem>>) attributes {dimension_semantics = [#tpu.dimension_semantics<parallel>], iteration_bounds = array<i64: 1>, scalar_prefetch = 0 : i64, scratch_operands = 0 : i64, tpu.core_type = #tpu.core_type<tc>, window_params = [{transform_indices = @transform_0, window_bounds = array<i64: 128, 44>}, {pipeline_mode = #tpu.pipeline_mode<synchronous>, transform_indices = @transform_1, window_bounds = array<i64: 44, 32>}, {pipeline_mode = #tpu.pipeline_mode<synchronous>, transform_indices = @transform_2, window_bounds = array<i64: 3, 32>}, {pipeline_mode = #tpu.pipeline_mode<synchronous>, transform_indices = @transform_3, window_bounds = array<i64: 2, 32, 32>}, {pipeline_mode = #tpu.pipeline_mode<synchronous>, transform_indices = @transform_4, window_bounds = array<i64: 32, 21>}, {pipeline_mode = #tpu.pipeline_mode<synchronous>, transform_indices = @transform_5, window_bounds = array<i64: 1, 21>}, {transform_indices = @transform_6, window_bounds = array<i64: 128, 20>}]} {
    %c0 = arith.constant 0 : index
    %c0_0 = arith.constant 0 : index
    %0 = vector.load %arg1[%c0, %c0_0] : memref<128x44xbf16, #tpu.memory_space<vmem>>, vector<128x44xbf16>
    %c0_1 = arith.constant 0 : index
    %c0_2 = arith.constant 0 : index
    %1 = vector.load %arg3[%c0_1, %c0_2] : memref<3x32xf32, #tpu.memory_space<vmem>>, vector<3x32xf32>
    %c0_3 = arith.constant 0 : index
    %c0_4 = arith.constant 0 : index
    %2 = vector.load %arg2[%c0_3, %c0_4] : memref<44x32xbf16, #tpu.memory_space<vmem>>, vector<44x32xbf16>
    %cst = arith.constant dense<0.000000e+00> : vector<128x32xf32>
    %3 = tpu.matmul %0, %2, %cst {dimension_numbers = #tpu.dot_dimension_numbers<[1], [0], [0], [1], [0, 0, 1, 1], [], []>} : vector<128x44xbf16>, vector<44x32xbf16>, vector<128x32xf32> -> vector<128x32xf32>
    %4 = vector.extract_strided_slice %1 {offsets = [0, 0], sizes = [1, 32], strides = [1, 1]} : vector<3x32xf32> to vector<1x32xf32>
    %5 = vector.broadcast %4 : vector<1x32xf32> to vector<128x32xf32>
    %6 = arith.addf %3, %5 : vector<128x32xf32>
    %cst_5 = arith.constant 0.000000e+00 : f32
    %7 = vector.broadcast %cst_5 : f32 to vector<128x32xf32>
    %8 = arith.cmpf oge, %6, %7 : vector<128x32xf32>
    %cst_6 = arith.constant 2.000000e-01 : f32
    %9 = vector.broadcast %cst_6 : f32 to vector<128x32xf32>
    %10 = arith.mulf %9, %6 : vector<128x32xf32>
    %11 = arith.select %8, %6, %10 : vector<128x32xi1>, vector<128x32xf32>
    %12 = arith.truncf %11 : vector<128x32xf32> to vector<128x32xbf16>
    %c0_7 = arith.constant 0 : index
    %c0_8 = arith.constant 0 : index
    %c0_9 = arith.constant 0 : index
    %13 = vector.load %arg4[%c0_7, %c0_8, %c0_9] : memref<2x32x32xbf16, #tpu.memory_space<vmem>>, vector<1x32x32xbf16>
    %14 = vector.shape_cast %13 : vector<1x32x32xbf16> to vector<32x32xbf16>
    %cst_10 = arith.constant dense<0.000000e+00> : vector<128x32xf32>
    %15 = tpu.matmul %12, %14, %cst_10 {dimension_numbers = #tpu.dot_dimension_numbers<[1], [0], [0], [1], [0, 0, 1, 1], [], []>} : vector<128x32xbf16>, vector<32x32xbf16>, vector<128x32xf32> -> vector<128x32xf32>
    %16 = vector.extract_strided_slice %1 {offsets = [1, 0], sizes = [1, 32], strides = [1, 1]} : vector<3x32xf32> to vector<1x32xf32>
    %17 = vector.broadcast %16 : vector<1x32xf32> to vector<128x32xf32>
    %18 = arith.addf %15, %17 : vector<128x32xf32>
    %cst_11 = arith.constant 0.000000e+00 : f32
    %19 = vector.broadcast %cst_11 : f32 to vector<128x32xf32>
    %20 = arith.cmpf oge, %18, %19 : vector<128x32xf32>
    %cst_12 = arith.constant 2.000000e-01 : f32
    %21 = vector.broadcast %cst_12 : f32 to vector<128x32xf32>
    %22 = arith.mulf %21, %18 : vector<128x32xf32>
    %23 = arith.select %20, %18, %22 : vector<128x32xi1>, vector<128x32xf32>
    %24 = arith.truncf %23 : vector<128x32xf32> to vector<128x32xbf16>
    %c1 = arith.constant 1 : index
    %c0_13 = arith.constant 0 : index
    %c0_14 = arith.constant 0 : index
    %25 = vector.load %arg4[%c1, %c0_13, %c0_14] : memref<2x32x32xbf16, #tpu.memory_space<vmem>>, vector<1x32x32xbf16>
    %26 = vector.shape_cast %25 : vector<1x32x32xbf16> to vector<32x32xbf16>
    %cst_15 = arith.constant dense<0.000000e+00> : vector<128x32xf32>
    %27 = tpu.matmul %24, %26, %cst_15 {dimension_numbers = #tpu.dot_dimension_numbers<[1], [0], [0], [1], [0, 0, 1, 1], [], []>} : vector<128x32xbf16>, vector<32x32xbf16>, vector<128x32xf32> -> vector<128x32xf32>
    %28 = vector.extract_strided_slice %1 {offsets = [2, 0], sizes = [1, 32], strides = [1, 1]} : vector<3x32xf32> to vector<1x32xf32>
    %29 = vector.broadcast %28 : vector<1x32xf32> to vector<128x32xf32>
    %30 = arith.addf %27, %29 : vector<128x32xf32>
    %cst_16 = arith.constant 0.000000e+00 : f32
    %31 = vector.broadcast %cst_16 : f32 to vector<128x32xf32>
    %32 = arith.cmpf oge, %30, %31 : vector<128x32xf32>
    %cst_17 = arith.constant 2.000000e-01 : f32
    %33 = vector.broadcast %cst_17 : f32 to vector<128x32xf32>
    %34 = arith.mulf %33, %30 : vector<128x32xf32>
    %35 = arith.select %32, %30, %34 : vector<128x32xi1>, vector<128x32xf32>
    %36 = arith.truncf %35 : vector<128x32xf32> to vector<128x32xbf16>
    %c0_18 = arith.constant 0 : index
    %c0_19 = arith.constant 0 : index
    %37 = vector.load %arg5[%c0_18, %c0_19] : memref<32x21xbf16, #tpu.memory_space<vmem>>, vector<32x21xbf16>
    %cst_20 = arith.constant dense<0.000000e+00> : vector<128x21xf32>
    %38 = tpu.matmul %36, %37, %cst_20 {dimension_numbers = #tpu.dot_dimension_numbers<[1], [0], [0], [1], [0, 0, 1, 1], [], []>} : vector<128x32xbf16>, vector<32x21xbf16>, vector<128x21xf32> -> vector<128x21xf32>
    %c0_21 = arith.constant 0 : index
    %c0_22 = arith.constant 0 : index
    %39 = vector.load %arg6[%c0_21, %c0_22] : memref<1x21xf32, #tpu.memory_space<vmem>>, vector<1x21xf32>
    %40 = vector.broadcast %39 : vector<1x21xf32> to vector<128x21xf32>
    %41 = arith.addf %38, %40 : vector<128x21xf32>
    %42 = vector.extract_strided_slice %41 {offsets = [0, 20], sizes = [128, 1], strides = [1, 1]} : vector<128x21xf32> to vector<128x1xf32>
    %43 = arith.negf %42 : vector<128x1xf32>
    %44 = math.exp %43 : vector<128x1xf32>
    %cst_23 = arith.constant 1.000000e+00 : f32
    %45 = vector.broadcast %cst_23 : f32 to vector<128x1xf32>
    %46 = arith.addf %45, %44 : vector<128x1xf32>
    %47 = arith.divf %45, %46 : vector<128x1xf32>
    %48 = vector.extract_strided_slice %41 {offsets = [0, 0], sizes = [128, 20], strides = [1, 1]} : vector<128x21xf32> to vector<128x20xf32>
    %49 = vector.broadcast %47 : vector<128x1xf32> to vector<128x20xf32>
    %50 = arith.mulf %48, %49 : vector<128x20xf32>
    %c0_24 = arith.constant 0 : index
    %c0_25 = arith.constant 0 : index
    %51 = vector.load %arg7[%c0_24, %c0_25] : memref<128x20xf32, #tpu.memory_space<vmem>>, vector<128x20xf32>
    tpu.vector_store %arg7[%c0_24, %c0_25], %50 {strides = array<i32>} : memref<128x20xf32, #tpu.memory_space<vmem>>, vector<128x20xf32>,
    return
  }
  func.func @transform_0(%arg0: i32) -> (i32, i32) {
    %c0_i32 = arith.constant 0 : i32
    %c0_i32_0 = arith.constant 0 : i32
    return %arg0, %c0_i32 : i32, i32
  }
  func.func @transform_1(%arg0: i32) -> (i32, i32) {
    %c0_i32 = arith.constant 0 : i32
    %c0_i32_0 = arith.constant 0 : i32
    %c0_i32_1 = arith.constant 0 : i32
    return %c0_i32, %c0_i32_0 : i32, i32
  }
  func.func @transform_2(%arg0: i32) -> (i32, i32) {
    %c0_i32 = arith.constant 0 : i32
    %c0_i32_0 = arith.constant 0 : i32
    %c0_i32_1 = arith.constant 0 : i32
    return %c0_i32, %c0_i32_0 : i32, i32
  }
  func.func @transform_3(%arg0: i32) -> (i32, i32, i32) {
    %c0_i32 = arith.constant 0 : i32
    %c0_i32_0 = arith.constant 0 : i32
    %c0_i32_1 = arith.constant 0 : i32
    %c0_i32_2 = arith.constant 0 : i32
    return %c0_i32, %c0_i32_0, %c0_i32_1 : i32, i32, i32
  }
  func.func @transform_4(%arg0: i32) -> (i32, i32) {
    %c0_i32 = arith.constant 0 : i32
    %c0_i32_0 = arith.constant 0 : i32
    %c0_i32_1 = arith.constant 0 : i32
    return %c0_i32, %c0_i32_0 : i32, i32
  }
  func.func @transform_5(%arg0: i32) -> (i32, i32) {
    %c0_i32 = arith.constant 0 : i32
    %c0_i32_0 = arith.constant 0 : i32
    %c0_i32_1 = arith.constant 0 : i32
    return %c0_i32, %c0_i32_0 : i32, i32
  }
  func.func @transform_6(%arg0: i32) -> (i32, i32) {
    %c0_i32 = arith.constant 0 : i32
    %c0_i32_0 = arith.constant 0 : i32
    return %arg0, %c0_i32 : i32, i32
  }
}

module attributes {stable_mosaic.version = 11 : i64} {
  func.func @reduce_kernel(%arg0: i32, %arg1: memref<128x36xbf16, #tpu.memory_space<vmem>>, %arg2: memref<36x32xbf16, #tpu.memory_space<vmem>>, %arg3: memref<3x32xf32, #tpu.memory_space<vmem>>, %arg4: memref<2x32x32xbf16, #tpu.memory_space<vmem>>, %arg5: memref<32x8xbf16, #tpu.memory_space<vmem>>, %arg6: memref<1x8xf32, #tpu.memory_space<vmem>>, %arg7: memref<128x8xf32, #tpu.memory_space<vmem>>) attributes {dimension_semantics = [#tpu.dimension_semantics<parallel>], iteration_bounds = array<i64: 1>, scalar_prefetch = 0 : i64, scratch_operands = 0 : i64, tpu.core_type = #tpu.core_type<tc>, window_params = [{transform_indices = @transform_0, window_bounds = array<i64: 128, 36>}, {pipeline_mode = #tpu.pipeline_mode<synchronous>, transform_indices = @transform_1, window_bounds = array<i64: 36, 32>}, {pipeline_mode = #tpu.pipeline_mode<synchronous>, transform_indices = @transform_2, window_bounds = array<i64: 3, 32>}, {pipeline_mode = #tpu.pipeline_mode<synchronous>, transform_indices = @transform_3, window_bounds = array<i64: 2, 32, 32>}, {pipeline_mode = #tpu.pipeline_mode<synchronous>, transform_indices = @transform_4, window_bounds = array<i64: 32, 8>}, {pipeline_mode = #tpu.pipeline_mode<synchronous>, transform_indices = @transform_5, window_bounds = array<i64: 1, 8>}, {transform_indices = @transform_6, window_bounds = array<i64: 128, 8>}]} {
    %c0 = arith.constant 0 : index
    %c0_0 = arith.constant 0 : index
    %0 = vector.load %arg1[%c0, %c0_0] : memref<128x36xbf16, #tpu.memory_space<vmem>>, vector<128x36xbf16>
    %c0_1 = arith.constant 0 : index
    %c0_2 = arith.constant 0 : index
    %1 = vector.load %arg3[%c0_1, %c0_2] : memref<3x32xf32, #tpu.memory_space<vmem>>, vector<3x32xf32>
    %c0_3 = arith.constant 0 : index
    %c0_4 = arith.constant 0 : index
    %2 = vector.load %arg2[%c0_3, %c0_4] : memref<36x32xbf16, #tpu.memory_space<vmem>>, vector<36x32xbf16>
    %cst = arith.constant dense<0.000000e+00> : vector<128x32xf32>
    %3 = tpu.matmul %0, %2, %cst {dimension_numbers = #tpu.dot_dimension_numbers<[1], [0], [0], [1], [0, 0, 1, 1], [], []>} : vector<128x36xbf16>, vector<36x32xbf16>, vector<128x32xf32> -> vector<128x32xf32>
    %4 = vector.extract_strided_slice %1 {offsets = [0, 0], sizes = [1, 32], strides = [1, 1]} : vector<3x32xf32> to vector<1x32xf32>
    %5 = vector.broadcast %4 : vector<1x32xf32> to vector<128x32xf32>
    %6 = arith.addf %3, %5 : vector<128x32xf32>
    %cst_5 = arith.constant 0.000000e+00 : f32
    %7 = vector.broadcast %cst_5 : f32 to vector<128x32xf32>
    %8 = arith.cmpf oge, %6, %7 : vector<128x32xf32>
    %cst_6 = arith.constant 2.000000e-01 : f32
    %9 = vector.broadcast %cst_6 : f32 to vector<128x32xf32>
    %10 = arith.mulf %9, %6 : vector<128x32xf32>
    %11 = arith.select %8, %6, %10 : vector<128x32xi1>, vector<128x32xf32>
    %12 = arith.truncf %11 : vector<128x32xf32> to vector<128x32xbf16>
    %c0_7 = arith.constant 0 : index
    %c0_8 = arith.constant 0 : index
    %c0_9 = arith.constant 0 : index
    %13 = vector.load %arg4[%c0_7, %c0_8, %c0_9] : memref<2x32x32xbf16, #tpu.memory_space<vmem>>, vector<1x32x32xbf16>
    %14 = vector.shape_cast %13 : vector<1x32x32xbf16> to vector<32x32xbf16>
    %cst_10 = arith.constant dense<0.000000e+00> : vector<128x32xf32>
    %15 = tpu.matmul %12, %14, %cst_10 {dimension_numbers = #tpu.dot_dimension_numbers<[1], [0], [0], [1], [0, 0, 1, 1], [], []>} : vector<128x32xbf16>, vector<32x32xbf16>, vector<128x32xf32> -> vector<128x32xf32>
    %16 = vector.extract_strided_slice %1 {offsets = [1, 0], sizes = [1, 32], strides = [1, 1]} : vector<3x32xf32> to vector<1x32xf32>
    %17 = vector.broadcast %16 : vector<1x32xf32> to vector<128x32xf32>
    %18 = arith.addf %15, %17 : vector<128x32xf32>
    %cst_11 = arith.constant 0.000000e+00 : f32
    %19 = vector.broadcast %cst_11 : f32 to vector<128x32xf32>
    %20 = arith.cmpf oge, %18, %19 : vector<128x32xf32>
    %cst_12 = arith.constant 2.000000e-01 : f32
    %21 = vector.broadcast %cst_12 : f32 to vector<128x32xf32>
    %22 = arith.mulf %21, %18 : vector<128x32xf32>
    %23 = arith.select %20, %18, %22 : vector<128x32xi1>, vector<128x32xf32>
    %24 = arith.truncf %23 : vector<128x32xf32> to vector<128x32xbf16>
    %c1 = arith.constant 1 : index
    %c0_13 = arith.constant 0 : index
    %c0_14 = arith.constant 0 : index
    %25 = vector.load %arg4[%c1, %c0_13, %c0_14] : memref<2x32x32xbf16, #tpu.memory_space<vmem>>, vector<1x32x32xbf16>
    %26 = vector.shape_cast %25 : vector<1x32x32xbf16> to vector<32x32xbf16>
    %cst_15 = arith.constant dense<0.000000e+00> : vector<128x32xf32>
    %27 = tpu.matmul %24, %26, %cst_15 {dimension_numbers = #tpu.dot_dimension_numbers<[1], [0], [0], [1], [0, 0, 1, 1], [], []>} : vector<128x32xbf16>, vector<32x32xbf16>, vector<128x32xf32> -> vector<128x32xf32>
    %28 = vector.extract_strided_slice %1 {offsets = [2, 0], sizes = [1, 32], strides = [1, 1]} : vector<3x32xf32> to vector<1x32xf32>
    %29 = vector.broadcast %28 : vector<1x32xf32> to vector<128x32xf32>
    %30 = arith.addf %27, %29 : vector<128x32xf32>
    %cst_16 = arith.constant 0.000000e+00 : f32
    %31 = vector.broadcast %cst_16 : f32 to vector<128x32xf32>
    %32 = arith.cmpf oge, %30, %31 : vector<128x32xf32>
    %cst_17 = arith.constant 2.000000e-01 : f32
    %33 = vector.broadcast %cst_17 : f32 to vector<128x32xf32>
    %34 = arith.mulf %33, %30 : vector<128x32xf32>
    %35 = arith.select %32, %30, %34 : vector<128x32xi1>, vector<128x32xf32>
    %36 = arith.truncf %35 : vector<128x32xf32> to vector<128x32xbf16>
    %c0_18 = arith.constant 0 : index
    %c0_19 = arith.constant 0 : index
    %37 = vector.load %arg5[%c0_18, %c0_19] : memref<32x8xbf16, #tpu.memory_space<vmem>>, vector<32x8xbf16>
    %cst_20 = arith.constant dense<0.000000e+00> : vector<128x8xf32>
    %38 = tpu.matmul %36, %37, %cst_20 {dimension_numbers = #tpu.dot_dimension_numbers<[1], [0], [0], [1], [0, 0, 1, 1], [], []>} : vector<128x32xbf16>, vector<32x8xbf16>, vector<128x8xf32> -> vector<128x8xf32>
    %c0_21 = arith.constant 0 : index
    %c0_22 = arith.constant 0 : index
    %39 = vector.load %arg6[%c0_21, %c0_22] : memref<1x8xf32, #tpu.memory_space<vmem>>, vector<1x8xf32>
    %40 = vector.broadcast %39 : vector<1x8xf32> to vector<128x8xf32>
    %41 = arith.addf %38, %40 : vector<128x8xf32>
    %c0_23 = arith.constant 0 : index
    %c0_24 = arith.constant 0 : index
    %42 = vector.load %arg7[%c0_23, %c0_24] : memref<128x8xf32, #tpu.memory_space<vmem>>, vector<128x8xf32>
    tpu.vector_store %arg7[%c0_23, %c0_24], %41 {strides = array<i32>} : memref<128x8xf32, #tpu.memory_space<vmem>>, vector<128x8xf32>,
    return
  }
  func.func @transform_0(%arg0: i32) -> (i32, i32) {
    %c0_i32 = arith.constant 0 : i32
    %c0_i32_0 = arith.constant 0 : i32
    return %arg0, %c0_i32 : i32, i32
  }
  func.func @transform_1(%arg0: i32) -> (i32, i32) {
    %c0_i32 = arith.constant 0 : i32
    %c0_i32_0 = arith.constant 0 : i32
    %c0_i32_1 = arith.constant 0 : i32
    return %c0_i32, %c0_i32_0 : i32, i32
  }
  func.func @transform_2(%arg0: i32) -> (i32, i32) {
    %c0_i32 = arith.constant 0 : i32
    %c0_i32_0 = arith.constant 0 : i32
    %c0_i32_1 = arith.constant 0 : i32
    return %c0_i32, %c0_i32_0 : i32, i32
  }
  func.func @transform_3(%arg0: i32) -> (i32, i32, i32) {
    %c0_i32 = arith.constant 0 : i32
    %c0_i32_0 = arith.constant 0 : i32
    %c0_i32_1 = arith.constant 0 : i32
    %c0_i32_2 = arith.constant 0 : i32
    return %c0_i32, %c0_i32_0, %c0_i32_1 : i32, i32, i32
  }
  func.func @transform_4(%arg0: i32) -> (i32, i32) {
    %c0_i32 = arith.constant 0 : i32
    %c0_i32_0 = arith.constant 0 : i32
    %c0_i32_1 = arith.constant 0 : i32
    return %c0_i32, %c0_i32_0 : i32, i32
  }
  func.func @transform_5(%arg0: i32) -> (i32, i32) {
    %c0_i32 = arith.constant 0 : i32
    %c0_i32_0 = arith.constant 0 : i32
    %c0_i32_1 = arith.constant 0 : i32
    return %c0_i32, %c0_i32_0 : i32, i32
  }
  func.func @transform_6(%arg0: i32) -> (i32, i32) {
    %c0_i32 = arith.constant 0 : i32
    %c0_i32_0 = arith.constant 0 : i32
    return %arg0, %c0_i32 : i32, i32
  }
}

</mosaic_0001>

<bundles_post_ra>
// kernel: deepgcnii_forward.8
= control target key start
LH: loop header
LB: loop body
LE: loop exit
PB: predicated region body
PF: predicated region fallthrough
CT: control target
= control target key end

     0   :  { %vm101_vm0 = vcmask 261120   ;;  %v45_v14 = vlaneseq  ;;  %s1635_s1 = inlined_call_operand.vmem [shape: bf16[32,32], index: 1, kind: input, shape index: {}]   ;;  %s1636_s0 = inlined_call_operand.vmem [shape: bf16[128,32], index: 0, kind: input, shape index: {}]   ;;  %s1637_s3 = inlined_call_operand.vmem [shape: bf16[2,32,32], index: 3, kind: input, shape index: {}]   ;;  %s1638_s2 = inlined_call_operand.vmem [shape: f32[3,32], index: 2, kind: input, shape index: {}]   ;;  %s1639_s4 = inlined_call_operand.vmem [shape: bf16[32,21], index: 4, kind: input, shape index: {}]   ;;  %s1640_s5 = inlined_call_operand.vmem [shape: f32[1,21], index: 5, kind: input, shape index: {}]   ;;  %s1641_s6 = inlined_call_operand.vmem [shape: f32[128,20], index: 6, kind: output, shape index: {}]  }
   0x1   :  { %v1223_v0 = vld [vmem:[%s1635_s1] sm:$0xff]   ;;  %v1224_v1 = vld [vmem:[%s1635_s1 + $0x8] sm:$0xff]   ;;  %v1227_v4 = vld [vmem:[%s1636_s0 + $0x10] sm:$0xff]  }
   0x2   :  { %1140 = vmatprep.subr.bf16.mxu0 %v1223_v0  ;;  %v1225_v2 = vld [vmem:[%s1636_s0] sm:$0xff]   ;;  %v1226_v3 = vld [vmem:[%s1636_s0 + $0x8] sm:$0xff]   ;;  %v1228_v5 = vld [vmem:[%s1636_s0 + $0x18] sm:$0xff]   ;;  %v1389_v15 = vshrl.u32 %v45_v14, 7 }
   0x3   :  { %1141 = vmatpush3.bf16.msra.mxu0 %v1223_v0  ;;  %1144 = vmatprep.mubr.msk.bf16.mxu0 %vm101_vm0, %v1225_v2  ;;  %v1229_v6 = vld [vmem:[%s1636_s0 + $0x20] sm:$0xff]   ;;  %v1230_v7 = vld [vmem:[%s1636_s0 + $0x28] sm:$0xff]   ;;  %v1231_v8 = vld [vmem:[%s1636_s0 + $0x30] sm:$0xff]  }
   0x4   :  { %1142 = vmatprep.subr.bf16.mxu0 %v1224_v1  ;;  %v1232_v9 = vld [vmem:[%s1636_s0 + $0x38] sm:$0xff]   ;;  %v1233_v10 = vld [vmem:[%s1637_s3] sm:$0xff]   ;;  %v1234_v11 = vld [vmem:[%s1637_s3 + $0x8] sm:$0xff]   ;;  %v47_v16 = vsub.s32 0, %v1389_v15 }
   0x5   :  { %1160 = vmatprep.subr.bf16.mxu1 %v1233_v10  ;;  %v1235_v12 = vld [vmem:[%s1637_s3 + $0x10] sm:$0xff]   ;;  %v1236_v13 = vld [vmem:[%s1637_s3 + $0x18] sm:$0xff]   ;;  %v1395_v17 = vld [vmem:[%s1638_s2] sm:$0x7] }
   0x6   :  { %1161 = vmatpush3.bf16.msra.mxu1 %v1233_v10  ;;  %v1398_v18 = vrot.slane %v1395_v17, %v47_v16 }
   0x7   :  { %1143 = vmatpush3.bf16.msra.mxu0 %v1224_v1  ;;  %1162 = vmatprep.subr.bf16.mxu1 %v1234_v11 }
   0x8   :  { %1180 = vmatprep.subr.bf16.mxu0 %v1235_v12 }
   0xa   :  { %1145 = vmatmul.mubr.msk.bf16.vlgmr.msra.gmra.mrb[0].mxu0 %vm101_vm0, %v1226_v3  ;;  %1163 = vmatpush3.bf16.msra.mxu1 %v1234_v11 }
   0xb   :  { %1148 = vmatprep.mubr.msk.bf16.mxu0 %vm101_vm0, %v1227_v4  ;;  %1181 = vmatpush3.bf16.msra.mxu0 %v1235_v12 }
   0xc   :  { %1182 = vmatprep.subr.bf16.mxu0 %v1236_v13 }
   0xf   :  { %1183 = vmatpush3.bf16.msra.mxu0 %v1236_v13 }
  0x12   :  { %1149 = vmatmul.mubr.msk.bf16.gmra.mrb[4].mxu0 %vm101_vm0, %v1228_v5 }
  0x13   :  { %1152 = vmatprep.mubr.msk.bf16.mxu0 %vm101_vm0, %v1229_v6 }
  0x1a   :  { %1153 = vmatmul.mubr.msk.bf16.gmra.mrb[8].mxu0 %vm101_vm0, %v1230_v7 }
  0x1b   :  { %1156 = vmatprep.mubr.msk.bf16.mxu0 %vm101_vm0, %v1231_v8 }
  0x22   :  { %1157 = vmatmul.mubr.msk.bf16.gmra.mrb[12].mxu0 %vm101_vm0, %v1232_v9 }
  0xdd   :  { %v1146_v19 = vpop.f32.mrb[0].mxu0 }
  0xde   :  { %v169_v20 = vadd.f32 %v1146_v19, %v1398_v18  ;;  %v160_v21 = vpop.f32.mrb[1].mxu0 }
  0xdf   :  { %v161_v22 = vadd.f32 %v160_v21, %v1398_v18  ;;  %v1147_v23 = vpop.f32.mrb[2].mxu0 }
  0xe0   :  { %v241_v24 = vmul.f32 0.2, %v169_v20  ;;  %v172_v25 = vadd.f32 %v1147_v23, %v1398_v18  ;;  %v163_v26 = vpop.f32.mrb[3].mxu0  ;;  %vm225_vm1 = vcmp.ge.f32.partialorder %v169_v20, 0.0 }
  0xe1   :  { %v239_v27 = vmul.f32 0.2, %v161_v22  ;;  %v164_v28 = vadd.f32 %v163_v26, %v1398_v18  ;;  %vm223_vm3 = vcmp.ge.f32.partialorder %v161_v22, 0.0 }
  0xe2   :  { %vm226_vm2 = vcmp.ge.f32.partialorder %v172_v25, 0.0  ;;  %v242_v29 = vmul.f32 0.2, %v172_v25  ;;  %v257_v31 = vsel %vm225_vm1, %v169_v20, %v241_v24 }
  0xe3   :  { %v240_v30 = vmul.f32 0.2, %v164_v28  ;;  %vm224_vm4 = vcmp.ge.f32.partialorder %v164_v28, 0.0  ;;  %v255_v35 = vsel %vm223_vm3, %v161_v22, %v239_v27 }
  0xe4   :  { %v258_v32 = vsel %vm226_vm2, %v172_v25, %v242_v29 }
  0xe5   :  { %v272_v33 = vpack.c.bf16 %v258_v32, %v257_v31  ;;  %v1150_v34 = vpop.f32.mrb[4].mxu0  ;;  %v256_v36 = vsel %vm224_vm4, %v164_v28, %v240_v30  ;;  %v1238_v30 = vld [vmem:[%s1639_s4 + $0x8] sm:$0xff]   ;;  %v285_v31 = vsub.s32 1, %v1389_v15 }
  0xe6   :  { %v185_v37 = vadd.f32 %v1150_v34, %v1398_v18  ;;  %v176_v38 = vpop.f32.mrb[5].mxu0  ;;  %v271_v39 = vpack.c.bf16 %v256_v36, %v255_v35 }
  0xe7   :  { %v177_v40 = vadd.f32 %v176_v38, %v1398_v18  ;;  %v1151_v41 = vpop.f32.mrb[6].mxu0  ;;  %v1432_v32 = vrot.slane %v1395_v17, %v285_v31 }
  0xe8   :  { %v245_v42 = vmul.f32 0.2, %v185_v37  ;;  %v188_v43 = vadd.f32 %v1151_v41, %v1398_v18  ;;  %v179_v44 = vpop.f32.mrb[7].mxu0  ;;  %1164 = vmatprep.mubr.msk.bf16.mxu1 %vm101_vm0, %v271_v39  ;;  %vm229_vm5 = vcmp.ge.f32.partialorder %v185_v37, 0.0 }
  0xe9   :  { %v243_v45 = vmul.f32 0.2, %v177_v40  ;;  %v180_v46 = vadd.f32 %v179_v44, %v1398_v18  ;;  %1165 = vmatmul.mubr.msk.bf16.vlgmr.msra.gmra.mrb[0].mxu1 %vm101_vm0, %v272_v33  ;;  %vm227_vm6 = vcmp.ge.f32.partialorder %v177_v40, 0.0 }
  0xea   :  { %vm230_vm7 = vcmp.ge.f32.partialorder %v188_v43, 0.0  ;;  %v246_v47 = vmul.f32 0.2, %v188_v43  ;;  %v261_v49 = vsel %vm229_vm5, %v185_v37, %v245_v42 }
  0xeb   :  { %vm228_vm8 = vcmp.ge.f32.partialorder %v180_v46, 0.0  ;;  %v244_v48 = vmul.f32 0.2, %v180_v46  ;;  %v259_v51 = vsel %vm227_vm6, %v177_v40, %v243_v45 }
  0xec   :  { %v262_v50 = vsel %vm230_vm7, %v188_v43, %v246_v47 }
  0xed   :  { %v274_v52 = vpack.c.bf16 %v262_v50, %v261_v49  ;;  %v260_v53 = vsel %vm228_vm8, %v180_v46, %v244_v48  ;;  %v1154_v54 = vpop.f32.mrb[8].mxu0 }
  0xee   :  { %v273_v55 = vpack.c.bf16 %v260_v53, %v259_v51  ;;  %v201_v56 = vadd.f32 %v1154_v54, %v1398_v18  ;;  %v192_v57 = vpop.f32.mrb[9].mxu0 }
  0xef   :  { %v193_v58 = vadd.f32 %v192_v57, %v1398_v18  ;;  %v1155_v59 = vpop.f32.mrb[10].mxu0 }
  0xf0   :  { %v249_v60 = vmul.f32 0.2, %v201_v56  ;;  %v204_v61 = vadd.f32 %v1155_v59, %v1398_v18  ;;  %v195_v62 = vpop.f32.mrb[11].mxu0  ;;  %1168 = vmatprep.mubr.msk.bf16.mxu1 %vm101_vm0, %v273_v55  ;;  %vm233_vm9 = vcmp.ge.f32.partialorder %v201_v56, 0.0 }
  0xf1   :  { %v247_v63 = vmul.f32 0.2, %v193_v58  ;;  %v196_v0 = vadd.f32 %v195_v62, %v1398_v18  ;;  %1169 = vmatmul.mubr.msk.bf16.gmra.mrb[4].mxu1 %vm101_vm0, %v274_v52  ;;  %vm231_vm10 = vcmp.ge.f32.partialorder %v193_v58, 0.0 }
  0xf2   :  { %vm234_vm11 = vcmp.ge.f32.partialorder %v204_v61, 0.0  ;;  %v250_v1 = vmul.f32 0.2, %v204_v61  ;;  %v265_v3 = vsel %vm233_vm9, %v201_v56, %v249_v60 }
  0xf3   :  { %vm232_vm12 = vcmp.ge.f32.partialorder %v196_v0, 0.0  ;;  %v248_v2 = vmul.f32 0.2, %v196_v0  ;;  %v263_v5 = vsel %vm231_vm10, %v193_v58, %v247_v63 }
  0xf4   :  { %v266_v4 = vsel %vm234_vm11, %v204_v61, %v250_v1 }
  0xf5   :  { %v276_v6 = vpack.c.bf16 %v266_v4, %v265_v3  ;;  %v264_v7 = vsel %vm232_vm12, %v196_v0, %v248_v2  ;;  %v1158_v8 = vpop.f32.mrb[12].mxu0 }
  0xf6   :  { %v275_v9 = vpack.c.bf16 %v264_v7, %v263_v5  ;;  %v217_v10 = vadd.f32 %v1158_v8, %v1398_v18  ;;  %v208_v11 = vpop.f32.mrb[13].mxu0 }
  0xf7   :  { %v209_v12 = vadd.f32 %v208_v11, %v1398_v18  ;;  %v1159_v13 = vpop.f32.mrb[14].mxu0 }
  0xf8   :  { %v253_v14 = vmul.f32 0.2, %v217_v10  ;;  %v220_v16 = vadd.f32 %v1159_v13, %v1398_v18  ;;  %v211_v19 = vpop.f32.mrb[15].mxu0  ;;  %1172 = vmatprep.mubr.msk.bf16.mxu1 %vm101_vm0, %v275_v9  ;;  %vm237_vm13 = vcmp.ge.f32.partialorder %v217_v10, 0.0 }
  0xf9   :  { %v251_v20 = vmul.f32 0.2, %v209_v12  ;;  %v212_v21 = vadd.f32 %v211_v19, %v1398_v18  ;;  %1173 = vmatmul.mubr.msk.bf16.gmra.mrb[8].mxu1 %vm101_vm0, %v276_v6  ;;  %vm235_vm14 = vcmp.ge.f32.partialorder %v209_v12, 0.0  ;;  %v1237_v18 = vld [vmem:[%s1639_s4] sm:$0xff]  }
  0xfa   :  { %vm238_vm15 = vcmp.ge.f32.partialorder %v220_v16, 0.0  ;;  %v254_v22 = vmul.f32 0.2, %v220_v16  ;;  %v269_v24 = vsel %vm237_vm13, %v217_v10, %v253_v14  ;;  %1200 = vmatprep.subr.bf16.mxu1 %v1237_v18 }
  0xfb   :  { %vm236_vm1 = vcmp.ge.f32.partialorder %v212_v21, 0.0  ;;  %v252_v23 = vmul.f32 0.2, %v212_v21  ;;  %v267_v26 = vsel %vm235_vm14, %v209_v12, %v251_v20  ;;  %1201 = vmatpush3.bf16.msra.mxu1 %v1237_v18 }
  0xfc   :  { %v270_v25 = vsel %vm238_vm15, %v220_v16, %v254_v22  ;;  %1202 = vmatprep.subr.bf16.mxu1 %v1238_v30 }
  0xfd   :  { %v278_v27 = vpack.c.bf16 %v270_v25, %v269_v24  ;;  %v268_v28 = vsel %vm236_vm1, %v212_v21, %v252_v23 }
  0xfe   :  { %v277_v29 = vpack.c.bf16 %v268_v28, %v267_v26 }
  0xff   :  { %1203 = vmatpush3.bf16.msra.mxu1 %v1238_v30 }
 0x100   :  { %1176 = vmatprep.mubr.msk.bf16.mxu1 %vm101_vm0, %v277_v29 }
 0x101   :  { %1177 = vmatmul.mubr.msk.bf16.gmra.mrb[12].mxu1 %vm101_vm0, %v278_v27 }
 0x1bc   :  { %v1166_v33 = vpop.f32.mrb[0].mxu1 }
 0x1bd   :  { %v366_v34 = vadd.f32 %v1166_v33, %v1432_v32  ;;  %v357_v35 = vpop.f32.mrb[1].mxu1 }
 0x1be   :  { %v358_v36 = vadd.f32 %v357_v35, %v1432_v32  ;;  %v1167_v37 = vpop.f32.mrb[2].mxu1 }
 0x1bf   :  { %v438_v38 = vmul.f32 0.2, %v366_v34  ;;  %v369_v39 = vadd.f32 %v1167_v37, %v1432_v32  ;;  %v360_v40 = vpop.f32.mrb[3].mxu1  ;;  %vm422_vm2 = vcmp.ge.f32.partialorder %v366_v34, 0.0 }
 0x1c0   :  { %v436_v41 = vmul.f32 0.2, %v358_v36  ;;  %v361_v42 = vadd.f32 %v360_v40, %v1432_v32  ;;  %vm420_vm3 = vcmp.ge.f32.partialorder %v358_v36, 0.0 }
 0x1c1   :  { %vm423_vm4 = vcmp.ge.f32.partialorder %v369_v39, 0.0  ;;  %v439_v43 = vmul.f32 0.2, %v369_v39  ;;  %v454_v45 = vsel %vm422_vm2, %v366_v34, %v438_v38 }
 0x1c2   :  { %vm421_vm5 = vcmp.ge.f32.partialorder %v361_v42, 0.0  ;;  %v437_v44 = vmul.f32 0.2, %v361_v42  ;;  %v452_v47 = vsel %vm420_vm3, %v358_v36, %v436_v41 }
 0x1c3   :  { %v455_v46 = vsel %vm423_vm4, %v369_v39, %v439_v43 }
 0x1c4   :  { %v469_v48 = vpack.c.bf16 %v455_v46, %v454_v45  ;;  %v453_v49 = vsel %vm421_vm5, %v361_v42, %v437_v44  ;;  %v1170_v50 = vpop.f32.mrb[4].mxu1  ;;  %v483_v44 = vsub.s32 2, %v1389_v15 }
 0x1c5   :  { %v468_v51 = vpack.c.bf16 %v453_v49, %v452_v47  ;;  %v382_v52 = vadd.f32 %v1170_v50, %v1432_v32  ;;  %v373_v53 = vpop.f32.mrb[5].mxu1 }
 0x1c6   :  { %v374_v54 = vadd.f32 %v373_v53, %v1432_v32  ;;  %v1171_v55 = vpop.f32.mrb[6].mxu1 }
 0x1c7   :  { %v442_v56 = vmul.f32 0.2, %v382_v52  ;;  %v385_v57 = vadd.f32 %v1171_v55, %v1432_v32  ;;  %v376_v58 = vpop.f32.mrb[7].mxu1  ;;  %1184 = vmatprep.mubr.msk.bf16.mxu0 %vm101_vm0, %v468_v51  ;;  %vm426_vm6 = vcmp.ge.f32.partialorder %v382_v52, 0.0 }
 0x1c8   :  { %v440_v59 = vmul.f32 0.2, %v374_v54  ;;  %v377_v60 = vadd.f32 %v376_v58, %v1432_v32  ;;  %1185 = vmatmul.mubr.msk.bf16.vlgmr.msra.gmra.mrb[16].mxu0 %vm101_vm0, %v469_v48  ;;  %vm424_vm7 = vcmp.ge.f32.partialorder %v374_v54, 0.0 }
 0x1c9   :  { %vm427_vm8 = vcmp.ge.f32.partialorder %v385_v57, 0.0  ;;  %v443_v61 = vmul.f32 0.2, %v385_v57  ;;  %v458_v63 = vsel %vm426_vm6, %v382_v52, %v442_v56 }
 0x1ca   :  { %vm425_vm9 = vcmp.ge.f32.partialorder %v377_v60, 0.0  ;;  %v441_v62 = vmul.f32 0.2, %v377_v60  ;;  %v456_v1 = vsel %vm424_vm7, %v374_v54, %v440_v59 }
 0x1cb   :  { %v459_v0 = vsel %vm427_vm8, %v385_v57, %v443_v61 }
 0x1cc   :  { %v471_v2 = vpack.c.bf16 %v459_v0, %v458_v63  ;;  %v457_v3 = vsel %vm425_vm9, %v377_v60, %v441_v62  ;;  %v1174_v4 = vpop.f32.mrb[8].mxu1 }
 0x1cd   :  { %v470_v5 = vpack.c.bf16 %v457_v3, %v456_v1  ;;  %v398_v6 = vadd.f32 %v1174_v4, %v1432_v32  ;;  %v389_v7 = vpop.f32.mrb[9].mxu1 }
 0x1ce   :  { %v390_v8 = vadd.f32 %v389_v7, %v1432_v32  ;;  %v1175_v9 = vpop.f32.mrb[10].mxu1 }
 0x1cf   :  { %v446_v10 = vmul.f32 0.2, %v398_v6  ;;  %v401_v11 = vadd.f32 %v1175_v9, %v1432_v32  ;;  %v392_v12 = vpop.f32.mrb[11].mxu1  ;;  %1188 = vmatprep.mubr.msk.bf16.mxu0 %vm101_vm0, %v470_v5  ;;  %vm430_vm10 = vcmp.ge.f32.partialorder %v398_v6, 0.0 }
 0x1d0   :  { %v444_v13 = vmul.f32 0.2, %v390_v8  ;;  %v393_v14 = vadd.f32 %v392_v12, %v1432_v32  ;;  %1189 = vmatmul.mubr.msk.bf16.gmra.mrb[20].mxu0 %vm101_vm0, %v471_v2  ;;  %vm428_vm11 = vcmp.ge.f32.partialorder %v390_v8, 0.0 }
 0x1d1   :  { %vm431_vm12 = vcmp.ge.f32.partialorder %v401_v11, 0.0  ;;  %v447_v16 = vmul.f32 0.2, %v401_v11  ;;  %v462_v20 = vsel %vm430_vm10, %v398_v6, %v446_v10 }
 0x1d2   :  { %vm429_vm13 = vcmp.ge.f32.partialorder %v393_v14, 0.0  ;;  %v445_v19 = vmul.f32 0.2, %v393_v14  ;;  %v460_v22 = vsel %vm428_vm11, %v390_v8, %v444_v13 }
 0x1d3   :  { %v463_v21 = vsel %vm431_vm12, %v401_v11, %v447_v16 }
 0x1d4   :  { %v473_v23 = vpack.c.bf16 %v463_v21, %v462_v20  ;;  %v461_v24 = vsel %vm429_vm13, %v393_v14, %v445_v19  ;;  %v1178_v25 = vpop.f32.mrb[12].mxu1 }
 0x1d5   :  { %v472_v26 = vpack.c.bf16 %v461_v24, %v460_v22  ;;  %v414_v27 = vadd.f32 %v1178_v25, %v1432_v32  ;;  %v405_v28 = vpop.f32.mrb[13].mxu1 }
 0x1d6   :  { %v406_v29 = vadd.f32 %v405_v28, %v1432_v32  ;;  %v1179_v18 = vpop.f32.mrb[14].mxu1 }
 0x1d7   :  { %v450_v30 = vmul.f32 0.2, %v414_v27  ;;  %v417_v31 = vadd.f32 %v1179_v18, %v1432_v32  ;;  %v408_v33 = vpop.f32.mrb[15].mxu1  ;;  %1192 = vmatprep.mubr.msk.bf16.mxu0 %vm101_vm0, %v472_v26  ;;  %vm434_vm14 = vcmp.ge.f32.partialorder %v414_v27, 0.0 }
 0x1d8   :  { %v448_v34 = vmul.f32 0.2, %v406_v29  ;;  %v409_v35 = vadd.f32 %v408_v33, %v1432_v32  ;;  %1193 = vmatmul.mubr.msk.bf16.gmra.mrb[24].mxu0 %vm101_vm0, %v473_v23  ;;  %vm432_vm15 = vcmp.ge.f32.partialorder %v406_v29, 0.0  ;;  %v1460_v32 = vrot.slane %v1395_v17, %v483_v44 }
 0x1d9   :  { %vm435_vm1 = vcmp.ge.f32.partialorder %v417_v31, 0.0  ;;  %v451_v36 = vmul.f32 0.2, %v417_v31  ;;  %v466_v38 = vsel %vm434_vm14, %v414_v27, %v450_v30 }
 0x1da   :  { %vm433_vm2 = vcmp.ge.f32.partialorder %v409_v35, 0.0  ;;  %v449_v37 = vmul.f32 0.2, %v409_v35  ;;  %v464_v40 = vsel %vm432_vm15, %v406_v29, %v448_v34 }
 0x1db   :  { %v467_v39 = vsel %vm435_vm1, %v417_v31, %v451_v36 }
 0x1dc   :  { %v475_v41 = vpack.c.bf16 %v467_v39, %v466_v38  ;;  %v465_v42 = vsel %vm433_vm2, %v409_v35, %v449_v37 }
 0x1dd   :  { %v474_v43 = vpack.c.bf16 %v465_v42, %v464_v40 }
 0x1df   :  { %1196 = vmatprep.mubr.msk.bf16.mxu0 %vm101_vm0, %v474_v43 }
 0x1e0   :  { %1197 = vmatmul.mubr.msk.bf16.gmra.mrb[28].mxu0 %vm101_vm0, %v475_v41 }
 0x29b   :  { %v1186_v45 = vpop.f32.mrb[16].mxu0 }
 0x29c   :  { %v564_v46 = vadd.f32 %v1186_v45, %v1460_v32  ;;  %v555_v47 = vpop.f32.mrb[17].mxu0 }
 0x29d   :  { %v556_v48 = vadd.f32 %v555_v47, %v1460_v32  ;;  %v1187_v49 = vpop.f32.mrb[18].mxu0 }
 0x29e   :  { %v636_v50 = vmul.f32 0.2, %v564_v46  ;;  %v567_v51 = vadd.f32 %v1187_v49, %v1460_v32  ;;  %v558_v52 = vpop.f32.mrb[19].mxu0  ;;  %vm620_vm3 = vcmp.ge.f32.partialorder %v564_v46, 0.0 }
 0x29f   :  { %v634_v53 = vmul.f32 0.2, %v556_v48  ;;  %v559_v54 = vadd.f32 %v558_v52, %v1460_v32  ;;  %vm618_vm4 = vcmp.ge.f32.partialorder %v556_v48, 0.0 }
 0x2a0   :  { %vm621_vm5 = vcmp.ge.f32.partialorder %v567_v51, 0.0  ;;  %v637_v15 = vmul.f32 0.2, %v567_v51  ;;  %v652_v55 = vsel %vm620_vm3, %v564_v46, %v636_v50 }
 0x2a1   :  { %vm619_vm6 = vcmp.ge.f32.partialorder %v559_v54, 0.0  ;;  %v635_v17 = vmul.f32 0.2, %v559_v54  ;;  %v650_v57 = vsel %vm618_vm4, %v556_v48, %v634_v53 }
 0x2a2   :  { %v653_v56 = vsel %vm621_vm5, %v567_v51, %v637_v15 }
 0x2a3   :  { %v667_v58 = vpack.c.bf16 %v653_v56, %v652_v55  ;;  %v651_v59 = vsel %vm619_vm6, %v559_v54, %v635_v17  ;;  %v1190_v60 = vpop.f32.mrb[20].mxu0  ;;  %v1303_v54 = vmov 20  }
 0x2a4   :  { %v666_v61 = vpack.c.bf16 %v651_v59, %v650_v57  ;;  %v580_v62 = vadd.f32 %v1190_v60, %v1460_v32  ;;  %v571_v63 = vpop.f32.mrb[21].mxu0  ;;  %1221 = vset.pattern.permute.xlu1 %v1303_v54  ;;  %1222 = vset.pattern.permute.xlu0 %v1303_v54 }
 0x2a5   :  { %v572_v0 = vadd.f32 %v571_v63, %v1460_v32  ;;  %v1191_v1 = vpop.f32.mrb[22].mxu0 }
 0x2a6   :  { %v640_v2 = vmul.f32 0.2, %v580_v62  ;;  %v583_v3 = vadd.f32 %v1191_v1, %v1460_v32  ;;  %v574_v4 = vpop.f32.mrb[23].mxu0  ;;  %1204 = vmatprep.mubr.msk.bf16.mxu1 %vm101_vm0, %v666_v61  ;;  %vm624_vm7 = vcmp.ge.f32.partialorder %v580_v62, 0.0 }
 0x2a7   :  { %v638_v5 = vmul.f32 0.2, %v572_v0  ;;  %v575_v6 = vadd.f32 %v574_v4, %v1460_v32  ;;  %1205 = vmatmul.mubr.msk.bf16.vlgmr.msra.gmra.mrb[16].mxu1 %vm101_vm0, %v667_v58  ;;  %vm622_vm8 = vcmp.ge.f32.partialorder %v572_v0, 0.0 }
 0x2a8   :  { %vm625_vm9 = vcmp.ge.f32.partialorder %v583_v3, 0.0  ;;  %v641_v7 = vmul.f32 0.2, %v583_v3  ;;  %v656_v9 = vsel %vm624_vm7, %v580_v62, %v640_v2 }
 0x2a9   :  { %vm623_vm10 = vcmp.ge.f32.partialorder %v575_v6, 0.0  ;;  %v639_v8 = vmul.f32 0.2, %v575_v6  ;;  %v654_v11 = vsel %vm622_vm8, %v572_v0, %v638_v5 }
 0x2aa   :  { %v657_v10 = vsel %vm625_vm9, %v583_v3, %v641_v7 }
 0x2ab   :  { %v669_v12 = vpack.c.bf16 %v657_v10, %v656_v9  ;;  %v655_v13 = vsel %vm623_vm10, %v575_v6, %v639_v8  ;;  %v1194_v14 = vpop.f32.mrb[24].mxu0 }
 0x2ac   :  { %v668_v16 = vpack.c.bf16 %v655_v13, %v654_v11  ;;  %v596_v19 = vadd.f32 %v1194_v14, %v1460_v32  ;;  %v587_v20 = vpop.f32.mrb[25].mxu0 }
 0x2ad   :  { %v588_v21 = vadd.f32 %v587_v20, %v1460_v32  ;;  %v1195_v22 = vpop.f32.mrb[26].mxu0 }
 0x2ae   :  { %v644_v23 = vmul.f32 0.2, %v596_v19  ;;  %v599_v24 = vadd.f32 %v1195_v22, %v1460_v32  ;;  %v590_v25 = vpop.f32.mrb[27].mxu0  ;;  %1208 = vmatprep.mubr.msk.bf16.mxu1 %vm101_vm0, %v668_v16  ;;  %vm628_vm11 = vcmp.ge.f32.partialorder %v596_v19, 0.0 }
 0x2af   :  { %v642_v26 = vmul.f32 0.2, %v588_v21  ;;  %v591_v27 = vadd.f32 %v590_v25, %v1460_v32  ;;  %1209 = vmatmul.mubr.msk.bf16.gmra.mrb[20].mxu1 %vm101_vm0, %v669_v12  ;;  %vm626_vm12 = vcmp.ge.f32.partialorder %v588_v21, 0.0 }
 0x2b0   :  { %vm629_vm13 = vcmp.ge.f32.partialorder %v599_v24, 0.0  ;;  %v645_v28 = vmul.f32 0.2, %v599_v24  ;;  %v660_v18 = vsel %vm628_vm11, %v596_v19, %v644_v23 }
 0x2b1   :  { %vm627_vm14 = vcmp.ge.f32.partialorder %v591_v27, 0.0  ;;  %v643_v29 = vmul.f32 0.2, %v591_v27  ;;  %v658_v31 = vsel %vm626_vm12, %v588_v21, %v642_v26 }
 0x2b2   :  { %v661_v30 = vsel %vm629_vm13, %v599_v24, %v645_v28 }
 0x2b3   :  { %v671_v33 = vpack.c.bf16 %v661_v30, %v660_v18  ;;  %v659_v34 = vsel %vm627_vm14, %v591_v27, %v643_v29  ;;  %v1198_v35 = vpop.f32.mrb[28].mxu0 }
 0x2b4   :  { %v670_v36 = vpack.c.bf16 %v659_v34, %v658_v31  ;;  %v612_v37 = vadd.f32 %v1198_v35, %v1460_v32  ;;  %v603_v38 = vpop.f32.mrb[29].mxu0 }
 0x2b5   :  { %v604_v39 = vadd.f32 %v603_v38, %v1460_v32  ;;  %v1199_v40 = vpop.f32.mrb[30].mxu0 }
 0x2b6   :  { %v648_v41 = vmul.f32 0.2, %v612_v37  ;;  %v615_v42 = vadd.f32 %v1199_v40, %v1460_v32  ;;  %v606_v43 = vpop.f32.mrb[31].mxu0  ;;  %1212 = vmatprep.mubr.msk.bf16.mxu1 %vm101_vm0, %v670_v36  ;;  %vm632_vm15 = vcmp.ge.f32.partialorder %v612_v37, 0.0 }
 0x2b7   :  { %v646_v44 = vmul.f32 0.2, %v604_v39  ;;  %v607_v45 = vadd.f32 %v606_v43, %v1460_v32  ;;  %1213 = vmatmul.mubr.msk.bf16.gmra.mrb[24].mxu1 %vm101_vm0, %v671_v33  ;;  %vm630_vm1 = vcmp.ge.f32.partialorder %v604_v39, 0.0  ;;  %v1489_v32 = vld [vmem:[%s1640_s5] ss:$0 sm:$0xff] }
 0x2b8   :  { %vm633_vm2 = vcmp.ge.f32.partialorder %v615_v42, 0.0  ;;  %v649_v46 = vmul.f32 0.2, %v615_v42  ;;  %v664_v48 = vsel %vm632_vm15, %v612_v37, %v648_v41 }
 0x2b9   :  { %vm631_vm3 = vcmp.ge.f32.partialorder %v607_v45, 0.0  ;;  %v647_v47 = vmul.f32 0.2, %v607_v45  ;;  %v662_v50 = vsel %vm630_vm1, %v604_v39, %v646_v44 }
 0x2ba   :  { %v665_v49 = vsel %vm633_vm2, %v615_v42, %v649_v46 }
 0x2bb   :  { %v673_v51 = vpack.c.bf16 %v665_v49, %v664_v48  ;;  %v663_v52 = vsel %vm631_vm3, %v607_v45, %v647_v47 }
 0x2bc   :  { %v672_v53 = vpack.c.bf16 %v663_v52, %v662_v50 }
 0x2be   :  { %1216 = vmatprep.mubr.msk.bf16.mxu1 %vm101_vm0, %v672_v53 }
 0x2bf   :  { %1217 = vmatmul.mubr.msk.bf16.gmra.mrb[28].mxu1 %vm101_vm0, %v673_v51  ;;  %vm1010_vm0 = vcmask 162816  }
 0x37a   :  { %v1206_v15 = vpop.f32.mrb[16].mxu1 }
 0x37b   :  { %v1492_v17 = vadd.f32 %v1206_v15, %v1489_v32  ;;  %v755_v55 = vpop.f32.mrb[17].mxu1 }
 0x37c   :  { %v1495_v56 = vadd.f32 %v1489_v32, %v755_v55  ;;  %v1207_v57 = vpop.f32.mrb[18].mxu1 }
 0x37d   :  { %v1086_v58 = vmul.f32 -1.442695, %v1492_v17  ;;  %v1499_v59 = vadd.f32 %v1207_v57, %v1489_v32  ;;  %v758_v60 = vpop.f32.mrb[19].mxu1 }
 0x37e   :  { %v1084_v61 = vmul.f32 -1.442695, %v1495_v56  ;;  %v1503_v62 = vadd.f32 %v1489_v32, %v758_v60 }
 0x37f   :  { %1239 = vpow2.f32 %v1086_v58  ;;  %v1087_v63 = vmul.f32 -1.442695, %v1499_v59 }
 0x380   :  { %1241 = vpow2.f32 %v1084_v61  ;;  %v1085_v0 = vmul.f32 -1.442695, %v1503_v62 }
 0x381   :  { %1243 = vpow2.f32 %v1087_v63 }
 0x382   :  { %1245 = vpow2.f32 %v1085_v0  ;;  %v1210_v1 = vpop.f32.mrb[20].mxu1 }
 0x383   :  { %v1508_v2 = vadd.f32 %v1210_v1, %v1489_v32  ;;  %v771_v3 = vpop.f32.mrb[21].mxu1 }
 0x384   :  { %v1511_v4 = vadd.f32 %v1489_v32, %v771_v3  ;;  %v1211_v5 = vpop.f32.mrb[22].mxu1 }
 0x385   :  { %v1090_v6 = vmul.f32 -1.442695, %v1508_v2  ;;  %v1515_v7 = vadd.f32 %v1211_v5, %v1489_v32  ;;  %v774_v8 = vpop.f32.mrb[23].mxu1 }
 0x386   :  { %v1088_v9 = vmul.f32 -1.442695, %v1511_v4  ;;  %v1519_v10 = vadd.f32 %v1489_v32, %v774_v8 }
 0x387   :  { %1247 = vpow2.f32 %v1090_v6  ;;  %v1091_v11 = vmul.f32 -1.442695, %v1515_v7 }
 0x388   :  { %1249 = vpow2.f32 %v1088_v9  ;;  %v1089_v12 = vmul.f32 -1.442695, %v1519_v10 }
 0x389   :  { %v1240_v13 = vpop.eup %1239  ;;  %1251 = vpow2.f32 %v1091_v11 }
 0x38a   :  { %v1242_v14 = vpop.eup %1241  ;;  %v868_v16 = vadd.f32 1.0, %v1240_v13  ;;  %1253 = vpow2.f32 %v1089_v12  ;;  %v1214_v19 = vpop.f32.mrb[24].mxu1 }
 0x38b   :  { %v1244_v20 = vpop.eup %1243  ;;  %v866_v21 = vadd.f32 1.0, %v1242_v14  ;;  %v1524_v22 = vadd.f32 %v1214_v19, %v1489_v32  ;;  %v787_v23 = vpop.f32.mrb[25].mxu1 }
 0x38c   :  { %v1246_v24 = vpop.eup %1245  ;;  %1255 = vrcp.f32 %v868_v16  ;;  %v869_v25 = vadd.f32 1.0, %v1244_v20  ;;  %v1527_v26 = vadd.f32 %v1489_v32, %v787_v23  ;;  %v1215_v27 = vpop.f32.mrb[26].mxu1 }
 0x38d   :  { %1257 = vrcp.f32 %v866_v21  ;;  %v867_v28 = vadd.f32 1.0, %v1246_v24  ;;  %v1094_v29 = vmul.f32 -1.442695, %v1524_v22  ;;  %v1531_v18 = vadd.f32 %v1215_v27, %v1489_v32  ;;  %v790_v30 = vpop.f32.mrb[27].mxu1 }
 0x38e   :  { %1259 = vrcp.f32 %v869_v25  ;;  %v1092_v31 = vmul.f32 -1.442695, %v1527_v26  ;;  %v1535_v33 = vadd.f32 %v1489_v32, %v790_v30 }
 0x38f   :  { %1261 = vrcp.f32 %v867_v28  ;;  %v1095_v34 = vmul.f32 -1.442695, %v1531_v18 }
 0x390   :  { %1263 = vpow2.f32 %v1094_v29  ;;  %v1093_v35 = vmul.f32 -1.442695, %v1535_v33 }
 0x391   :  { %v1248_v36 = vpop.eup %1247  ;;  %1265 = vpow2.f32 %v1092_v31 }
 0x392   :  { %v1250_v37 = vpop.eup %1249  ;;  %v872_v38 = vadd.f32 1.0, %v1248_v36  ;;  %1267 = vpow2.f32 %v1095_v34  ;;  %v1218_v39 = vpop.f32.mrb[28].mxu1 }
 0x393   :  { %v1252_v40 = vpop.eup %1251  ;;  %v870_v41 = vadd.f32 1.0, %v1250_v37  ;;  %1269 = vpow2.f32 %v1093_v35  ;;  %v1540_v42 = vadd.f32 %v1218_v39, %v1489_v32  ;;  %v803_v43 = vpop.f32.mrb[29].mxu1 }
 0x394   :  { %v1254_v44 = vpop.eup %1253  ;;  %1271 = vrcp.f32 %v872_v38  ;;  %v873_v45 = vadd.f32 1.0, %v1252_v40  ;;  %v1543_v46 = vadd.f32 %v1489_v32, %v803_v43  ;;  %v1219_v47 = vpop.f32.mrb[30].mxu1 }
 0x395   :  { %1273 = vrcp.f32 %v870_v41  ;;  %v871_v48 = vadd.f32 1.0, %v1254_v44  ;;  %v1098_v49 = vmul.f32 -1.442695, %v1540_v42  ;;  %v1547_v50 = vadd.f32 %v1219_v47, %v1489_v32  ;;  %v806_v51 = vpop.f32.mrb[31].mxu1 }
 0x396   :  { %v1256_v52 = vpop.eup %1255  ;;  %1275 = vrcp.f32 %v873_v45  ;;  %v1096_v53 = vmul.f32 -1.442695, %v1543_v46  ;;  %v1551_v54 = vadd.f32 %v1489_v32, %v806_v51 }
 0x397   :  { %v1258_v15 = vpop.eup %1257  ;;  %1277 = vrcp.f32 %v871_v48  ;;  %v1099_v55 = vmul.f32 -1.442695, %v1547_v50  ;;  %926 = vperm.xlu1 %1221, %v1256_v52  }
 0x398   :  { %v1260_v57 = vpop.eup %1259  ;;  %1279 = vpow2.f32 %v1098_v49  ;;  %v1097_v58 = vmul.f32 -1.442695, %v1551_v54  ;;  %916 = vperm.xlu0 %1222, %v1258_v15  }
 0x399   :  { %v1262_v60 = vpop.eup %1261  ;;  %1281 = vpow2.f32 %v1096_v53 }
 0x39a   :  { %v1264_v61 = vpop.eup %1263  ;;  %1283 = vpow2.f32 %v1099_v55 }
 0x39b   :  { %v1266_v63 = vpop.eup %1265  ;;  %v876_v0 = vadd.f32 1.0, %v1264_v61  ;;  %1285 = vpow2.f32 %v1097_v58  ;;  %931 = vperm.xlu1 %1221, %v1260_v57  }
 0x39c   :  { %v1268_v32 = vpop.eup %1267  ;;  %921 = vperm.xlu0 %1222, %v1262_v60   ;;  %v874_v3 = vadd.f32 1.0, %v1266_v63 }
 0x39d   :  { %v1270_v1 = vpop.eup %1269  ;;  %1287 = vrcp.f32 %v876_v0  ;;  %v877_v5 = vadd.f32 1.0, %v1268_v32 }
 0x39e   :  { %v1272_v6 = vpop.eup %1271  ;;  %v875_v9 = vadd.f32 1.0, %v1270_v1 }
 0x39f   :  { %v1274_v8 = vpop.eup %1273  ;;  %1289 = vrcp.f32 %v877_v5 }
 0x3a0   :  { %v1276_v11 = vpop.eup %1275  ;;  %946 = vperm.xlu0 %1222, %v1272_v6   ;;  %1291 = vrcp.f32 %v874_v3 }
 0x3a1   :  { %v1278_v12 = vpop.eup %1277  ;;  %951 = vperm.xlu1 %1221, %v1276_v11   ;;  %1293 = vrcp.f32 %v875_v9 }
 0x3a2   :  { %v1280_v13 = vpop.eup %1279 }
 0x3a3   :  { %v1282_v14 = vpop.eup %1281  ;;  %v880_v21 = vadd.f32 1.0, %v1280_v13 }
 0x3a4   :  { %v1284_v16 = vpop.eup %1283  ;;  %v878_v19 = vadd.f32 1.0, %v1282_v14  ;;  %936 = vperm.xlu0 %1222, %v1274_v8  }
 0x3a5   :  { %v1286_v20 = vpop.eup %1285  ;;  %941 = vperm.xlu1 %1221, %v1278_v12   ;;  %v881_v25 = vadd.f32 1.0, %v1284_v16 }
 0x3a6   :  { %1295 = vrcp.f32 %v878_v19  ;;  %v879_v23 = vadd.f32 1.0, %v1286_v20 }
 0x3a7   :  { %v1288_v24 = vpop.eup %1287 }
 0x3a8   :  { %1297 = vrcp.f32 %v879_v23  ;;  %966 = vperm.xlu0 %1222, %v1288_v24  }
 0x3a9   :  { %v1290_v27 = vpop.eup %1289  ;;  %1299 = vrcp.f32 %v880_v21 }
 0x3aa   :  { %971 = vperm.xlu1 %1221, %v1290_v27   ;;  %v1292_v28 = vpop.eup %1291  ;;  %1301 = vrcp.f32 %v881_v25 }
 0x3ab   :  { %v1294_v29 = vpop.eup %1293 }
 0x3ac   :  { %956 = vperm.xlu0 %1222, %v1292_v28  }
 0x3ae   :  { %961 = vperm.xlu1 %1221, %v1294_v29  }
 0x3b0   :  { %v1296_v30 = vpop.eup %1295 }
 0x3b1   :  { %976 = vperm.xlu0 %1222, %v1296_v30  }
 0x3b2   :  { %v1298_v31 = vpop.eup %1297 }
 0x3b3   :  { %981 = vperm.xlu1 %1221, %v1298_v31   ;;  %v1300_v34 = vpop.eup %1299 }
 0x3b4   :  { %v1302_v35 = vpop.eup %1301 }
 0x3b5   :  { %986 = vperm.xlu0 %1222, %v1300_v34  }
 0x3b7   :  { %991 = vperm.xlu1 %1221, %v1302_v35  }
 0x416   :  { %v927_v36 = vpop.permute.xlu1 %926 }
 0x417   :  { %v996_v37 = vmul.f32 %v927_v36, %v1492_v17  ;;  %v917_v38 = vpop.permute.xlu0 %916 }
 0x418   :  { %v994_v39 = vmul.f32 %v917_v38, %v1495_v56 }
 0x419   :  { %1013 = vst.msk [vmem:[%s1641_s6 + $0x10] sm:$0xff] %vm1010_vm0, %v996_v37 }
 0x41a   :  { %1011 = vst.msk [vmem:[%s1641_s6] sm:$0xff] %vm1010_vm0, %v994_v39  ;;  %v932_v40 = vpop.permute.xlu1 %931 }
 0x41b   :  { %v997_v41 = vmul.f32 %v932_v40, %v1499_v59  ;;  %v922_v43 = vpop.permute.xlu0 %921 }
 0x41c   :  { %v995_v44 = vmul.f32 %v922_v43, %v1503_v62 }
 0x41d   :  { %1014 = vst.msk [vmem:[%s1641_s6 + $0x18] sm:$0xff] %vm1010_vm0, %v997_v41 }
 0x41e   :  { %1012 = vst.msk [vmem:[%s1641_s6 + $0x8] sm:$0xff] %vm1010_vm0, %v995_v44 }
 0x41f   :  { %v947_v17 = vpop.permute.xlu0 %946 }
 0x420   :  { %v1000_v56 = vmul.f32 %v947_v17, %v1508_v2  ;;  %v952_v45 = vpop.permute.xlu1 %951 }
 0x421   :  { %v1001_v47 = vmul.f32 %v952_v45, %v1515_v7 }
 0x422   :  { %1017 = vst.msk [vmem:[%s1641_s6 + $0x30] sm:$0xff] %vm1010_vm0, %v1000_v56 }
 0x423   :  { %1018 = vst.msk [vmem:[%s1641_s6 + $0x38] sm:$0xff] %vm1010_vm0, %v1001_v47  ;;  %v937_v59 = vpop.permute.xlu0 %936 }
 0x424   :  { %v998_v62 = vmul.f32 %v937_v59, %v1511_v4  ;;  %v942_v48 = vpop.permute.xlu1 %941 }
 0x425   :  { %v999_v49 = vmul.f32 %v942_v48, %v1519_v10 }
 0x426   :  { %1015 = vst.msk [vmem:[%s1641_s6 + $0x20] sm:$0xff] %vm1010_vm0, %v998_v62 }
 0x427   :  { %1016 = vst.msk [vmem:[%s1641_s6 + $0x28] sm:$0xff] %vm1010_vm0, %v999_v49  ;;  %v967_v2 = vpop.permute.xlu0 %966 }
 0x428   :  { %v1004_v7 = vmul.f32 %v967_v2, %v1524_v22 }
 0x429   :  { %v972_v51 = vpop.permute.xlu1 %971 }
 0x42a   :  { %1021 = vst.msk [vmem:[%s1641_s6 + $0x50] sm:$0xff] %vm1010_vm0, %v1004_v7  ;;  %v1005_v4 = vmul.f32 %v972_v51, %v1531_v18 }
 0x42b   :  { %v957_v10 = vpop.permute.xlu0 %956 }
 0x42c   :  { %1022 = vst.msk [vmem:[%s1641_s6 + $0x58] sm:$0xff] %vm1010_vm0, %v1005_v4  ;;  %v1002_v52 = vmul.f32 %v957_v10, %v1527_v26 }
 0x42d   :  { %v962_v53 = vpop.permute.xlu1 %961 }
 0x42e   :  { %1019 = vst.msk [vmem:[%s1641_s6 + $0x40] sm:$0xff] %vm1010_vm0, %v1002_v52  ;;  %v1003_v22 = vmul.f32 %v962_v53, %v1535_v33 }
 0x430   :  { %1020 = vst.msk [vmem:[%s1641_s6 + $0x48] sm:$0xff] %vm1010_vm0, %v1003_v22  ;;  %v977_v18 = vpop.permute.xlu0 %976 }
 0x431   :  { %v1006_v15 = vmul.f32 %v977_v18, %v1543_v46 }
 0x432   :  { %v982_v55 = vpop.permute.xlu1 %981 }
 0x433   :  { %1023 = vst.msk [vmem:[%s1641_s6 + $0x60] sm:$0xff] %vm1010_vm0, %v1006_v15  ;;  %v1007_v26 = vmul.f32 %v982_v55, %v1551_v54 }
 0x434   :  { %v987_v57 = vpop.permute.xlu0 %986 }
 0x435   :  { %1024 = vst.msk [vmem:[%s1641_s6 + $0x68] sm:$0xff] %vm1010_vm0, %v1007_v26  ;;  %v1008_v33 = vmul.f32 %v987_v57, %v1540_v42 }
 0x436   :  { %v992_v58 = vpop.permute.xlu1 %991 }
 0x437   :  { %1025 = vst.msk [vmem:[%s1641_s6 + $0x70] sm:$0xff] %vm1010_vm0, %v1008_v33  ;;  %v1009_v46 = vmul.f32 %v992_v58, %v1547_v50 }
 0x439   :  { %1026 = vst.msk [vmem:[%s1641_s6 + $0x78] sm:$0xff] %vm1010_vm0, %v1009_v46 }

// kernel: deepgcnii_forward.10
= control target key start
LH: loop header
LB: loop body
LE: loop exit
PB: predicated region body
PF: predicated region fallthrough
CT: control target
= control target key end

     0   :  { %vm117_vm0 = vcmask 523264   ;;  %v49_v15 = vlaneseq  ;;  %vm315_vm5 = vcmask 261120   ;;  %s1668_s1 = inlined_call_operand.vmem [shape: bf16[64,32], index: 1, kind: input, shape index: {}]   ;;  %s1669_s0 = inlined_call_operand.vmem [shape: bf16[128,64], index: 0, kind: input, shape index: {}]   ;;  %s1670_s3 = inlined_call_operand.vmem [shape: bf16[2,32,32], index: 3, kind: input, shape index: {}]   ;;  %s1671_s2 = inlined_call_operand.vmem [shape: f32[3,32], index: 2, kind: input, shape index: {}]   ;;  %s1672_s4 = inlined_call_operand.vmem [shape: bf16[32,21], index: 4, kind: input, shape index: {}]   ;;  %s1673_s5 = inlined_call_operand.vmem [shape: f32[1,21], index: 5, kind: input, shape index: {}]   ;;  %s1674_s6 = inlined_call_operand.vmem [shape: f32[128,20], index: 6, kind: output, shape index: {}]  }
   0x1   :  { %v1248_v0 = vld [vmem:[%s1668_s1] sm:$0xff]   ;;  %v1249_v1 = vld [vmem:[%s1668_s1 + $0x8] sm:$0xff]   ;;  %v1250_v2 = vld [vmem:[%s1668_s1 + $0x10] sm:$0xff]  }
   0x2   :  { %1161 = vmatprep.subr.bf16.mxu0 %v1248_v0  ;;  %v1252_v3 = vld [vmem:[%s1669_s0] sm:$0xff]   ;;  %v1251_v4 = vld [vmem:[%s1668_s1 + $0x18] sm:$0xff]   ;;  %v1253_v5 = vld [vmem:[%s1669_s0 + $0x8] sm:$0xff]   ;;  %v1419_v16 = vshrl.u32 %v49_v15, 7 }
   0x3   :  { %1162 = vmatpush3.bf16.msra.mxu0 %v1248_v0  ;;  %1169 = vmatprep.mubr.msk.bf16.mxu0 %vm117_vm0, %v1252_v3  ;;  %v1254_v6 = vld [vmem:[%s1669_s0 + $0x10] sm:$0xff]   ;;  %v1255_v7 = vld [vmem:[%s1669_s0 + $0x18] sm:$0xff]   ;;  %v1256_v8 = vld [vmem:[%s1669_s0 + $0x20] sm:$0xff]  }
   0x4   :  { %1163 = vmatprep.subr.bf16.mxu0 %v1249_v1  ;;  %v1257_v9 = vld [vmem:[%s1669_s0 + $0x28] sm:$0xff]   ;;  %v1258_v10 = vld [vmem:[%s1669_s0 + $0x30] sm:$0xff]   ;;  %v1259_v11 = vld [vmem:[%s1669_s0 + $0x38] sm:$0xff]   ;;  %v51_v17 = vsub.s32 0, %v1419_v16 }
   0x5   :  { %v1260_v12 = vld [vmem:[%s1670_s3] sm:$0xff]   ;;  %v1261_v13 = vld [vmem:[%s1670_s3 + $0x8] sm:$0xff]   ;;  %v1262_v14 = vld [vmem:[%s1670_s3 + $0x10] sm:$0xff]  }
   0x6   :  { %1185 = vmatprep.subr.bf16.mxu1 %v1260_v12  ;;  %v1425_v18 = vld [vmem:[%s1671_s2] sm:$0x7]  ;;  %v1263_v43 = vld [vmem:[%s1670_s3 + $0x18] sm:$0xff]  }
   0x7   :  { %1164 = vmatpush3.bf16.msra.mxu0 %v1249_v1  ;;  %1186 = vmatpush3.bf16.msra.mxu1 %v1260_v12  ;;  %v1428_v19 = vrot.slane %v1425_v18, %v51_v17 }
   0x8   :  { %1165 = vmatprep.subr.bf16.mxu0 %v1250_v2  ;;  %1187 = vmatprep.subr.bf16.mxu1 %v1261_v13 }
   0xb   :  { %1166 = vmatpush3.bf16.msra.mxu0 %v1250_v2  ;;  %1188 = vmatpush3.bf16.msra.mxu1 %v1261_v13 }
   0xc   :  { %1167 = vmatprep.subr.bf16.mxu0 %v1251_v4  ;;  %1205 = vmatprep.subr.bf16.mxu1 %v1262_v14 }
   0xf   :  { %1168 = vmatpush3.bf16.msra.mxu0 %v1251_v4 }
  0x12   :  { %1170 = vmatmul.mubr.msk.bf16.vlgmr.msra.gmra.mrb[0].mxu0 %vm117_vm0, %v1253_v5 }
  0x13   :  { %1173 = vmatprep.mubr.msk.bf16.mxu0 %vm117_vm0, %v1254_v6 }
  0x1a   :  { %1174 = vmatmul.mubr.msk.bf16.gmra.mrb[4].mxu0 %vm117_vm0, %v1255_v7 }
  0x1b   :  { %1177 = vmatprep.mubr.msk.bf16.mxu0 %vm117_vm0, %v1256_v8 }
  0x22   :  { %1178 = vmatmul.mubr.msk.bf16.gmra.mrb[8].mxu0 %vm117_vm0, %v1257_v9 }
  0x23   :  { %1181 = vmatprep.mubr.msk.bf16.mxu0 %vm117_vm0, %v1258_v10 }
  0x2a   :  { %1182 = vmatmul.mubr.msk.bf16.gmra.mrb[12].mxu0 %vm117_vm0, %v1259_v11 }
  0xe5   :  { %v1171_v20 = vpop.f32.mrb[0].mxu0 }
  0xe6   :  { %v185_v21 = vadd.f32 %v1171_v20, %v1428_v19  ;;  %v176_v22 = vpop.f32.mrb[1].mxu0 }
  0xe7   :  { %v177_v23 = vadd.f32 %v176_v22, %v1428_v19  ;;  %v1172_v24 = vpop.f32.mrb[2].mxu0 }
  0xe8   :  { %v257_v25 = vmul.f32 0.2, %v185_v21  ;;  %v188_v26 = vadd.f32 %v1172_v24, %v1428_v19  ;;  %v179_v27 = vpop.f32.mrb[3].mxu0  ;;  %vm241_vm1 = vcmp.ge.f32.partialorder %v185_v21, 0.0 }
  0xe9   :  { %v255_v28 = vmul.f32 0.2, %v177_v23  ;;  %v180_v29 = vadd.f32 %v179_v27, %v1428_v19  ;;  %vm239_vm3 = vcmp.ge.f32.partialorder %v177_v23, 0.0 }
  0xea   :  { %vm242_vm2 = vcmp.ge.f32.partialorder %v188_v26, 0.0  ;;  %v258_v30 = vmul.f32 0.2, %v188_v26  ;;  %v273_v32 = vsel %vm241_vm1, %v185_v21, %v257_v25 }
  0xeb   :  { %v256_v31 = vmul.f32 0.2, %v180_v29  ;;  %vm240_vm4 = vcmp.ge.f32.partialorder %v180_v29, 0.0  ;;  %v271_v36 = vsel %vm239_vm3, %v177_v23, %v255_v28 }
  0xec   :  { %v274_v33 = vsel %vm242_vm2, %v188_v26, %v258_v30 }
  0xed   :  { %v288_v34 = vpack.c.bf16 %v274_v33, %v273_v32  ;;  %v1175_v35 = vpop.f32.mrb[4].mxu0  ;;  %v272_v37 = vsel %vm240_vm4, %v180_v29, %v256_v31  ;;  %v1265_v32 = vld [vmem:[%s1672_s4 + $0x8] sm:$0xff]   ;;  %v301_v33 = vsub.s32 1, %v1419_v16 }
  0xee   :  { %v201_v38 = vadd.f32 %v1175_v35, %v1428_v19  ;;  %v192_v39 = vpop.f32.mrb[5].mxu0  ;;  %v287_v40 = vpack.c.bf16 %v272_v37, %v271_v36 }
  0xef   :  { %v193_v41 = vadd.f32 %v192_v39, %v1428_v19  ;;  %v1176_v42 = vpop.f32.mrb[6].mxu0 }
  0xf0   :  { %v261_v44 = vmul.f32 0.2, %v201_v38  ;;  %v204_v45 = vadd.f32 %v1176_v42, %v1428_v19  ;;  %v195_v46 = vpop.f32.mrb[7].mxu0  ;;  %1189 = vmatprep.mubr.msk.bf16.mxu1 %vm315_vm5, %v287_v40  ;;  %vm245_vm6 = vcmp.ge.f32.partialorder %v201_v38, 0.0 }
  0xf1   :  { %v259_v47 = vmul.f32 0.2, %v193_v41  ;;  %v196_v48 = vadd.f32 %v195_v46, %v1428_v19  ;;  %1190 = vmatmul.mubr.msk.bf16.vlgmr.msra.gmra.mrb[0].mxu1 %vm315_vm5, %v288_v34  ;;  %vm243_vm7 = vcmp.ge.f32.partialorder %v193_v41, 0.0  ;;  %v1465_v34 = vrot.slane %v1425_v18, %v301_v33 }
  0xf2   :  { %vm246_vm8 = vcmp.ge.f32.partialorder %v204_v45, 0.0  ;;  %v262_v49 = vmul.f32 0.2, %v204_v45  ;;  %1206 = vmatpush3.bf16.msra.mxu1 %v1262_v14  ;;  %v277_v51 = vsel %vm245_vm6, %v201_v38, %v261_v44 }
  0xf3   :  { %vm244_vm9 = vcmp.ge.f32.partialorder %v196_v48, 0.0  ;;  %v260_v50 = vmul.f32 0.2, %v196_v48  ;;  %1207 = vmatprep.subr.bf16.mxu1 %v1263_v43  ;;  %v275_v53 = vsel %vm243_vm7, %v193_v41, %v259_v47 }
  0xf4   :  { %v278_v52 = vsel %vm246_vm8, %v204_v45, %v262_v49 }
  0xf5   :  { %v290_v54 = vpack.c.bf16 %v278_v52, %v277_v51  ;;  %v276_v55 = vsel %vm244_vm9, %v196_v48, %v260_v50  ;;  %v1179_v56 = vpop.f32.mrb[8].mxu0 }
  0xf6   :  { %v289_v57 = vpack.c.bf16 %v276_v55, %v275_v53  ;;  %v217_v58 = vadd.f32 %v1179_v56, %v1428_v19  ;;  %v208_v59 = vpop.f32.mrb[9].mxu0  ;;  %1208 = vmatpush3.bf16.msra.mxu1 %v1263_v43 }
  0xf7   :  { %v209_v60 = vadd.f32 %v208_v59, %v1428_v19  ;;  %v1180_v61 = vpop.f32.mrb[10].mxu0 }
  0xf8   :  { %v265_v62 = vmul.f32 0.2, %v217_v58  ;;  %v220_v63 = vadd.f32 %v1180_v61, %v1428_v19  ;;  %v211_v0 = vpop.f32.mrb[11].mxu0  ;;  %1193 = vmatprep.mubr.msk.bf16.mxu1 %vm315_vm5, %v289_v57  ;;  %vm249_vm10 = vcmp.ge.f32.partialorder %v217_v58, 0.0 }
  0xf9   :  { %v263_v1 = vmul.f32 0.2, %v209_v60  ;;  %v212_v2 = vadd.f32 %v211_v0, %v1428_v19  ;;  %1194 = vmatmul.mubr.msk.bf16.gmra.mrb[4].mxu1 %vm315_vm5, %v290_v54  ;;  %vm247_vm11 = vcmp.ge.f32.partialorder %v209_v60, 0.0 }
  0xfa   :  { %vm250_vm12 = vcmp.ge.f32.partialorder %v220_v63, 0.0  ;;  %v266_v3 = vmul.f32 0.2, %v220_v63  ;;  %v281_v5 = vsel %vm249_vm10, %v217_v58, %v265_v62 }
  0xfb   :  { %vm248_vm13 = vcmp.ge.f32.partialorder %v212_v2, 0.0  ;;  %v264_v4 = vmul.f32 0.2, %v212_v2  ;;  %v279_v7 = vsel %vm247_vm11, %v209_v60, %v263_v1 }
  0xfc   :  { %v282_v6 = vsel %vm250_vm12, %v220_v63, %v266_v3 }
  0xfd   :  { %v292_v8 = vpack.c.bf16 %v282_v6, %v281_v5  ;;  %v280_v9 = vsel %vm248_vm13, %v212_v2, %v264_v4  ;;  %v1183_v10 = vpop.f32.mrb[12].mxu0 }
  0xfe   :  { %v291_v11 = vpack.c.bf16 %v280_v9, %v279_v7  ;;  %v233_v12 = vadd.f32 %v1183_v10, %v1428_v19  ;;  %v224_v13 = vpop.f32.mrb[13].mxu0 }
  0xff   :  { %v225_v14 = vadd.f32 %v224_v13, %v1428_v19  ;;  %v1184_v15 = vpop.f32.mrb[14].mxu0 }
 0x100   :  { %v269_v17 = vmul.f32 0.2, %v233_v12  ;;  %v236_v20 = vadd.f32 %v1184_v15, %v1428_v19  ;;  %v227_v21 = vpop.f32.mrb[15].mxu0  ;;  %1197 = vmatprep.mubr.msk.bf16.mxu1 %vm315_vm5, %v291_v11  ;;  %vm253_vm14 = vcmp.ge.f32.partialorder %v233_v12, 0.0 }
 0x101   :  { %v267_v22 = vmul.f32 0.2, %v225_v14  ;;  %v228_v23 = vadd.f32 %v227_v21, %v1428_v19  ;;  %1198 = vmatmul.mubr.msk.bf16.gmra.mrb[8].mxu1 %vm315_vm5, %v292_v8  ;;  %vm251_vm15 = vcmp.ge.f32.partialorder %v225_v14, 0.0  ;;  %v1264_v19 = vld [vmem:[%s1672_s4] sm:$0xff]  }
 0x102   :  { %vm254_vm0 = vcmp.ge.f32.partialorder %v236_v20, 0.0  ;;  %v270_v24 = vmul.f32 0.2, %v236_v20  ;;  %v285_v26 = vsel %vm253_vm14, %v233_v12, %v269_v17  ;;  %1225 = vmatprep.subr.bf16.mxu0 %v1264_v19 }
 0x103   :  { %vm252_vm1 = vcmp.ge.f32.partialorder %v228_v23, 0.0  ;;  %v268_v25 = vmul.f32 0.2, %v228_v23  ;;  %v283_v28 = vsel %vm251_vm15, %v225_v14, %v267_v22  ;;  %1226 = vmatpush3.bf16.msra.mxu0 %v1264_v19 }
 0x104   :  { %v286_v27 = vsel %vm254_vm0, %v236_v20, %v270_v24  ;;  %1227 = vmatprep.subr.bf16.mxu0 %v1265_v32 }
 0x105   :  { %v294_v29 = vpack.c.bf16 %v286_v27, %v285_v26  ;;  %v284_v30 = vsel %vm252_vm1, %v228_v23, %v268_v25 }
 0x106   :  { %v293_v31 = vpack.c.bf16 %v284_v30, %v283_v28 }
 0x107   :  { %1228 = vmatpush3.bf16.msra.mxu0 %v1265_v32 }
 0x108   :  { %1201 = vmatprep.mubr.msk.bf16.mxu1 %vm315_vm5, %v293_v31 }
 0x109   :  { %1202 = vmatmul.mubr.msk.bf16.gmra.mrb[12].mxu1 %vm315_vm5, %v294_v29 }
 0x1c4   :  { %v1191_v35 = vpop.f32.mrb[0].mxu1 }
 0x1c5   :  { %v383_v36 = vadd.f32 %v1191_v35, %v1465_v34  ;;  %v374_v37 = vpop.f32.mrb[1].mxu1 }
 0x1c6   :  { %v375_v38 = vadd.f32 %v374_v37, %v1465_v34  ;;  %v1192_v39 = vpop.f32.mrb[2].mxu1 }
 0x1c7   :  { %v455_v40 = vmul.f32 0.2, %v383_v36  ;;  %v386_v41 = vadd.f32 %v1192_v39, %v1465_v34  ;;  %v377_v42 = vpop.f32.mrb[3].mxu1  ;;  %vm439_vm2 = vcmp.ge.f32.partialorder %v383_v36, 0.0 }
 0x1c8   :  { %v453_v43 = vmul.f32 0.2, %v375_v38  ;;  %v378_v44 = vadd.f32 %v377_v42, %v1465_v34  ;;  %vm437_vm3 = vcmp.ge.f32.partialorder %v375_v38, 0.0 }
 0x1c9   :  { %vm440_vm4 = vcmp.ge.f32.partialorder %v386_v41, 0.0  ;;  %v456_v45 = vmul.f32 0.2, %v386_v41  ;;  %v471_v47 = vsel %vm439_vm2, %v383_v36, %v455_v40 }
 0x1ca   :  { %vm438_vm6 = vcmp.ge.f32.partialorder %v378_v44, 0.0  ;;  %v454_v46 = vmul.f32 0.2, %v378_v44  ;;  %v469_v49 = vsel %vm437_vm3, %v375_v38, %v453_v43 }
 0x1cb   :  { %v472_v48 = vsel %vm440_vm4, %v386_v41, %v456_v45 }
 0x1cc   :  { %v486_v50 = vpack.c.bf16 %v472_v48, %v471_v47  ;;  %v470_v51 = vsel %vm438_vm6, %v378_v44, %v454_v46  ;;  %v1195_v52 = vpop.f32.mrb[4].mxu1  ;;  %v500_v46 = vsub.s32 2, %v1419_v16 }
 0x1cd   :  { %v485_v53 = vpack.c.bf16 %v470_v51, %v469_v49  ;;  %v399_v54 = vadd.f32 %v1195_v52, %v1465_v34  ;;  %v390_v55 = vpop.f32.mrb[5].mxu1 }
 0x1ce   :  { %v391_v56 = vadd.f32 %v390_v55, %v1465_v34  ;;  %v1196_v57 = vpop.f32.mrb[6].mxu1 }
 0x1cf   :  { %v459_v58 = vmul.f32 0.2, %v399_v54  ;;  %v402_v59 = vadd.f32 %v1196_v57, %v1465_v34  ;;  %v393_v60 = vpop.f32.mrb[7].mxu1  ;;  %1209 = vmatprep.mubr.msk.bf16.mxu1 %vm315_vm5, %v485_v53  ;;  %vm443_vm7 = vcmp.ge.f32.partialorder %v399_v54, 0.0 }
 0x1d0   :  { %v457_v61 = vmul.f32 0.2, %v391_v56  ;;  %v394_v62 = vadd.f32 %v393_v60, %v1465_v34  ;;  %1210 = vmatmul.mubr.msk.bf16.vlgmr.msra.gmra.mrb[16].mxu1 %vm315_vm5, %v486_v50  ;;  %vm441_vm8 = vcmp.ge.f32.partialorder %v391_v56, 0.0 }
 0x1d1   :  { %vm444_vm9 = vcmp.ge.f32.partialorder %v402_v59, 0.0  ;;  %v460_v63 = vmul.f32 0.2, %v402_v59  ;;  %v475_v1 = vsel %vm443_vm7, %v399_v54, %v459_v58 }
 0x1d2   :  { %vm442_vm10 = vcmp.ge.f32.partialorder %v394_v62, 0.0  ;;  %v458_v0 = vmul.f32 0.2, %v394_v62  ;;  %v473_v3 = vsel %vm441_vm8, %v391_v56, %v457_v61 }
 0x1d3   :  { %v476_v2 = vsel %vm444_vm9, %v402_v59, %v460_v63 }
 0x1d4   :  { %v488_v4 = vpack.c.bf16 %v476_v2, %v475_v1  ;;  %v474_v5 = vsel %vm442_vm10, %v394_v62, %v458_v0  ;;  %v1199_v6 = vpop.f32.mrb[8].mxu1 }
 0x1d5   :  { %v487_v7 = vpack.c.bf16 %v474_v5, %v473_v3  ;;  %v415_v8 = vadd.f32 %v1199_v6, %v1465_v34  ;;  %v406_v9 = vpop.f32.mrb[9].mxu1 }
 0x1d6   :  { %v407_v10 = vadd.f32 %v406_v9, %v1465_v34  ;;  %v1200_v11 = vpop.f32.mrb[10].mxu1 }
 0x1d7   :  { %v463_v12 = vmul.f32 0.2, %v415_v8  ;;  %v418_v13 = vadd.f32 %v1200_v11, %v1465_v34  ;;  %v409_v14 = vpop.f32.mrb[11].mxu1  ;;  %1213 = vmatprep.mubr.msk.bf16.mxu1 %vm315_vm5, %v487_v7  ;;  %vm447_vm11 = vcmp.ge.f32.partialorder %v415_v8, 0.0 }
 0x1d8   :  { %v461_v15 = vmul.f32 0.2, %v407_v10  ;;  %v410_v17 = vadd.f32 %v409_v14, %v1465_v34  ;;  %1214 = vmatmul.mubr.msk.bf16.gmra.mrb[20].mxu1 %vm315_vm5, %v488_v4  ;;  %vm445_vm12 = vcmp.ge.f32.partialorder %v407_v10, 0.0 }
 0x1d9   :  { %vm448_vm13 = vcmp.ge.f32.partialorder %v418_v13, 0.0  ;;  %v464_v20 = vmul.f32 0.2, %v418_v13  ;;  %v479_v22 = vsel %vm447_vm11, %v415_v8, %v463_v12 }
 0x1da   :  { %vm446_vm14 = vcmp.ge.f32.partialorder %v410_v17, 0.0  ;;  %v462_v21 = vmul.f32 0.2, %v410_v17  ;;  %v477_v24 = vsel %vm445_vm12, %v407_v10, %v461_v15 }
 0x1db   :  { %v480_v23 = vsel %vm448_vm13, %v418_v13, %v464_v20 }
 0x1dc   :  { %v490_v25 = vpack.c.bf16 %v480_v23, %v479_v22  ;;  %v478_v26 = vsel %vm446_vm14, %v410_v17, %v462_v21  ;;  %v1203_v27 = vpop.f32.mrb[12].mxu1 }
 0x1dd   :  { %v489_v28 = vpack.c.bf16 %v478_v26, %v477_v24  ;;  %v431_v29 = vadd.f32 %v1203_v27, %v1465_v34  ;;  %v422_v30 = vpop.f32.mrb[13].mxu1 }
 0x1de   :  { %v423_v31 = vadd.f32 %v422_v30, %v1465_v34  ;;  %v1204_v19 = vpop.f32.mrb[14].mxu1 }
 0x1df   :  { %v467_v32 = vmul.f32 0.2, %v431_v29  ;;  %v434_v33 = vadd.f32 %v1204_v19, %v1465_v34  ;;  %v425_v35 = vpop.f32.mrb[15].mxu1  ;;  %1217 = vmatprep.mubr.msk.bf16.mxu1 %vm315_vm5, %v489_v28  ;;  %vm451_vm15 = vcmp.ge.f32.partialorder %v431_v29, 0.0 }
 0x1e0   :  { %v465_v36 = vmul.f32 0.2, %v423_v31  ;;  %v426_v37 = vadd.f32 %v425_v35, %v1465_v34  ;;  %1218 = vmatmul.mubr.msk.bf16.gmra.mrb[24].mxu1 %vm315_vm5, %v490_v25  ;;  %vm449_vm0 = vcmp.ge.f32.partialorder %v423_v31, 0.0  ;;  %v1493_v34 = vrot.slane %v1425_v18, %v500_v46 }
 0x1e1   :  { %vm452_vm1 = vcmp.ge.f32.partialorder %v434_v33, 0.0  ;;  %v468_v38 = vmul.f32 0.2, %v434_v33  ;;  %v483_v40 = vsel %vm451_vm15, %v431_v29, %v467_v32 }
 0x1e2   :  { %vm450_vm2 = vcmp.ge.f32.partialorder %v426_v37, 0.0  ;;  %v466_v39 = vmul.f32 0.2, %v426_v37  ;;  %v481_v42 = vsel %vm449_vm0, %v423_v31, %v465_v36 }
 0x1e3   :  { %v484_v41 = vsel %vm452_vm1, %v434_v33, %v468_v38 }
 0x1e4   :  { %v492_v43 = vpack.c.bf16 %v484_v41, %v483_v40  ;;  %v482_v44 = vsel %vm450_vm2, %v426_v37, %v466_v39 }
 0x1e5   :  { %v491_v45 = vpack.c.bf16 %v482_v44, %v481_v42 }
 0x1e7   :  { %1221 = vmatprep.mubr.msk.bf16.mxu1 %vm315_vm5, %v491_v45 }
 0x1e8   :  { %1222 = vmatmul.mubr.msk.bf16.gmra.mrb[28].mxu1 %vm315_vm5, %v492_v43 }
 0x2a3   :  { %v1211_v47 = vpop.f32.mrb[16].mxu1 }
 0x2a4   :  { %v581_v48 = vadd.f32 %v1211_v47, %v1493_v34  ;;  %v572_v49 = vpop.f32.mrb[17].mxu1 }
 0x2a5   :  { %v573_v50 = vadd.f32 %v572_v49, %v1493_v34  ;;  %v1212_v51 = vpop.f32.mrb[18].mxu1 }
 0x2a6   :  { %v653_v52 = vmul.f32 0.2, %v581_v48  ;;  %v584_v53 = vadd.f32 %v1212_v51, %v1493_v34  ;;  %v575_v54 = vpop.f32.mrb[19].mxu1  ;;  %vm637_vm3 = vcmp.ge.f32.partialorder %v581_v48, 0.0 }
 0x2a7   :  { %v651_v55 = vmul.f32 0.2, %v573_v50  ;;  %v576_v56 = vadd.f32 %v575_v54, %v1493_v34  ;;  %vm635_vm4 = vcmp.ge.f32.partialorder %v573_v50, 0.0 }
 0x2a8   :  { %vm638_vm6 = vcmp.ge.f32.partialorder %v584_v53, 0.0  ;;  %v654_v16 = vmul.f32 0.2, %v584_v53  ;;  %v669_v57 = vsel %vm637_vm3, %v581_v48, %v653_v52 }
 0x2a9   :  { %vm636_vm7 = vcmp.ge.f32.partialorder %v576_v56, 0.0  ;;  %v652_v18 = vmul.f32 0.2, %v576_v56  ;;  %v667_v59 = vsel %vm635_vm4, %v573_v50, %v651_v55 }
 0x2aa   :  { %v670_v58 = vsel %vm638_vm6, %v584_v53, %v654_v16 }
 0x2ab   :  { %v684_v60 = vpack.c.bf16 %v670_v58, %v669_v57  ;;  %v668_v61 = vsel %vm636_vm7, %v576_v56, %v652_v18  ;;  %v1215_v62 = vpop.f32.mrb[20].mxu1  ;;  %v1330_v56 = vmov 20  }
 0x2ac   :  { %v683_v63 = vpack.c.bf16 %v668_v61, %v667_v59  ;;  %v597_v0 = vadd.f32 %v1215_v62, %v1493_v34  ;;  %v588_v1 = vpop.f32.mrb[21].mxu1  ;;  %1246 = vset.pattern.permute.xlu1 %v1330_v56  ;;  %1247 = vset.pattern.permute.xlu0 %v1330_v56 }
 0x2ad   :  { %v589_v2 = vadd.f32 %v588_v1, %v1493_v34  ;;  %v1216_v3 = vpop.f32.mrb[22].mxu1 }
 0x2ae   :  { %v657_v4 = vmul.f32 0.2, %v597_v0  ;;  %v600_v5 = vadd.f32 %v1216_v3, %v1493_v34  ;;  %v591_v6 = vpop.f32.mrb[23].mxu1  ;;  %1229 = vmatprep.mubr.msk.bf16.mxu0 %vm315_vm5, %v683_v63  ;;  %vm641_vm8 = vcmp.ge.f32.partialorder %v597_v0, 0.0 }
 0x2af   :  { %v655_v7 = vmul.f32 0.2, %v589_v2  ;;  %v592_v8 = vadd.f32 %v591_v6, %v1493_v34  ;;  %1230 = vmatmul.mubr.msk.bf16.vlgmr.msra.gmra.mrb[16].mxu0 %vm315_vm5, %v684_v60  ;;  %vm639_vm9 = vcmp.ge.f32.partialorder %v589_v2, 0.0 }
 0x2b0   :  { %vm642_vm10 = vcmp.ge.f32.partialorder %v600_v5, 0.0  ;;  %v658_v9 = vmul.f32 0.2, %v600_v5  ;;  %v673_v11 = vsel %vm641_vm8, %v597_v0, %v657_v4 }
 0x2b1   :  { %vm640_vm11 = vcmp.ge.f32.partialorder %v592_v8, 0.0  ;;  %v656_v10 = vmul.f32 0.2, %v592_v8  ;;  %v671_v13 = vsel %vm639_vm9, %v589_v2, %v655_v7 }
 0x2b2   :  { %v674_v12 = vsel %vm642_vm10, %v600_v5, %v658_v9 }
 0x2b3   :  { %v686_v14 = vpack.c.bf16 %v674_v12, %v673_v11  ;;  %v672_v15 = vsel %vm640_vm11, %v592_v8, %v656_v10  ;;  %v1219_v17 = vpop.f32.mrb[24].mxu1 }
 0x2b4   :  { %v685_v20 = vpack.c.bf16 %v672_v15, %v671_v13  ;;  %v613_v21 = vadd.f32 %v1219_v17, %v1493_v34  ;;  %v604_v22 = vpop.f32.mrb[25].mxu1 }
 0x2b5   :  { %v605_v23 = vadd.f32 %v604_v22, %v1493_v34  ;;  %v1220_v24 = vpop.f32.mrb[26].mxu1 }
 0x2b6   :  { %v661_v25 = vmul.f32 0.2, %v613_v21  ;;  %v616_v26 = vadd.f32 %v1220_v24, %v1493_v34  ;;  %v607_v27 = vpop.f32.mrb[27].mxu1  ;;  %1233 = vmatprep.mubr.msk.bf16.mxu0 %vm315_vm5, %v685_v20  ;;  %vm645_vm12 = vcmp.ge.f32.partialorder %v613_v21, 0.0 }
 0x2b7   :  { %v659_v28 = vmul.f32 0.2, %v605_v23  ;;  %v608_v29 = vadd.f32 %v607_v27, %v1493_v34  ;;  %1234 = vmatmul.mubr.msk.bf16.gmra.mrb[20].mxu0 %vm315_vm5, %v686_v14  ;;  %vm643_vm13 = vcmp.ge.f32.partialorder %v605_v23, 0.0 }
 0x2b8   :  { %vm646_vm14 = vcmp.ge.f32.partialorder %v616_v26, 0.0  ;;  %v662_v30 = vmul.f32 0.2, %v616_v26  ;;  %v677_v19 = vsel %vm645_vm12, %v613_v21, %v661_v25 }
 0x2b9   :  { %vm644_vm15 = vcmp.ge.f32.partialorder %v608_v29, 0.0  ;;  %v660_v31 = vmul.f32 0.2, %v608_v29  ;;  %v675_v33 = vsel %vm643_vm13, %v605_v23, %v659_v28 }
 0x2ba   :  { %v678_v32 = vsel %vm646_vm14, %v616_v26, %v662_v30 }
 0x2bb   :  { %v688_v35 = vpack.c.bf16 %v678_v32, %v677_v19  ;;  %v676_v36 = vsel %vm644_vm15, %v608_v29, %v660_v31  ;;  %v1223_v37 = vpop.f32.mrb[28].mxu1 }
 0x2bc   :  { %v687_v38 = vpack.c.bf16 %v676_v36, %v675_v33  ;;  %v629_v39 = vadd.f32 %v1223_v37, %v1493_v34  ;;  %v620_v40 = vpop.f32.mrb[29].mxu1 }
 0x2bd   :  { %v621_v41 = vadd.f32 %v620_v40, %v1493_v34  ;;  %v1224_v42 = vpop.f32.mrb[30].mxu1 }
 0x2be   :  { %v665_v43 = vmul.f32 0.2, %v629_v39  ;;  %v632_v44 = vadd.f32 %v1224_v42, %v1493_v34  ;;  %v623_v45 = vpop.f32.mrb[31].mxu1  ;;  %1237 = vmatprep.mubr.msk.bf16.mxu0 %vm315_vm5, %v687_v38  ;;  %vm649_vm0 = vcmp.ge.f32.partialorder %v629_v39, 0.0 }
 0x2bf   :  { %v663_v46 = vmul.f32 0.2, %v621_v41  ;;  %v624_v47 = vadd.f32 %v623_v45, %v1493_v34  ;;  %1238 = vmatmul.mubr.msk.bf16.gmra.mrb[24].mxu0 %vm315_vm5, %v688_v35  ;;  %vm647_vm1 = vcmp.ge.f32.partialorder %v621_v41, 0.0  ;;  %v1522_v34 = vld [vmem:[%s1673_s5] ss:$0 sm:$0xff] }
 0x2c0   :  { %vm650_vm2 = vcmp.ge.f32.partialorder %v632_v44, 0.0  ;;  %v666_v48 = vmul.f32 0.2, %v632_v44  ;;  %v681_v50 = vsel %vm649_vm0, %v629_v39, %v665_v43 }
 0x2c1   :  { %vm648_vm3 = vcmp.ge.f32.partialorder %v624_v47, 0.0  ;;  %v664_v49 = vmul.f32 0.2, %v624_v47  ;;  %v679_v52 = vsel %vm647_vm1, %v621_v41, %v663_v46 }
 0x2c2   :  { %v682_v51 = vsel %vm650_vm2, %v632_v44, %v666_v48 }
 0x2c3   :  { %v690_v53 = vpack.c.bf16 %v682_v51, %v681_v50  ;;  %v680_v54 = vsel %vm648_vm3, %v624_v47, %v664_v49 }
 0x2c4   :  { %v689_v55 = vpack.c.bf16 %v680_v54, %v679_v52 }
 0x2c6   :  { %1241 = vmatprep.mubr.msk.bf16.mxu0 %vm315_vm5, %v689_v55 }
 0x2c7   :  { %1242 = vmatmul.mubr.msk.bf16.gmra.mrb[28].mxu0 %vm315_vm5, %v690_v53  ;;  %vm1027_vm5 = vcmask 162816  }
 0x382   :  { %v1231_v16 = vpop.f32.mrb[16].mxu0 }
 0x383   :  { %v1525_v18 = vadd.f32 %v1231_v16, %v1522_v34  ;;  %v772_v57 = vpop.f32.mrb[17].mxu0 }
 0x384   :  { %v1528_v58 = vadd.f32 %v1522_v34, %v772_v57  ;;  %v1232_v59 = vpop.f32.mrb[18].mxu0 }
 0x385   :  { %v1105_v60 = vmul.f32 -1.442695, %v1525_v18  ;;  %v1532_v61 = vadd.f32 %v1232_v59, %v1522_v34  ;;  %v775_v62 = vpop.f32.mrb[19].mxu0 }
 0x386   :  { %v1103_v63 = vmul.f32 -1.442695, %v1528_v58  ;;  %v1536_v0 = vadd.f32 %v1522_v34, %v775_v62 }
 0x387   :  { %1266 = vpow2.f32 %v1105_v60  ;;  %v1106_v1 = vmul.f32 -1.442695, %v1532_v61 }
 0x388   :  { %1268 = vpow2.f32 %v1103_v63  ;;  %v1104_v2 = vmul.f32 -1.442695, %v1536_v0 }
 0x389   :  { %1270 = vpow2.f32 %v1106_v1 }
 0x38a   :  { %1272 = vpow2.f32 %v1104_v2  ;;  %v1235_v3 = vpop.f32.mrb[20].mxu0 }
 0x38b   :  { %v1541_v4 = vadd.f32 %v1235_v3, %v1522_v34  ;;  %v788_v5 = vpop.f32.mrb[21].mxu0 }
 0x38c   :  { %v1544_v6 = vadd.f32 %v1522_v34, %v788_v5  ;;  %v1236_v7 = vpop.f32.mrb[22].mxu0 }
 0x38d   :  { %v1109_v8 = vmul.f32 -1.442695, %v1541_v4  ;;  %v1548_v9 = vadd.f32 %v1236_v7, %v1522_v34  ;;  %v791_v10 = vpop.f32.mrb[23].mxu0 }
 0x38e   :  { %v1107_v11 = vmul.f32 -1.442695, %v1544_v6  ;;  %v1552_v12 = vadd.f32 %v1522_v34, %v791_v10 }
 0x38f   :  { %1274 = vpow2.f32 %v1109_v8  ;;  %v1110_v13 = vmul.f32 -1.442695, %v1548_v9 }
 0x390   :  { %1276 = vpow2.f32 %v1107_v11  ;;  %v1108_v14 = vmul.f32 -1.442695, %v1552_v12 }
 0x391   :  { %v1267_v15 = vpop.eup %1266  ;;  %1278 = vpow2.f32 %v1110_v13 }
 0x392   :  { %v1269_v17 = vpop.eup %1268  ;;  %v885_v20 = vadd.f32 1.0, %v1267_v15  ;;  %1280 = vpow2.f32 %v1108_v14  ;;  %v1239_v21 = vpop.f32.mrb[24].mxu0 }
 0x393   :  { %v1271_v22 = vpop.eup %1270  ;;  %v883_v23 = vadd.f32 1.0, %v1269_v17  ;;  %v1557_v24 = vadd.f32 %v1239_v21, %v1522_v34  ;;  %v804_v25 = vpop.f32.mrb[25].mxu0 }
 0x394   :  { %v1273_v26 = vpop.eup %1272  ;;  %1282 = vrcp.f32 %v885_v20  ;;  %v886_v27 = vadd.f32 1.0, %v1271_v22  ;;  %v1560_v28 = vadd.f32 %v1522_v34, %v804_v25  ;;  %v1240_v29 = vpop.f32.mrb[26].mxu0 }
 0x395   :  { %1284 = vrcp.f32 %v883_v23  ;;  %v884_v30 = vadd.f32 1.0, %v1273_v26  ;;  %v1113_v31 = vmul.f32 -1.442695, %v1557_v24  ;;  %v1564_v19 = vadd.f32 %v1240_v29, %v1522_v34  ;;  %v807_v32 = vpop.f32.mrb[27].mxu0 }
 0x396   :  { %1286 = vrcp.f32 %v886_v27  ;;  %v1111_v33 = vmul.f32 -1.442695, %v1560_v28  ;;  %v1568_v35 = vadd.f32 %v1522_v34, %v807_v32 }
 0x397   :  { %1288 = vrcp.f32 %v884_v30  ;;  %v1114_v36 = vmul.f32 -1.442695, %v1564_v19 }
 0x398   :  { %1290 = vpow2.f32 %v1113_v31  ;;  %v1112_v37 = vmul.f32 -1.442695, %v1568_v35 }
 0x399   :  { %v1275_v38 = vpop.eup %1274  ;;  %1292 = vpow2.f32 %v1111_v33 }
 0x39a   :  { %v1277_v39 = vpop.eup %1276  ;;  %v889_v40 = vadd.f32 1.0, %v1275_v38  ;;  %1294 = vpow2.f32 %v1114_v36  ;;  %v1243_v41 = vpop.f32.mrb[28].mxu0 }
 0x39b   :  { %v1279_v42 = vpop.eup %1278  ;;  %v887_v43 = vadd.f32 1.0, %v1277_v39  ;;  %1296 = vpow2.f32 %v1112_v37  ;;  %v1573_v44 = vadd.f32 %v1243_v41, %v1522_v34  ;;  %v820_v45 = vpop.f32.mrb[29].mxu0 }
 0x39c   :  { %v1281_v46 = vpop.eup %1280  ;;  %1298 = vrcp.f32 %v889_v40  ;;  %v890_v47 = vadd.f32 1.0, %v1279_v42  ;;  %v1576_v48 = vadd.f32 %v1522_v34, %v820_v45  ;;  %v1244_v49 = vpop.f32.mrb[30].mxu0 }
 0x39d   :  { %1300 = vrcp.f32 %v887_v43  ;;  %v888_v50 = vadd.f32 1.0, %v1281_v46  ;;  %v1117_v51 = vmul.f32 -1.442695, %v1573_v44  ;;  %v1580_v52 = vadd.f32 %v1244_v49, %v1522_v34  ;;  %v823_v53 = vpop.f32.mrb[31].mxu0 }
 0x39e   :  { %v1283_v54 = vpop.eup %1282  ;;  %1302 = vrcp.f32 %v890_v47  ;;  %v1115_v55 = vmul.f32 -1.442695, %v1576_v48  ;;  %v1584_v56 = vadd.f32 %v1522_v34, %v823_v53 }
 0x39f   :  { %v1285_v16 = vpop.eup %1284  ;;  %1304 = vrcp.f32 %v888_v50  ;;  %v1118_v57 = vmul.f32 -1.442695, %v1580_v52  ;;  %943 = vperm.xlu1 %1246, %v1283_v54  }
 0x3a0   :  { %v1287_v59 = vpop.eup %1286  ;;  %1306 = vpow2.f32 %v1117_v51  ;;  %v1116_v60 = vmul.f32 -1.442695, %v1584_v56  ;;  %933 = vperm.xlu0 %1247, %v1285_v16  }
 0x3a1   :  { %v1289_v62 = vpop.eup %1288  ;;  %1308 = vpow2.f32 %v1115_v55 }
 0x3a2   :  { %v1291_v63 = vpop.eup %1290  ;;  %1310 = vpow2.f32 %v1118_v57 }
 0x3a3   :  { %v1293_v1 = vpop.eup %1292  ;;  %v893_v2 = vadd.f32 1.0, %v1291_v63  ;;  %1312 = vpow2.f32 %v1116_v60  ;;  %948 = vperm.xlu1 %1246, %v1287_v59  }
 0x3a4   :  { %v1295_v34 = vpop.eup %1294  ;;  %938 = vperm.xlu0 %1247, %v1289_v62   ;;  %v891_v5 = vadd.f32 1.0, %v1293_v1 }
 0x3a5   :  { %v1297_v3 = vpop.eup %1296  ;;  %1314 = vrcp.f32 %v893_v2  ;;  %v894_v7 = vadd.f32 1.0, %v1295_v34 }
 0x3a6   :  { %v1299_v8 = vpop.eup %1298  ;;  %v892_v11 = vadd.f32 1.0, %v1297_v3 }
 0x3a7   :  { %v1301_v10 = vpop.eup %1300  ;;  %1316 = vrcp.f32 %v894_v7 }
 0x3a8   :  { %v1303_v13 = vpop.eup %1302  ;;  %963 = vperm.xlu0 %1247, %v1299_v8   ;;  %1318 = vrcp.f32 %v891_v5 }
 0x3a9   :  { %v1305_v14 = vpop.eup %1304  ;;  %968 = vperm.xlu1 %1246, %v1303_v13   ;;  %1320 = vrcp.f32 %v892_v11 }
 0x3aa   :  { %v1307_v15 = vpop.eup %1306 }
 0x3ab   :  { %v1309_v17 = vpop.eup %1308  ;;  %v897_v23 = vadd.f32 1.0, %v1307_v15 }
 0x3ac   :  { %v1311_v20 = vpop.eup %1310  ;;  %v895_v21 = vadd.f32 1.0, %v1309_v17  ;;  %953 = vperm.xlu0 %1247, %v1301_v10  }
 0x3ad   :  { %v1313_v22 = vpop.eup %1312  ;;  %958 = vperm.xlu1 %1246, %v1305_v14   ;;  %v898_v27 = vadd.f32 1.0, %v1311_v20 }
 0x3ae   :  { %1322 = vrcp.f32 %v895_v21  ;;  %v896_v25 = vadd.f32 1.0, %v1313_v22 }
 0x3af   :  { %v1315_v26 = vpop.eup %1314 }
 0x3b0   :  { %1324 = vrcp.f32 %v896_v25  ;;  %983 = vperm.xlu0 %1247, %v1315_v26  }
 0x3b1   :  { %v1317_v29 = vpop.eup %1316  ;;  %1326 = vrcp.f32 %v897_v23 }
 0x3b2   :  { %988 = vperm.xlu1 %1246, %v1317_v29   ;;  %v1319_v30 = vpop.eup %1318  ;;  %1328 = vrcp.f32 %v898_v27 }
 0x3b3   :  { %v1321_v31 = vpop.eup %1320 }
 0x3b4   :  { %973 = vperm.xlu0 %1247, %v1319_v30  }
 0x3b6   :  { %978 = vperm.xlu1 %1246, %v1321_v31  }
 0x3b8   :  { %v1323_v32 = vpop.eup %1322 }
 0x3b9   :  { %993 = vperm.xlu0 %1247, %v1323_v32  }
 0x3ba   :  { %v1325_v33 = vpop.eup %1324 }
 0x3bb   :  { %998 = vperm.xlu1 %1246, %v1325_v33   ;;  %v1327_v36 = vpop.eup %1326 }
 0x3bc   :  { %v1329_v37 = vpop.eup %1328 }
 0x3bd   :  { %1003 = vperm.xlu0 %1247, %v1327_v36  }
 0x3bf   :  { %1008 = vperm.xlu1 %1246, %v1329_v37  }
 0x41e   :  { %v944_v38 = vpop.permute.xlu1 %943 }
 0x41f   :  { %v1013_v39 = vmul.f32 %v944_v38, %v1525_v18  ;;  %v934_v40 = vpop.permute.xlu0 %933 }
 0x420   :  { %v1011_v41 = vmul.f32 %v934_v40, %v1528_v58 }
 0x421   :  { %1030 = vst.msk [vmem:[%s1674_s6 + $0x10] sm:$0xff] %vm1027_vm5, %v1013_v39 }
 0x422   :  { %1028 = vst.msk [vmem:[%s1674_s6] sm:$0xff] %vm1027_vm5, %v1011_v41  ;;  %v949_v42 = vpop.permute.xlu1 %948 }
 0x423   :  { %v1014_v43 = vmul.f32 %v949_v42, %v1532_v61  ;;  %v939_v45 = vpop.permute.xlu0 %938 }
 0x424   :  { %v1012_v46 = vmul.f32 %v939_v45, %v1536_v0 }
 0x425   :  { %1031 = vst.msk [vmem:[%s1674_s6 + $0x18] sm:$0xff] %vm1027_vm5, %v1014_v43 }
 0x426   :  { %1029 = vst.msk [vmem:[%s1674_s6 + $0x8] sm:$0xff] %vm1027_vm5, %v1012_v46 }
 0x427   :  { %v964_v18 = vpop.permute.xlu0 %963 }
 0x428   :  { %v1017_v58 = vmul.f32 %v964_v18, %v1541_v4  ;;  %v969_v47 = vpop.permute.xlu1 %968 }
 0x429   :  { %v1018_v49 = vmul.f32 %v969_v47, %v1548_v9 }
 0x42a   :  { %1034 = vst.msk [vmem:[%s1674_s6 + $0x30] sm:$0xff] %vm1027_vm5, %v1017_v58 }
 0x42b   :  { %1035 = vst.msk [vmem:[%s1674_s6 + $0x38] sm:$0xff] %vm1027_vm5, %v1018_v49  ;;  %v954_v61 = vpop.permute.xlu0 %953 }
 0x42c   :  { %v1015_v0 = vmul.f32 %v954_v61, %v1544_v6  ;;  %v959_v50 = vpop.permute.xlu1 %958 }
 0x42d   :  { %v1016_v51 = vmul.f32 %v959_v50, %v1552_v12 }
 0x42e   :  { %1032 = vst.msk [vmem:[%s1674_s6 + $0x20] sm:$0xff] %vm1027_vm5, %v1015_v0 }
 0x42f   :  { %1033 = vst.msk [vmem:[%s1674_s6 + $0x28] sm:$0xff] %vm1027_vm5, %v1016_v51  ;;  %v984_v4 = vpop.permute.xlu0 %983 }
 0x430   :  { %v1021_v9 = vmul.f32 %v984_v4, %v1557_v24 }
 0x431   :  { %v989_v53 = vpop.permute.xlu1 %988 }
 0x432   :  { %1038 = vst.msk [vmem:[%s1674_s6 + $0x50] sm:$0xff] %vm1027_vm5, %v1021_v9  ;;  %v1022_v6 = vmul.f32 %v989_v53, %v1564_v19 }
 0x433   :  { %v974_v12 = vpop.permute.xlu0 %973 }
 0x434   :  { %1039 = vst.msk [vmem:[%s1674_s6 + $0x58] sm:$0xff] %vm1027_vm5, %v1022_v6  ;;  %v1019_v54 = vmul.f32 %v974_v12, %v1560_v28 }
 0x435   :  { %v979_v55 = vpop.permute.xlu1 %978 }
 0x436   :  { %1036 = vst.msk [vmem:[%s1674_s6 + $0x40] sm:$0xff] %vm1027_vm5, %v1019_v54  ;;  %v1020_v24 = vmul.f32 %v979_v55, %v1568_v35 }
 0x438   :  { %1037 = vst.msk [vmem:[%s1674_s6 + $0x48] sm:$0xff] %vm1027_vm5, %v1020_v24  ;;  %v994_v19 = vpop.permute.xlu0 %993 }
 0x439   :  { %v1023_v16 = vmul.f32 %v994_v19, %v1576_v48 }
 0x43a   :  { %v999_v57 = vpop.permute.xlu1 %998 }
 0x43b   :  { %1040 = vst.msk [vmem:[%s1674_s6 + $0x60] sm:$0xff] %vm1027_vm5, %v1023_v16  ;;  %v1024_v28 = vmul.f32 %v999_v57, %v1584_v56 }
 0x43c   :  { %v1004_v59 = vpop.permute.xlu0 %1003 }
 0x43d   :  { %1041 = vst.msk [vmem:[%s1674_s6 + $0x68] sm:$0xff] %vm1027_vm5, %v1024_v28  ;;  %v1025_v35 = vmul.f32 %v1004_v59, %v1573_v44 }
 0x43e   :  { %v1009_v60 = vpop.permute.xlu1 %1008 }
 0x43f   :  { %1042 = vst.msk [vmem:[%s1674_s6 + $0x70] sm:$0xff] %vm1027_vm5, %v1025_v35  ;;  %v1026_v48 = vmul.f32 %v1009_v60, %v1580_v52 }
 0x441   :  { %1043 = vst.msk [vmem:[%s1674_s6 + $0x78] sm:$0xff] %vm1027_vm5, %v1026_v48 }

// kernel: deepgcnii_forward.9
= control target key start
LH: loop header
LB: loop body
LE: loop exit
PB: predicated region body
PF: predicated region fallthrough
CT: control target
= control target key end

     0   :  { %vm125_vm0 = vcmask 1046528   ;;  %vm100_vm1 = vcmask 244736   ;;  %v45_v15 = vlaneseq  ;;  %vm302_vm6 = vcmask 261120   ;;  %s1282_s1 = inlined_call_operand.vmem [shape: bf16[30,32], index: 1, kind: input, shape index: {}]   ;;  %s1283_s0 = inlined_call_operand.vmem [shape: bf16[128,30], index: 0, kind: input, shape index: {}]   ;;  %s1284_s3 = inlined_call_operand.vmem [shape: bf16[2,32,32], index: 3, kind: input, shape index: {}]   ;;  %s1285_s2 = inlined_call_operand.vmem [shape: f32[3,32], index: 2, kind: input, shape index: {}]   ;;  %s1286_s4 = inlined_call_operand.vmem [shape: bf16[32,16], index: 4, kind: input, shape index: {}]   ;;  %s1287_s5 = inlined_call_operand.vmem [shape: f32[1,16], index: 5, kind: input, shape index: {}]   ;;  %s1288_s6 = inlined_call_operand.vmem [shape: f32[128,16], index: 6, kind: output, shape index: {}]  }
   0x1   :  { %v1017_v0 = vld [vmem:[%s1282_s1] sm:$0xff]   ;;  %v1018_v1 = vld [vmem:[%s1282_s1 + $0x8] sm:$0x7f]   ;;  %v1021_v5 = vld [vmem:[%s1283_s0 + $0x10] sm:$0xff]  }
   0x2   :  { %936 = vmatprep.subr.bf16.mxu0 %v1017_v0  ;;  %v1019_v2 = vld [vmem:[%s1283_s0] sm:$0xff]   ;;  %v127_v3 = vsel %vm125_vm0, %v1018_v1, 0  ;;  %v1020_v4 = vld [vmem:[%s1283_s0 + $0x8] sm:$0xff]   ;;  %v1022_v6 = vld [vmem:[%s1283_s0 + $0x18] sm:$0xff]   ;;  %v1118_v16 = vshrl.u32 %v45_v15, 7 }
   0x3   :  { %937 = vmatpush3.bf16.msra.mxu0 %v1017_v0  ;;  %940 = vmatprep.mubr.msk.bf16.mxu0 %vm100_vm1, %v1019_v2  ;;  %v1023_v7 = vld [vmem:[%s1283_s0 + $0x20] sm:$0xff]   ;;  %v1024_v8 = vld [vmem:[%s1283_s0 + $0x28] sm:$0xff]   ;;  %v1025_v9 = vld [vmem:[%s1283_s0 + $0x30] sm:$0xff]  }
   0x4   :  { %1016 = vmatprep.subr.msk.bf16.mxu0 %vm125_vm0, %v1018_v1  ;;  %v1026_v10 = vld [vmem:[%s1283_s0 + $0x38] sm:$0xff]   ;;  %v1027_v11 = vld [vmem:[%s1284_s3] sm:$0xff]   ;;  %v1028_v12 = vld [vmem:[%s1284_s3 + $0x8] sm:$0xff]   ;;  %v47_v17 = vsub.s32 0, %v1118_v16 }
   0x5   :  { %956 = vmatprep.subr.bf16.mxu1 %v1027_v11  ;;  %v1029_v13 = vld [vmem:[%s1284_s3 + $0x10] sm:$0xff]   ;;  %v1030_v14 = vld [vmem:[%s1284_s3 + $0x18] sm:$0xff]   ;;  %v1124_v18 = vld [vmem:[%s1285_s2] sm:$0x7] }
   0x6   :  { %957 = vmatpush3.bf16.msra.mxu1 %v1027_v11  ;;  %v1127_v19 = vrot.slane %v1124_v18, %v47_v17 }
   0x7   :  { %939 = vmatpush3.bf16.msra.mxu0 %v127_v3  ;;  %958 = vmatprep.subr.bf16.mxu1 %v1028_v12 }
   0x8   :  { %976 = vmatprep.subr.bf16.mxu0 %v1029_v13 }
   0xa   :  { %941 = vmatmul.mubr.msk.bf16.vlgmr.msra.gmra.mrb[0].mxu0 %vm100_vm1, %v1020_v4  ;;  %959 = vmatpush3.bf16.msra.mxu1 %v1028_v12 }
   0xb   :  { %944 = vmatprep.mubr.msk.bf16.mxu0 %vm100_vm1, %v1021_v5  ;;  %977 = vmatpush3.bf16.msra.mxu0 %v1029_v13 }
   0xc   :  { %978 = vmatprep.subr.bf16.mxu0 %v1030_v14 }
   0xf   :  { %979 = vmatpush3.bf16.msra.mxu0 %v1030_v14 }
  0x12   :  { %945 = vmatmul.mubr.msk.bf16.gmra.mrb[4].mxu0 %vm100_vm1, %v1022_v6 }
  0x13   :  { %948 = vmatprep.mubr.msk.bf16.mxu0 %vm100_vm1, %v1023_v7 }
  0x1a   :  { %949 = vmatmul.mubr.msk.bf16.gmra.mrb[8].mxu0 %vm100_vm1, %v1024_v8 }
  0x1b   :  { %952 = vmatprep.mubr.msk.bf16.mxu0 %vm100_vm1, %v1025_v9 }
  0x22   :  { %953 = vmatmul.mubr.msk.bf16.gmra.mrb[12].mxu0 %vm100_vm1, %v1026_v10 }
  0xdd   :  { %v942_v20 = vpop.f32.mrb[0].mxu0 }
  0xde   :  { %v172_v21 = vadd.f32 %v942_v20, %v1127_v19  ;;  %v163_v22 = vpop.f32.mrb[1].mxu0 }
  0xdf   :  { %v164_v23 = vadd.f32 %v163_v22, %v1127_v19  ;;  %v943_v24 = vpop.f32.mrb[2].mxu0 }
  0xe0   :  { %v244_v25 = vmul.f32 0.2, %v172_v21  ;;  %v175_v26 = vadd.f32 %v943_v24, %v1127_v19  ;;  %v166_v27 = vpop.f32.mrb[3].mxu0  ;;  %vm228_vm2 = vcmp.ge.f32.partialorder %v172_v21, 0.0 }
  0xe1   :  { %v242_v28 = vmul.f32 0.2, %v164_v23  ;;  %v167_v29 = vadd.f32 %v166_v27, %v1127_v19  ;;  %vm226_vm4 = vcmp.ge.f32.partialorder %v164_v23, 0.0 }
  0xe2   :  { %vm229_vm3 = vcmp.ge.f32.partialorder %v175_v26, 0.0  ;;  %v245_v30 = vmul.f32 0.2, %v175_v26  ;;  %v260_v32 = vsel %vm228_vm2, %v172_v21, %v244_v25 }
  0xe3   :  { %v243_v31 = vmul.f32 0.2, %v167_v29  ;;  %vm227_vm5 = vcmp.ge.f32.partialorder %v167_v29, 0.0  ;;  %v258_v36 = vsel %vm226_vm4, %v164_v23, %v242_v28 }
  0xe4   :  { %v261_v33 = vsel %vm229_vm3, %v175_v26, %v245_v30 }
  0xe5   :  { %v275_v34 = vpack.c.bf16 %v261_v33, %v260_v32  ;;  %v946_v35 = vpop.f32.mrb[4].mxu0  ;;  %v259_v37 = vsel %vm227_vm5, %v167_v29, %v243_v31  ;;  %v1032_v31 = vld [vmem:[%s1286_s4 + $0x8] sm:$0xff]   ;;  %v288_v32 = vsub.s32 1, %v1118_v16 }
  0xe6   :  { %v188_v38 = vadd.f32 %v946_v35, %v1127_v19  ;;  %v179_v39 = vpop.f32.mrb[5].mxu0  ;;  %v274_v40 = vpack.c.bf16 %v259_v37, %v258_v36 }
  0xe7   :  { %v180_v41 = vadd.f32 %v179_v39, %v1127_v19  ;;  %v947_v42 = vpop.f32.mrb[6].mxu0  ;;  %v1161_v33 = vrot.slane %v1124_v18, %v288_v32 }
  0xe8   :  { %v248_v43 = vmul.f32 0.2, %v188_v38  ;;  %v191_v44 = vadd.f32 %v947_v42, %v1127_v19  ;;  %v182_v45 = vpop.f32.mrb[7].mxu0  ;;  %960 = vmatprep.mubr.msk.bf16.mxu1 %vm302_vm6, %v274_v40  ;;  %vm232_vm7 = vcmp.ge.f32.partialorder %v188_v38, 0.0 }
  0xe9   :  { %v246_v46 = vmul.f32 0.2, %v180_v41  ;;  %v183_v47 = vadd.f32 %v182_v45, %v1127_v19  ;;  %961 = vmatmul.mubr.msk.bf16.vlgmr.msra.gmra.mrb[0].mxu1 %vm302_vm6, %v275_v34  ;;  %vm230_vm8 = vcmp.ge.f32.partialorder %v180_v41, 0.0 }
  0xea   :  { %vm233_vm9 = vcmp.ge.f32.partialorder %v191_v44, 0.0  ;;  %v249_v48 = vmul.f32 0.2, %v191_v44  ;;  %v264_v50 = vsel %vm232_vm7, %v188_v38, %v248_v43 }
  0xeb   :  { %vm231_vm10 = vcmp.ge.f32.partialorder %v183_v47, 0.0  ;;  %v247_v49 = vmul.f32 0.2, %v183_v47  ;;  %v262_v52 = vsel %vm230_vm8, %v180_v41, %v246_v46 }
  0xec   :  { %v265_v51 = vsel %vm233_vm9, %v191_v44, %v249_v48 }
  0xed   :  { %v277_v53 = vpack.c.bf16 %v265_v51, %v264_v50  ;;  %v263_v54 = vsel %vm231_vm10, %v183_v47, %v247_v49  ;;  %v950_v55 = vpop.f32.mrb[8].mxu0 }
  0xee   :  { %v276_v56 = vpack.c.bf16 %v263_v54, %v262_v52  ;;  %v204_v57 = vadd.f32 %v950_v55, %v1127_v19  ;;  %v195_v58 = vpop.f32.mrb[9].mxu0 }
  0xef   :  { %v196_v59 = vadd.f32 %v195_v58, %v1127_v19  ;;  %v951_v60 = vpop.f32.mrb[10].mxu0 }
  0xf0   :  { %v252_v61 = vmul.f32 0.2, %v204_v57  ;;  %v207_v62 = vadd.f32 %v951_v60, %v1127_v19  ;;  %v198_v63 = vpop.f32.mrb[11].mxu0  ;;  %964 = vmatprep.mubr.msk.bf16.mxu1 %vm302_vm6, %v276_v56  ;;  %vm236_vm11 = vcmp.ge.f32.partialorder %v204_v57, 0.0 }
  0xf1   :  { %v250_v0 = vmul.f32 0.2, %v196_v59  ;;  %v199_v1 = vadd.f32 %v198_v63, %v1127_v19  ;;  %965 = vmatmul.mubr.msk.bf16.gmra.mrb[4].mxu1 %vm302_vm6, %v277_v53  ;;  %vm234_vm12 = vcmp.ge.f32.partialorder %v196_v59, 0.0 }
  0xf2   :  { %vm237_vm13 = vcmp.ge.f32.partialorder %v207_v62, 0.0  ;;  %v253_v2 = vmul.f32 0.2, %v207_v62  ;;  %v268_v4 = vsel %vm236_vm11, %v204_v57, %v252_v61 }
  0xf3   :  { %vm235_vm14 = vcmp.ge.f32.partialorder %v199_v1, 0.0  ;;  %v251_v3 = vmul.f32 0.2, %v199_v1  ;;  %v266_v6 = vsel %vm234_vm12, %v196_v59, %v250_v0 }
  0xf4   :  { %v269_v5 = vsel %vm237_vm13, %v207_v62, %v253_v2 }
  0xf5   :  { %v279_v7 = vpack.c.bf16 %v269_v5, %v268_v4  ;;  %v267_v8 = vsel %vm235_vm14, %v199_v1, %v251_v3  ;;  %v954_v9 = vpop.f32.mrb[12].mxu0 }
  0xf6   :  { %v278_v10 = vpack.c.bf16 %v267_v8, %v266_v6  ;;  %v220_v11 = vadd.f32 %v954_v9, %v1127_v19  ;;  %v211_v12 = vpop.f32.mrb[13].mxu0 }
  0xf7   :  { %v212_v13 = vadd.f32 %v211_v12, %v1127_v19  ;;  %v955_v14 = vpop.f32.mrb[14].mxu0 }
  0xf8   :  { %v256_v15 = vmul.f32 0.2, %v220_v11  ;;  %v223_v17 = vadd.f32 %v955_v14, %v1127_v19  ;;  %v214_v20 = vpop.f32.mrb[15].mxu0  ;;  %968 = vmatprep.mubr.msk.bf16.mxu1 %vm302_vm6, %v278_v10  ;;  %vm240_vm15 = vcmp.ge.f32.partialorder %v220_v11, 0.0 }
  0xf9   :  { %v254_v21 = vmul.f32 0.2, %v212_v13  ;;  %v215_v22 = vadd.f32 %v214_v20, %v1127_v19  ;;  %969 = vmatmul.mubr.msk.bf16.gmra.mrb[8].mxu1 %vm302_vm6, %v279_v7  ;;  %vm238_vm0 = vcmp.ge.f32.partialorder %v212_v13, 0.0  ;;  %v1031_v19 = vld [vmem:[%s1286_s4] sm:$0xff]  }
  0xfa   :  { %vm241_vm1 = vcmp.ge.f32.partialorder %v223_v17, 0.0  ;;  %v257_v23 = vmul.f32 0.2, %v223_v17  ;;  %v272_v25 = vsel %vm240_vm15, %v220_v11, %v256_v15  ;;  %996 = vmatprep.subr.bf16.mxu1 %v1031_v19 }
  0xfb   :  { %vm239_vm2 = vcmp.ge.f32.partialorder %v215_v22, 0.0  ;;  %v255_v24 = vmul.f32 0.2, %v215_v22  ;;  %v270_v27 = vsel %vm238_vm0, %v212_v13, %v254_v21  ;;  %997 = vmatpush3.bf16.msra.mxu1 %v1031_v19 }
  0xfc   :  { %v273_v26 = vsel %vm241_vm1, %v223_v17, %v257_v23  ;;  %998 = vmatprep.subr.bf16.mxu1 %v1032_v31 }
  0xfd   :  { %v281_v28 = vpack.c.bf16 %v273_v26, %v272_v25  ;;  %v271_v29 = vsel %vm239_vm2, %v215_v22, %v255_v24 }
  0xfe   :  { %v280_v30 = vpack.c.bf16 %v271_v29, %v270_v27 }
  0xff   :  { %999 = vmatpush3.bf16.msra.mxu1 %v1032_v31 }
 0x100   :  { %972 = vmatprep.mubr.msk.bf16.mxu1 %vm302_vm6, %v280_v30 }
 0x101   :  { %973 = vmatmul.mubr.msk.bf16.gmra.mrb[12].mxu1 %vm302_vm6, %v281_v28 }
 0x1bc   :  { %v962_v34 = vpop.f32.mrb[0].mxu1 }
 0x1bd   :  { %v370_v35 = vadd.f32 %v962_v34, %v1161_v33  ;;  %v361_v36 = vpop.f32.mrb[1].mxu1 }
 0x1be   :  { %v362_v37 = vadd.f32 %v361_v36, %v1161_v33  ;;  %v963_v38 = vpop.f32.mrb[2].mxu1 }
 0x1bf   :  { %v442_v39 = vmul.f32 0.2, %v370_v35  ;;  %v373_v40 = vadd.f32 %v963_v38, %v1161_v33  ;;  %v364_v41 = vpop.f32.mrb[3].mxu1  ;;  %vm426_vm3 = vcmp.ge.f32.partialorder %v370_v35, 0.0 }
 0x1c0   :  { %v440_v42 = vmul.f32 0.2, %v362_v37  ;;  %v365_v43 = vadd.f32 %v364_v41, %v1161_v33  ;;  %vm424_vm4 = vcmp.ge.f32.partialorder %v362_v37, 0.0 }
 0x1c1   :  { %vm427_vm5 = vcmp.ge.f32.partialorder %v373_v40, 0.0  ;;  %v443_v44 = vmul.f32 0.2, %v373_v40  ;;  %v458_v46 = vsel %vm426_vm3, %v370_v35, %v442_v39 }
 0x1c2   :  { %vm425_vm7 = vcmp.ge.f32.partialorder %v365_v43, 0.0  ;;  %v441_v45 = vmul.f32 0.2, %v365_v43  ;;  %v456_v48 = vsel %vm424_vm4, %v362_v37, %v440_v42 }
 0x1c3   :  { %v459_v47 = vsel %vm427_vm5, %v373_v40, %v443_v44 }
 0x1c4   :  { %v473_v49 = vpack.c.bf16 %v459_v47, %v458_v46  ;;  %v457_v50 = vsel %vm425_vm7, %v365_v43, %v441_v45  ;;  %v966_v51 = vpop.f32.mrb[4].mxu1  ;;  %v487_v45 = vsub.s32 2, %v1118_v16 }
 0x1c5   :  { %v472_v52 = vpack.c.bf16 %v457_v50, %v456_v48  ;;  %v386_v53 = vadd.f32 %v966_v51, %v1161_v33  ;;  %v377_v54 = vpop.f32.mrb[5].mxu1 }
 0x1c6   :  { %v378_v55 = vadd.f32 %v377_v54, %v1161_v33  ;;  %v967_v56 = vpop.f32.mrb[6].mxu1 }
 0x1c7   :  { %v446_v57 = vmul.f32 0.2, %v386_v53  ;;  %v389_v58 = vadd.f32 %v967_v56, %v1161_v33  ;;  %v380_v59 = vpop.f32.mrb[7].mxu1  ;;  %980 = vmatprep.mubr.msk.bf16.mxu0 %vm302_vm6, %v472_v52  ;;  %vm430_vm8 = vcmp.ge.f32.partialorder %v386_v53, 0.0 }
 0x1c8   :  { %v444_v60 = vmul.f32 0.2, %v378_v55  ;;  %v381_v61 = vadd.f32 %v380_v59, %v1161_v33  ;;  %981 = vmatmul.mubr.msk.bf16.vlgmr.msra.gmra.mrb[16].mxu0 %vm302_vm6, %v473_v49  ;;  %vm428_vm9 = vcmp.ge.f32.partialorder %v378_v55, 0.0 }
 0x1c9   :  { %vm431_vm10 = vcmp.ge.f32.partialorder %v389_v58, 0.0  ;;  %v447_v62 = vmul.f32 0.2, %v389_v58  ;;  %v462_v0 = vsel %vm430_vm8, %v386_v53, %v446_v57 }
 0x1ca   :  { %vm429_vm11 = vcmp.ge.f32.partialorder %v381_v61, 0.0  ;;  %v445_v63 = vmul.f32 0.2, %v381_v61  ;;  %v460_v2 = vsel %vm428_vm9, %v378_v55, %v444_v60 }
 0x1cb   :  { %v463_v1 = vsel %vm431_vm10, %v389_v58, %v447_v62 }
 0x1cc   :  { %v475_v3 = vpack.c.bf16 %v463_v1, %v462_v0  ;;  %v461_v4 = vsel %vm429_vm11, %v381_v61, %v445_v63  ;;  %v970_v5 = vpop.f32.mrb[8].mxu1 }
 0x1cd   :  { %v474_v6 = vpack.c.bf16 %v461_v4, %v460_v2  ;;  %v402_v7 = vadd.f32 %v970_v5, %v1161_v33  ;;  %v393_v8 = vpop.f32.mrb[9].mxu1 }
 0x1ce   :  { %v394_v9 = vadd.f32 %v393_v8, %v1161_v33  ;;  %v971_v10 = vpop.f32.mrb[10].mxu1 }
 0x1cf   :  { %v450_v11 = vmul.f32 0.2, %v402_v7  ;;  %v405_v12 = vadd.f32 %v971_v10, %v1161_v33  ;;  %v396_v13 = vpop.f32.mrb[11].mxu1  ;;  %984 = vmatprep.mubr.msk.bf16.mxu0 %vm302_vm6, %v474_v6  ;;  %vm434_vm12 = vcmp.ge.f32.partialorder %v402_v7, 0.0 }
 0x1d0   :  { %v448_v14 = vmul.f32 0.2, %v394_v9  ;;  %v397_v15 = vadd.f32 %v396_v13, %v1161_v33  ;;  %985 = vmatmul.mubr.msk.bf16.gmra.mrb[20].mxu0 %vm302_vm6, %v475_v3  ;;  %vm432_vm13 = vcmp.ge.f32.partialorder %v394_v9, 0.0 }
 0x1d1   :  { %vm435_vm14 = vcmp.ge.f32.partialorder %v405_v12, 0.0  ;;  %v451_v17 = vmul.f32 0.2, %v405_v12  ;;  %v466_v21 = vsel %vm434_vm12, %v402_v7, %v450_v11 }
 0x1d2   :  { %vm433_vm15 = vcmp.ge.f32.partialorder %v397_v15, 0.0  ;;  %v449_v20 = vmul.f32 0.2, %v397_v15  ;;  %v464_v23 = vsel %vm432_vm13, %v394_v9, %v448_v14 }
 0x1d3   :  { %v467_v22 = vsel %vm435_vm14, %v405_v12, %v451_v17 }
 0x1d4   :  { %v477_v24 = vpack.c.bf16 %v467_v22, %v466_v21  ;;  %v465_v25 = vsel %vm433_vm15, %v397_v15, %v449_v20  ;;  %v974_v26 = vpop.f32.mrb[12].mxu1 }
 0x1d5   :  { %v476_v27 = vpack.c.bf16 %v465_v25, %v464_v23  ;;  %v418_v28 = vadd.f32 %v974_v26, %v1161_v33  ;;  %v409_v29 = vpop.f32.mrb[13].mxu1 }
 0x1d6   :  { %v410_v30 = vadd.f32 %v409_v29, %v1161_v33  ;;  %v975_v19 = vpop.f32.mrb[14].mxu1 }
 0x1d7   :  { %v454_v31 = vmul.f32 0.2, %v418_v28  ;;  %v421_v32 = vadd.f32 %v975_v19, %v1161_v33  ;;  %v412_v34 = vpop.f32.mrb[15].mxu1  ;;  %988 = vmatprep.mubr.msk.bf16.mxu0 %vm302_vm6, %v476_v27  ;;  %vm438_vm0 = vcmp.ge.f32.partialorder %v418_v28, 0.0 }
 0x1d8   :  { %v452_v35 = vmul.f32 0.2, %v410_v30  ;;  %v413_v36 = vadd.f32 %v412_v34, %v1161_v33  ;;  %989 = vmatmul.mubr.msk.bf16.gmra.mrb[24].mxu0 %vm302_vm6, %v477_v24  ;;  %vm436_vm1 = vcmp.ge.f32.partialorder %v410_v30, 0.0  ;;  %v1189_v33 = vrot.slane %v1124_v18, %v487_v45 }
 0x1d9   :  { %vm439_vm2 = vcmp.ge.f32.partialorder %v421_v32, 0.0  ;;  %v455_v37 = vmul.f32 0.2, %v421_v32  ;;  %v470_v39 = vsel %vm438_vm0, %v418_v28, %v454_v31 }
 0x1da   :  { %vm437_vm3 = vcmp.ge.f32.partialorder %v413_v36, 0.0  ;;  %v453_v38 = vmul.f32 0.2, %v413_v36  ;;  %v468_v41 = vsel %vm436_vm1, %v410_v30, %v452_v35 }
 0x1db   :  { %v471_v40 = vsel %vm439_vm2, %v421_v32, %v455_v37 }
 0x1dc   :  { %v479_v42 = vpack.c.bf16 %v471_v40, %v470_v39  ;;  %v469_v43 = vsel %vm437_vm3, %v413_v36, %v453_v38 }
 0x1dd   :  { %v478_v44 = vpack.c.bf16 %v469_v43, %v468_v41 }
 0x1df   :  { %992 = vmatprep.mubr.msk.bf16.mxu0 %vm302_vm6, %v478_v44 }
 0x1e0   :  { %993 = vmatmul.mubr.msk.bf16.gmra.mrb[28].mxu0 %vm302_vm6, %v479_v42 }
 0x29b   :  { %v982_v46 = vpop.f32.mrb[16].mxu0 }
 0x29c   :  { %v568_v47 = vadd.f32 %v982_v46, %v1189_v33  ;;  %v559_v48 = vpop.f32.mrb[17].mxu0 }
 0x29d   :  { %v560_v49 = vadd.f32 %v559_v48, %v1189_v33  ;;  %v983_v50 = vpop.f32.mrb[18].mxu0 }
 0x29e   :  { %v640_v51 = vmul.f32 0.2, %v568_v47  ;;  %v571_v52 = vadd.f32 %v983_v50, %v1189_v33  ;;  %v562_v53 = vpop.f32.mrb[19].mxu0  ;;  %vm624_vm4 = vcmp.ge.f32.partialorder %v568_v47, 0.0 }
 0x29f   :  { %v638_v54 = vmul.f32 0.2, %v560_v49  ;;  %v563_v55 = vadd.f32 %v562_v53, %v1189_v33  ;;  %vm622_vm5 = vcmp.ge.f32.partialorder %v560_v49, 0.0 }
 0x2a0   :  { %vm625_vm7 = vcmp.ge.f32.partialorder %v571_v52, 0.0  ;;  %v641_v16 = vmul.f32 0.2, %v571_v52  ;;  %v656_v56 = vsel %vm624_vm4, %v568_v47, %v640_v51 }
 0x2a1   :  { %vm623_vm8 = vcmp.ge.f32.partialorder %v563_v55, 0.0  ;;  %v639_v18 = vmul.f32 0.2, %v563_v55  ;;  %v654_v58 = vsel %vm622_vm5, %v560_v49, %v638_v54  ;;  %vm822_vm5 = vcmask 130048  }
 0x2a2   :  { %v657_v57 = vsel %vm625_vm7, %v571_v52, %v641_v16 }
 0x2a3   :  { %v671_v59 = vpack.c.bf16 %v657_v57, %v656_v56  ;;  %v655_v60 = vsel %vm623_vm8, %v563_v55, %v639_v18  ;;  %v986_v61 = vpop.f32.mrb[20].mxu0 }
 0x2a4   :  { %v670_v62 = vpack.c.bf16 %v655_v60, %v654_v58  ;;  %v584_v63 = vadd.f32 %v986_v61, %v1189_v33  ;;  %v575_v0 = vpop.f32.mrb[21].mxu0 }
 0x2a5   :  { %v576_v1 = vadd.f32 %v575_v0, %v1189_v33  ;;  %v987_v2 = vpop.f32.mrb[22].mxu0 }
 0x2a6   :  { %v644_v3 = vmul.f32 0.2, %v584_v63  ;;  %v587_v4 = vadd.f32 %v987_v2, %v1189_v33  ;;  %v578_v5 = vpop.f32.mrb[23].mxu0  ;;  %1000 = vmatprep.mubr.msk.bf16.mxu1 %vm302_vm6, %v670_v62  ;;  %vm628_vm9 = vcmp.ge.f32.partialorder %v584_v63, 0.0 }
 0x2a7   :  { %v642_v6 = vmul.f32 0.2, %v576_v1  ;;  %v579_v7 = vadd.f32 %v578_v5, %v1189_v33  ;;  %1001 = vmatmul.mubr.msk.bf16.vlgmr.msra.gmra.mrb[16].mxu1 %vm302_vm6, %v671_v59  ;;  %vm626_vm10 = vcmp.ge.f32.partialorder %v576_v1, 0.0 }
 0x2a8   :  { %vm629_vm11 = vcmp.ge.f32.partialorder %v587_v4, 0.0  ;;  %v645_v8 = vmul.f32 0.2, %v587_v4  ;;  %v660_v10 = vsel %vm628_vm9, %v584_v63, %v644_v3 }
 0x2a9   :  { %vm627_vm12 = vcmp.ge.f32.partialorder %v579_v7, 0.0  ;;  %v643_v9 = vmul.f32 0.2, %v579_v7  ;;  %v658_v12 = vsel %vm626_vm10, %v576_v1, %v642_v6 }
 0x2aa   :  { %v661_v11 = vsel %vm629_vm11, %v587_v4, %v645_v8 }
 0x2ab   :  { %v673_v13 = vpack.c.bf16 %v661_v11, %v660_v10  ;;  %v659_v14 = vsel %vm627_vm12, %v579_v7, %v643_v9  ;;  %v990_v15 = vpop.f32.mrb[24].mxu0 }
 0x2ac   :  { %v672_v17 = vpack.c.bf16 %v659_v14, %v658_v12  ;;  %v600_v20 = vadd.f32 %v990_v15, %v1189_v33  ;;  %v591_v21 = vpop.f32.mrb[25].mxu0 }
 0x2ad   :  { %v592_v22 = vadd.f32 %v591_v21, %v1189_v33  ;;  %v991_v23 = vpop.f32.mrb[26].mxu0 }
 0x2ae   :  { %v648_v24 = vmul.f32 0.2, %v600_v20  ;;  %v603_v25 = vadd.f32 %v991_v23, %v1189_v33  ;;  %v594_v26 = vpop.f32.mrb[27].mxu0  ;;  %1004 = vmatprep.mubr.msk.bf16.mxu1 %vm302_vm6, %v672_v17  ;;  %vm632_vm13 = vcmp.ge.f32.partialorder %v600_v20, 0.0 }
 0x2af   :  { %v646_v27 = vmul.f32 0.2, %v592_v22  ;;  %v595_v28 = vadd.f32 %v594_v26, %v1189_v33  ;;  %1005 = vmatmul.mubr.msk.bf16.gmra.mrb[20].mxu1 %vm302_vm6, %v673_v13  ;;  %vm630_vm14 = vcmp.ge.f32.partialorder %v592_v22, 0.0 }
 0x2b0   :  { %vm633_vm15 = vcmp.ge.f32.partialorder %v603_v25, 0.0  ;;  %v649_v29 = vmul.f32 0.2, %v603_v25  ;;  %v664_v19 = vsel %vm632_vm13, %v600_v20, %v648_v24 }
 0x2b1   :  { %vm631_vm0 = vcmp.ge.f32.partialorder %v595_v28, 0.0  ;;  %v647_v30 = vmul.f32 0.2, %v595_v28  ;;  %v662_v32 = vsel %vm630_vm14, %v592_v22, %v646_v27 }
 0x2b2   :  { %v665_v31 = vsel %vm633_vm15, %v603_v25, %v649_v29 }
 0x2b3   :  { %v675_v34 = vpack.c.bf16 %v665_v31, %v664_v19  ;;  %v663_v35 = vsel %vm631_vm0, %v595_v28, %v647_v30  ;;  %v994_v36 = vpop.f32.mrb[28].mxu0 }
 0x2b4   :  { %v674_v37 = vpack.c.bf16 %v663_v35, %v662_v32  ;;  %v616_v38 = vadd.f32 %v994_v36, %v1189_v33  ;;  %v607_v39 = vpop.f32.mrb[29].mxu0 }
 0x2b5   :  { %v608_v40 = vadd.f32 %v607_v39, %v1189_v33  ;;  %v995_v41 = vpop.f32.mrb[30].mxu0 }
 0x2b6   :  { %v652_v42 = vmul.f32 0.2, %v616_v38  ;;  %v619_v43 = vadd.f32 %v995_v41, %v1189_v33  ;;  %v610_v44 = vpop.f32.mrb[31].mxu0  ;;  %1008 = vmatprep.mubr.msk.bf16.mxu1 %vm302_vm6, %v674_v37  ;;  %vm636_vm1 = vcmp.ge.f32.partialorder %v616_v38, 0.0 }
 0x2b7   :  { %v650_v45 = vmul.f32 0.2, %v608_v40  ;;  %v611_v46 = vadd.f32 %v610_v44, %v1189_v33  ;;  %1009 = vmatmul.mubr.msk.bf16.gmra.mrb[24].mxu1 %vm302_vm6, %v675_v34  ;;  %vm634_vm2 = vcmp.ge.f32.partialorder %v608_v40, 0.0  ;;  %v885_v33 = vld [vmem:[%s1287_s5] ss:$0 sm:$0xff] }
 0x2b8   :  { %vm637_vm3 = vcmp.ge.f32.partialorder %v619_v43, 0.0  ;;  %v653_v47 = vmul.f32 0.2, %v619_v43  ;;  %v668_v49 = vsel %vm636_vm1, %v616_v38, %v652_v42 }
 0x2b9   :  { %vm635_vm4 = vcmp.ge.f32.partialorder %v611_v46, 0.0  ;;  %v651_v48 = vmul.f32 0.2, %v611_v46  ;;  %v666_v51 = vsel %vm634_vm2, %v608_v40, %v650_v45 }
 0x2ba   :  { %v669_v50 = vsel %vm637_vm3, %v619_v43, %v653_v47 }
 0x2bb   :  { %v677_v52 = vpack.c.bf16 %v669_v50, %v668_v49  ;;  %v667_v53 = vsel %vm635_vm4, %v611_v46, %v651_v48 }
 0x2bc   :  { %v676_v54 = vpack.c.bf16 %v667_v53, %v666_v51 }
 0x2be   :  { %1012 = vmatprep.mubr.msk.bf16.mxu1 %vm302_vm6, %v676_v54 }
 0x2bf   :  { %1013 = vmatmul.mubr.msk.bf16.gmra.mrb[28].mxu1 %vm302_vm6, %v677_v52 }
 0x37a   :  { %v1002_v55 = vpop.f32.mrb[16].mxu1 }
 0x37b   :  { %v768_v16 = vadd.f32 %v1002_v55, %v885_v33  ;;  %v759_v18 = vpop.f32.mrb[17].mxu1 }
 0x37c   :  { %v760_v56 = vadd.f32 %v885_v33, %v759_v18  ;;  %v1003_v57 = vpop.f32.mrb[18].mxu1 }
 0x37d   :  { %825 = vst.msk [vmem:[%s1288_s6 + $0x10] sm:$0xff] %vm822_vm5, %v768_v16  ;;  %v771_v58 = vadd.f32 %v1003_v57, %v885_v33  ;;  %v762_v59 = vpop.f32.mrb[19].mxu1 }
 0x37e   :  { %823 = vst.msk [vmem:[%s1288_s6] sm:$0xff] %vm822_vm5, %v760_v56  ;;  %v763_v60 = vadd.f32 %v885_v33, %v762_v59 }
 0x37f   :  { %826 = vst.msk [vmem:[%s1288_s6 + $0x18] sm:$0xff] %vm822_vm5, %v771_v58 }
 0x380   :  { %824 = vst.msk [vmem:[%s1288_s6 + $0x8] sm:$0xff] %vm822_vm5, %v763_v60 }
 0x382   :  { %v1006_v61 = vpop.f32.mrb[20].mxu1 }
 0x383   :  { %v784_v62 = vadd.f32 %v1006_v61, %v885_v33  ;;  %v775_v63 = vpop.f32.mrb[21].mxu1 }
 0x384   :  { %v776_v0 = vadd.f32 %v885_v33, %v775_v63  ;;  %v1007_v1 = vpop.f32.mrb[22].mxu1 }
 0x385   :  { %829 = vst.msk [vmem:[%s1288_s6 + $0x30] sm:$0xff] %vm822_vm5, %v784_v62  ;;  %v787_v2 = vadd.f32 %v1007_v1, %v885_v33  ;;  %v778_v3 = vpop.f32.mrb[23].mxu1 }
 0x386   :  { %827 = vst.msk [vmem:[%s1288_s6 + $0x20] sm:$0xff] %vm822_vm5, %v776_v0  ;;  %v779_v4 = vadd.f32 %v885_v33, %v778_v3 }
 0x387   :  { %830 = vst.msk [vmem:[%s1288_s6 + $0x38] sm:$0xff] %vm822_vm5, %v787_v2 }
 0x388   :  { %828 = vst.msk [vmem:[%s1288_s6 + $0x28] sm:$0xff] %vm822_vm5, %v779_v4 }
 0x38a   :  { %v1010_v5 = vpop.f32.mrb[24].mxu1 }
 0x38b   :  { %v800_v6 = vadd.f32 %v1010_v5, %v885_v33  ;;  %v791_v7 = vpop.f32.mrb[25].mxu1 }
 0x38c   :  { %v792_v8 = vadd.f32 %v885_v33, %v791_v7  ;;  %v1011_v9 = vpop.f32.mrb[26].mxu1 }
 0x38d   :  { %833 = vst.msk [vmem:[%s1288_s6 + $0x50] sm:$0xff] %vm822_vm5, %v800_v6  ;;  %v803_v10 = vadd.f32 %v1011_v9, %v885_v33  ;;  %v794_v11 = vpop.f32.mrb[27].mxu1 }
 0x38e   :  { %831 = vst.msk [vmem:[%s1288_s6 + $0x40] sm:$0xff] %vm822_vm5, %v792_v8  ;;  %v795_v12 = vadd.f32 %v885_v33, %v794_v11 }
 0x38f   :  { %834 = vst.msk [vmem:[%s1288_s6 + $0x58] sm:$0xff] %vm822_vm5, %v803_v10 }
 0x390   :  { %832 = vst.msk [vmem:[%s1288_s6 + $0x48] sm:$0xff] %vm822_vm5, %v795_v12 }
 0x392   :  { %v1014_v13 = vpop.f32.mrb[28].mxu1 }
 0x393   :  { %v816_v14 = vadd.f32 %v1014_v13, %v885_v33  ;;  %v807_v15 = vpop.f32.mrb[29].mxu1 }
 0x394   :  { %v808_v17 = vadd.f32 %v885_v33, %v807_v15  ;;  %v1015_v20 = vpop.f32.mrb[30].mxu1 }
 0x395   :  { %837 = vst.msk [vmem:[%s1288_s6 + $0x70] sm:$0xff] %vm822_vm5, %v816_v14  ;;  %v819_v21 = vadd.f32 %v1015_v20, %v885_v33  ;;  %v810_v22 = vpop.f32.mrb[31].mxu1 }
 0x396   :  { %835 = vst.msk [vmem:[%s1288_s6 + $0x60] sm:$0xff] %vm822_vm5, %v808_v17  ;;  %v811_v23 = vadd.f32 %v885_v33, %v810_v22 }
 0x397   :  { %838 = vst.msk [vmem:[%s1288_s6 + $0x78] sm:$0xff] %vm822_vm5, %v819_v21 }
 0x398   :  { %836 = vst.msk [vmem:[%s1288_s6 + $0x68] sm:$0xff] %vm822_vm5, %v811_v23 }

// kernel: deepgcnii_forward.11
= control target key start
LH: loop header
LB: loop body
LE: loop exit
PB: predicated region body
PF: predicated region fallthrough
CT: control target
= control target key end

     0   :  { %vm111_vm0 = vcmask 375808   ;;  %vm136_vm1 = vcmask 1046528   ;;  %v50_v15 = vlaneseq  ;;  %vm313_vm6 = vcmask 261120   ;;  %s1404_s2 = inlined_call_operand.vmem [shape: bf16[46,32], index: 2, kind: input, shape index: {}]   ;;  %s1405_s0 = inlined_call_operand.vmem [shape: bf16[128,46], index: 0, kind: input, shape index: {}]   ;;  %s1406_s4 = inlined_call_operand.vmem [shape: bf16[2,32,32], index: 4, kind: input, shape index: {}]   ;;  %s1407_s3 = inlined_call_operand.vmem [shape: f32[3,32], index: 3, kind: input, shape index: {}]   ;;  %s1408_s5 = inlined_call_operand.vmem [shape: bf16[32,16], index: 5, kind: input, shape index: {}]   ;;  %s1409_s6 = inlined_call_operand.vmem [shape: f32[1,16], index: 6, kind: input, shape index: {}]   ;;  %s1410_s1 = inlined_call_operand.vmem [shape: f32[128,16], index: 1, kind: input, shape index: {}]   ;;  %s1411_s7 = inlined_call_operand.vmem [shape: f32[128,16], index: 7, kind: output, shape index: {}]  }
   0x1   :  { %v1064_v0 = vld [vmem:[%s1404_s2] sm:$0xff]   ;;  %v1065_v1 = vld [vmem:[%s1404_s2 + $0x8] sm:$0xff]   ;;  %v1066_v3 = vld [vmem:[%s1404_s2 + $0x10] sm:$0x7f]  }
   0x2   :  { %981 = vmatprep.subr.bf16.mxu0 %v1064_v0  ;;  %v1067_v2 = vld [vmem:[%s1405_s0] sm:$0xff]   ;;  %v138_v4 = vsel %vm136_vm1, %v1066_v3, 0  ;;  %v1068_v5 = vld [vmem:[%s1405_s0 + $0x8] sm:$0xff]   ;;  %v1069_v6 = vld [vmem:[%s1405_s0 + $0x10] sm:$0xff]   ;;  %v1171_v16 = vshrl.u32 %v50_v15, 7 }
   0x3   :  { %982 = vmatpush3.bf16.msra.mxu0 %v1064_v0  ;;  %987 = vmatprep.mubr.msk.bf16.mxu0 %vm111_vm0, %v1067_v2  ;;  %v1070_v7 = vld [vmem:[%s1405_s0 + $0x18] sm:$0xff]   ;;  %v1071_v8 = vld [vmem:[%s1405_s0 + $0x20] sm:$0xff]   ;;  %v1072_v9 = vld [vmem:[%s1405_s0 + $0x28] sm:$0xff]  }
   0x4   :  { %983 = vmatprep.subr.bf16.mxu0 %v1065_v1  ;;  %v1073_v10 = vld [vmem:[%s1405_s0 + $0x30] sm:$0xff]   ;;  %v1074_v11 = vld [vmem:[%s1405_s0 + $0x38] sm:$0xff]   ;;  %v1075_v12 = vld [vmem:[%s1406_s4] sm:$0xff]   ;;  %v52_v17 = vsub.s32 0, %v1171_v16 }
   0x5   :  { %1003 = vmatprep.subr.bf16.mxu1 %v1075_v12  ;;  %v1076_v13 = vld [vmem:[%s1406_s4 + $0x8] sm:$0xff]   ;;  %v1077_v14 = vld [vmem:[%s1406_s4 + $0x10] sm:$0xff]   ;;  %v1177_v18 = vld [vmem:[%s1407_s3] sm:$0x7] }
   0x6   :  { %1004 = vmatpush3.bf16.msra.mxu1 %v1075_v12  ;;  %v1180_v19 = vrot.slane %v1177_v18, %v52_v17  ;;  %v1078_v43 = vld [vmem:[%s1406_s4 + $0x18] sm:$0xff]  }
   0x7   :  { %984 = vmatpush3.bf16.msra.mxu0 %v1065_v1  ;;  %1005 = vmatprep.subr.bf16.mxu1 %v1076_v13 }
   0x8   :  { %1063 = vmatprep.subr.msk.bf16.mxu0 %vm136_vm1, %v1066_v3 }
   0xa   :  { %1006 = vmatpush3.bf16.msra.mxu1 %v1076_v13 }
   0xb   :  { %986 = vmatpush3.bf16.msra.mxu0 %v138_v4  ;;  %1023 = vmatprep.subr.bf16.mxu1 %v1077_v14 }
   0xe   :  { %988 = vmatmul.mubr.msk.bf16.vlgmr.msra.gmra.mrb[0].mxu0 %vm111_vm0, %v1068_v5 }
   0xf   :  { %991 = vmatprep.mubr.msk.bf16.mxu0 %vm111_vm0, %v1069_v6 }
  0x16   :  { %992 = vmatmul.mubr.msk.bf16.gmra.mrb[4].mxu0 %vm111_vm0, %v1070_v7 }
  0x17   :  { %995 = vmatprep.mubr.msk.bf16.mxu0 %vm111_vm0, %v1071_v8 }
  0x1e   :  { %996 = vmatmul.mubr.msk.bf16.gmra.mrb[8].mxu0 %vm111_vm0, %v1072_v9 }
  0x1f   :  { %999 = vmatprep.mubr.msk.bf16.mxu0 %vm111_vm0, %v1073_v10 }
  0x26   :  { %1000 = vmatmul.mubr.msk.bf16.gmra.mrb[12].mxu0 %vm111_vm0, %v1074_v11 }
  0xe1   :  { %v989_v20 = vpop.f32.mrb[0].mxu0 }
  0xe2   :  { %v183_v21 = vadd.f32 %v989_v20, %v1180_v19  ;;  %v174_v22 = vpop.f32.mrb[1].mxu0 }
  0xe3   :  { %v175_v23 = vadd.f32 %v174_v22, %v1180_v19  ;;  %v990_v24 = vpop.f32.mrb[2].mxu0 }
  0xe4   :  { %v255_v25 = vmul.f32 0.2, %v183_v21  ;;  %v186_v26 = vadd.f32 %v990_v24, %v1180_v19  ;;  %v177_v27 = vpop.f32.mrb[3].mxu0  ;;  %vm239_vm2 = vcmp.ge.f32.partialorder %v183_v21, 0.0 }
  0xe5   :  { %v253_v28 = vmul.f32 0.2, %v175_v23  ;;  %v178_v29 = vadd.f32 %v177_v27, %v1180_v19  ;;  %vm237_vm4 = vcmp.ge.f32.partialorder %v175_v23, 0.0 }
  0xe6   :  { %vm240_vm3 = vcmp.ge.f32.partialorder %v186_v26, 0.0  ;;  %v256_v30 = vmul.f32 0.2, %v186_v26  ;;  %v271_v32 = vsel %vm239_vm2, %v183_v21, %v255_v25 }
  0xe7   :  { %v254_v31 = vmul.f32 0.2, %v178_v29  ;;  %vm238_vm5 = vcmp.ge.f32.partialorder %v178_v29, 0.0  ;;  %v269_v36 = vsel %vm237_vm4, %v175_v23, %v253_v28 }
  0xe8   :  { %v272_v33 = vsel %vm240_vm3, %v186_v26, %v256_v30 }
  0xe9   :  { %v286_v34 = vpack.c.bf16 %v272_v33, %v271_v32  ;;  %v993_v35 = vpop.f32.mrb[4].mxu0  ;;  %v270_v37 = vsel %vm238_vm5, %v178_v29, %v254_v31  ;;  %v1080_v32 = vld [vmem:[%s1408_s5 + $0x8] sm:$0xff]   ;;  %v299_v33 = vsub.s32 1, %v1171_v16 }
  0xea   :  { %v199_v38 = vadd.f32 %v993_v35, %v1180_v19  ;;  %v190_v39 = vpop.f32.mrb[5].mxu0  ;;  %v285_v40 = vpack.c.bf16 %v270_v37, %v269_v36 }
  0xeb   :  { %v191_v41 = vadd.f32 %v190_v39, %v1180_v19  ;;  %v994_v42 = vpop.f32.mrb[6].mxu0 }
  0xec   :  { %v259_v44 = vmul.f32 0.2, %v199_v38  ;;  %v202_v45 = vadd.f32 %v994_v42, %v1180_v19  ;;  %v193_v46 = vpop.f32.mrb[7].mxu0  ;;  %1007 = vmatprep.mubr.msk.bf16.mxu1 %vm313_vm6, %v285_v40  ;;  %vm243_vm7 = vcmp.ge.f32.partialorder %v199_v38, 0.0 }
  0xed   :  { %v257_v47 = vmul.f32 0.2, %v191_v41  ;;  %v194_v48 = vadd.f32 %v193_v46, %v1180_v19  ;;  %1008 = vmatmul.mubr.msk.bf16.vlgmr.msra.gmra.mrb[0].mxu1 %vm313_vm6, %v286_v34  ;;  %vm241_vm8 = vcmp.ge.f32.partialorder %v191_v41, 0.0  ;;  %v1217_v34 = vrot.slane %v1177_v18, %v299_v33 }
  0xee   :  { %vm244_vm9 = vcmp.ge.f32.partialorder %v202_v45, 0.0  ;;  %v260_v49 = vmul.f32 0.2, %v202_v45  ;;  %1024 = vmatpush3.bf16.msra.mxu1 %v1077_v14  ;;  %v275_v51 = vsel %vm243_vm7, %v199_v38, %v259_v44 }
  0xef   :  { %vm242_vm10 = vcmp.ge.f32.partialorder %v194_v48, 0.0  ;;  %v258_v50 = vmul.f32 0.2, %v194_v48  ;;  %1025 = vmatprep.subr.bf16.mxu1 %v1078_v43  ;;  %v273_v53 = vsel %vm241_vm8, %v191_v41, %v257_v47 }
  0xf0   :  { %v276_v52 = vsel %vm244_vm9, %v202_v45, %v260_v49 }
  0xf1   :  { %v288_v54 = vpack.c.bf16 %v276_v52, %v275_v51  ;;  %v274_v55 = vsel %vm242_vm10, %v194_v48, %v258_v50  ;;  %v997_v56 = vpop.f32.mrb[8].mxu0 }
  0xf2   :  { %v287_v57 = vpack.c.bf16 %v274_v55, %v273_v53  ;;  %v215_v58 = vadd.f32 %v997_v56, %v1180_v19  ;;  %v206_v59 = vpop.f32.mrb[9].mxu0  ;;  %1026 = vmatpush3.bf16.msra.mxu1 %v1078_v43 }
  0xf3   :  { %v207_v60 = vadd.f32 %v206_v59, %v1180_v19  ;;  %v998_v61 = vpop.f32.mrb[10].mxu0 }
  0xf4   :  { %v263_v62 = vmul.f32 0.2, %v215_v58  ;;  %v218_v63 = vadd.f32 %v998_v61, %v1180_v19  ;;  %v209_v0 = vpop.f32.mrb[11].mxu0  ;;  %1011 = vmatprep.mubr.msk.bf16.mxu1 %vm313_vm6, %v287_v57  ;;  %vm247_vm11 = vcmp.ge.f32.partialorder %v215_v58, 0.0 }
  0xf5   :  { %v261_v1 = vmul.f32 0.2, %v207_v60  ;;  %v210_v2 = vadd.f32 %v209_v0, %v1180_v19  ;;  %1012 = vmatmul.mubr.msk.bf16.gmra.mrb[4].mxu1 %vm313_vm6, %v288_v54  ;;  %vm245_vm12 = vcmp.ge.f32.partialorder %v207_v60, 0.0 }
  0xf6   :  { %vm248_vm13 = vcmp.ge.f32.partialorder %v218_v63, 0.0  ;;  %v264_v3 = vmul.f32 0.2, %v218_v63  ;;  %v279_v5 = vsel %vm247_vm11, %v215_v58, %v263_v62 }
  0xf7   :  { %vm246_vm14 = vcmp.ge.f32.partialorder %v210_v2, 0.0  ;;  %v262_v4 = vmul.f32 0.2, %v210_v2  ;;  %v277_v7 = vsel %vm245_vm12, %v207_v60, %v261_v1 }
  0xf8   :  { %v280_v6 = vsel %vm248_vm13, %v218_v63, %v264_v3 }
  0xf9   :  { %v290_v8 = vpack.c.bf16 %v280_v6, %v279_v5  ;;  %v278_v9 = vsel %vm246_vm14, %v210_v2, %v262_v4  ;;  %v1001_v10 = vpop.f32.mrb[12].mxu0 }
  0xfa   :  { %v289_v11 = vpack.c.bf16 %v278_v9, %v277_v7  ;;  %v231_v12 = vadd.f32 %v1001_v10, %v1180_v19  ;;  %v222_v13 = vpop.f32.mrb[13].mxu0 }
  0xfb   :  { %v223_v14 = vadd.f32 %v222_v13, %v1180_v19  ;;  %v1002_v15 = vpop.f32.mrb[14].mxu0 }
  0xfc   :  { %v267_v17 = vmul.f32 0.2, %v231_v12  ;;  %v234_v20 = vadd.f32 %v1002_v15, %v1180_v19  ;;  %v225_v21 = vpop.f32.mrb[15].mxu0  ;;  %1015 = vmatprep.mubr.msk.bf16.mxu1 %vm313_vm6, %v289_v11  ;;  %vm251_vm15 = vcmp.ge.f32.partialorder %v231_v12, 0.0 }
  0xfd   :  { %v265_v22 = vmul.f32 0.2, %v223_v14  ;;  %v226_v23 = vadd.f32 %v225_v21, %v1180_v19  ;;  %1016 = vmatmul.mubr.msk.bf16.gmra.mrb[8].mxu1 %vm313_vm6, %v290_v8  ;;  %vm249_vm0 = vcmp.ge.f32.partialorder %v223_v14, 0.0  ;;  %v1079_v19 = vld [vmem:[%s1408_s5] sm:$0xff]  }
  0xfe   :  { %vm252_vm1 = vcmp.ge.f32.partialorder %v234_v20, 0.0  ;;  %v268_v24 = vmul.f32 0.2, %v234_v20  ;;  %v283_v26 = vsel %vm251_vm15, %v231_v12, %v267_v17  ;;  %1043 = vmatprep.subr.bf16.mxu0 %v1079_v19 }
  0xff   :  { %vm250_vm2 = vcmp.ge.f32.partialorder %v226_v23, 0.0  ;;  %v266_v25 = vmul.f32 0.2, %v226_v23  ;;  %v281_v28 = vsel %vm249_vm0, %v223_v14, %v265_v22  ;;  %1044 = vmatpush3.bf16.msra.mxu0 %v1079_v19 }
 0x100   :  { %v284_v27 = vsel %vm252_vm1, %v234_v20, %v268_v24  ;;  %1045 = vmatprep.subr.bf16.mxu0 %v1080_v32 }
 0x101   :  { %v292_v29 = vpack.c.bf16 %v284_v27, %v283_v26  ;;  %v282_v30 = vsel %vm250_vm2, %v226_v23, %v266_v25 }
 0x102   :  { %v291_v31 = vpack.c.bf16 %v282_v30, %v281_v28 }
 0x103   :  { %1046 = vmatpush3.bf16.msra.mxu0 %v1080_v32 }
 0x104   :  { %1019 = vmatprep.mubr.msk.bf16.mxu1 %vm313_vm6, %v291_v31 }
 0x105   :  { %1020 = vmatmul.mubr.msk.bf16.gmra.mrb[12].mxu1 %vm313_vm6, %v292_v29 }
 0x1c0   :  { %v1009_v35 = vpop.f32.mrb[0].mxu1 }
 0x1c1   :  { %v381_v36 = vadd.f32 %v1009_v35, %v1217_v34  ;;  %v372_v37 = vpop.f32.mrb[1].mxu1 }
 0x1c2   :  { %v373_v38 = vadd.f32 %v372_v37, %v1217_v34  ;;  %v1010_v39 = vpop.f32.mrb[2].mxu1 }
 0x1c3   :  { %v453_v40 = vmul.f32 0.2, %v381_v36  ;;  %v384_v41 = vadd.f32 %v1010_v39, %v1217_v34  ;;  %v375_v42 = vpop.f32.mrb[3].mxu1  ;;  %vm437_vm3 = vcmp.ge.f32.partialorder %v381_v36, 0.0 }
 0x1c4   :  { %v451_v43 = vmul.f32 0.2, %v373_v38  ;;  %v376_v44 = vadd.f32 %v375_v42, %v1217_v34  ;;  %vm435_vm4 = vcmp.ge.f32.partialorder %v373_v38, 0.0 }
 0x1c5   :  { %vm438_vm5 = vcmp.ge.f32.partialorder %v384_v41, 0.0  ;;  %v454_v45 = vmul.f32 0.2, %v384_v41  ;;  %v469_v47 = vsel %vm437_vm3, %v381_v36, %v453_v40 }
 0x1c6   :  { %vm436_vm7 = vcmp.ge.f32.partialorder %v376_v44, 0.0  ;;  %v452_v46 = vmul.f32 0.2, %v376_v44  ;;  %v467_v49 = vsel %vm435_vm4, %v373_v38, %v451_v43 }
 0x1c7   :  { %v470_v48 = vsel %vm438_vm5, %v384_v41, %v454_v45 }
 0x1c8   :  { %v484_v50 = vpack.c.bf16 %v470_v48, %v469_v47  ;;  %v468_v51 = vsel %vm436_vm7, %v376_v44, %v452_v46  ;;  %v1013_v52 = vpop.f32.mrb[4].mxu1  ;;  %v498_v46 = vsub.s32 2, %v1171_v16 }
 0x1c9   :  { %v483_v53 = vpack.c.bf16 %v468_v51, %v467_v49  ;;  %v397_v54 = vadd.f32 %v1013_v52, %v1217_v34  ;;  %v388_v55 = vpop.f32.mrb[5].mxu1 }
 0x1ca   :  { %v389_v56 = vadd.f32 %v388_v55, %v1217_v34  ;;  %v1014_v57 = vpop.f32.mrb[6].mxu1 }
 0x1cb   :  { %v457_v58 = vmul.f32 0.2, %v397_v54  ;;  %v400_v59 = vadd.f32 %v1014_v57, %v1217_v34  ;;  %v391_v60 = vpop.f32.mrb[7].mxu1  ;;  %1027 = vmatprep.mubr.msk.bf16.mxu1 %vm313_vm6, %v483_v53  ;;  %vm441_vm8 = vcmp.ge.f32.partialorder %v397_v54, 0.0 }
 0x1cc   :  { %v455_v61 = vmul.f32 0.2, %v389_v56  ;;  %v392_v62 = vadd.f32 %v391_v60, %v1217_v34  ;;  %1028 = vmatmul.mubr.msk.bf16.vlgmr.msra.gmra.mrb[16].mxu1 %vm313_vm6, %v484_v50  ;;  %vm439_vm9 = vcmp.ge.f32.partialorder %v389_v56, 0.0 }
 0x1cd   :  { %vm442_vm10 = vcmp.ge.f32.partialorder %v400_v59, 0.0  ;;  %v458_v63 = vmul.f32 0.2, %v400_v59  ;;  %v473_v1 = vsel %vm441_vm8, %v397_v54, %v457_v58 }
 0x1ce   :  { %vm440_vm11 = vcmp.ge.f32.partialorder %v392_v62, 0.0  ;;  %v456_v0 = vmul.f32 0.2, %v392_v62  ;;  %v471_v3 = vsel %vm439_vm9, %v389_v56, %v455_v61 }
 0x1cf   :  { %v474_v2 = vsel %vm442_vm10, %v400_v59, %v458_v63 }
 0x1d0   :  { %v486_v4 = vpack.c.bf16 %v474_v2, %v473_v1  ;;  %v472_v5 = vsel %vm440_vm11, %v392_v62, %v456_v0  ;;  %v1017_v6 = vpop.f32.mrb[8].mxu1 }
 0x1d1   :  { %v485_v7 = vpack.c.bf16 %v472_v5, %v471_v3  ;;  %v413_v8 = vadd.f32 %v1017_v6, %v1217_v34  ;;  %v404_v9 = vpop.f32.mrb[9].mxu1 }
 0x1d2   :  { %v405_v10 = vadd.f32 %v404_v9, %v1217_v34  ;;  %v1018_v11 = vpop.f32.mrb[10].mxu1 }
 0x1d3   :  { %v461_v12 = vmul.f32 0.2, %v413_v8  ;;  %v416_v13 = vadd.f32 %v1018_v11, %v1217_v34  ;;  %v407_v14 = vpop.f32.mrb[11].mxu1  ;;  %1031 = vmatprep.mubr.msk.bf16.mxu1 %vm313_vm6, %v485_v7  ;;  %vm445_vm12 = vcmp.ge.f32.partialorder %v413_v8, 0.0 }
 0x1d4   :  { %v459_v15 = vmul.f32 0.2, %v405_v10  ;;  %v408_v17 = vadd.f32 %v407_v14, %v1217_v34  ;;  %1032 = vmatmul.mubr.msk.bf16.gmra.mrb[20].mxu1 %vm313_vm6, %v486_v4  ;;  %vm443_vm13 = vcmp.ge.f32.partialorder %v405_v10, 0.0 }
 0x1d5   :  { %vm446_vm14 = vcmp.ge.f32.partialorder %v416_v13, 0.0  ;;  %v462_v20 = vmul.f32 0.2, %v416_v13  ;;  %v477_v22 = vsel %vm445_vm12, %v413_v8, %v461_v12 }
 0x1d6   :  { %vm444_vm15 = vcmp.ge.f32.partialorder %v408_v17, 0.0  ;;  %v460_v21 = vmul.f32 0.2, %v408_v17  ;;  %v475_v24 = vsel %vm443_vm13, %v405_v10, %v459_v15 }
 0x1d7   :  { %v478_v23 = vsel %vm446_vm14, %v416_v13, %v462_v20 }
 0x1d8   :  { %v488_v25 = vpack.c.bf16 %v478_v23, %v477_v22  ;;  %v476_v26 = vsel %vm444_vm15, %v408_v17, %v460_v21  ;;  %v1021_v27 = vpop.f32.mrb[12].mxu1 }
 0x1d9   :  { %v487_v28 = vpack.c.bf16 %v476_v26, %v475_v24  ;;  %v429_v29 = vadd.f32 %v1021_v27, %v1217_v34  ;;  %v420_v30 = vpop.f32.mrb[13].mxu1 }
 0x1da   :  { %v421_v31 = vadd.f32 %v420_v30, %v1217_v34  ;;  %v1022_v19 = vpop.f32.mrb[14].mxu1 }
 0x1db   :  { %v465_v32 = vmul.f32 0.2, %v429_v29  ;;  %v432_v33 = vadd.f32 %v1022_v19, %v1217_v34  ;;  %v423_v35 = vpop.f32.mrb[15].mxu1  ;;  %1035 = vmatprep.mubr.msk.bf16.mxu1 %vm313_vm6, %v487_v28  ;;  %vm449_vm0 = vcmp.ge.f32.partialorder %v429_v29, 0.0 }
 0x1dc   :  { %v463_v36 = vmul.f32 0.2, %v421_v31  ;;  %v424_v37 = vadd.f32 %v423_v35, %v1217_v34  ;;  %1036 = vmatmul.mubr.msk.bf16.gmra.mrb[24].mxu1 %vm313_vm6, %v488_v25  ;;  %vm447_vm1 = vcmp.ge.f32.partialorder %v421_v31, 0.0  ;;  %v1245_v34 = vrot.slane %v1177_v18, %v498_v46 }
 0x1dd   :  { %vm450_vm2 = vcmp.ge.f32.partialorder %v432_v33, 0.0  ;;  %v466_v38 = vmul.f32 0.2, %v432_v33  ;;  %v481_v40 = vsel %vm449_vm0, %v429_v29, %v465_v32 }
 0x1de   :  { %vm448_vm3 = vcmp.ge.f32.partialorder %v424_v37, 0.0  ;;  %v464_v39 = vmul.f32 0.2, %v424_v37  ;;  %v479_v42 = vsel %vm447_vm1, %v421_v31, %v463_v36 }
 0x1df   :  { %v482_v41 = vsel %vm450_vm2, %v432_v33, %v466_v38 }
 0x1e0   :  { %v490_v43 = vpack.c.bf16 %v482_v41, %v481_v40  ;;  %v480_v44 = vsel %vm448_vm3, %v424_v37, %v464_v39 }
 0x1e1   :  { %v489_v45 = vpack.c.bf16 %v480_v44, %v479_v42 }
 0x1e3   :  { %1039 = vmatprep.mubr.msk.bf16.mxu1 %vm313_vm6, %v489_v45 }
 0x1e4   :  { %1040 = vmatmul.mubr.msk.bf16.gmra.mrb[28].mxu1 %vm313_vm6, %v490_v43 }
 0x29f   :  { %v1029_v47 = vpop.f32.mrb[16].mxu1 }
 0x2a0   :  { %v579_v48 = vadd.f32 %v1029_v47, %v1245_v34  ;;  %v570_v49 = vpop.f32.mrb[17].mxu1 }
 0x2a1   :  { %v571_v50 = vadd.f32 %v570_v49, %v1245_v34  ;;  %v1030_v51 = vpop.f32.mrb[18].mxu1 }
 0x2a2   :  { %v651_v52 = vmul.f32 0.2, %v579_v48  ;;  %v582_v53 = vadd.f32 %v1030_v51, %v1245_v34  ;;  %v573_v54 = vpop.f32.mrb[19].mxu1  ;;  %vm635_vm4 = vcmp.ge.f32.partialorder %v579_v48, 0.0 }
 0x2a3   :  { %v649_v55 = vmul.f32 0.2, %v571_v50  ;;  %v574_v56 = vadd.f32 %v573_v54, %v1245_v34  ;;  %vm633_vm5 = vcmp.ge.f32.partialorder %v571_v50, 0.0 }
 0x2a4   :  { %vm636_vm7 = vcmp.ge.f32.partialorder %v582_v53, 0.0  ;;  %v652_v16 = vmul.f32 0.2, %v582_v53  ;;  %v667_v57 = vsel %vm635_vm4, %v579_v48, %v651_v52 }
 0x2a5   :  { %vm634_vm8 = vcmp.ge.f32.partialorder %v574_v56, 0.0  ;;  %v650_v18 = vmul.f32 0.2, %v574_v56  ;;  %v665_v59 = vsel %vm633_vm5, %v571_v50, %v649_v55  ;;  %vm865_vm5 = vcmask 130048  }
 0x2a6   :  { %v668_v58 = vsel %vm636_vm7, %v582_v53, %v652_v16  ;;  %v835_v16 = vld [vmem:[%s1410_s1 + $0x10] sm:$0xff] }
 0x2a7   :  { %v682_v60 = vpack.c.bf16 %v668_v58, %v667_v57  ;;  %v666_v61 = vsel %vm634_vm8, %v574_v56, %v650_v18  ;;  %v1033_v62 = vpop.f32.mrb[20].mxu1  ;;  %v833_v58 = vld [vmem:[%s1410_s1] sm:$0xff] }
 0x2a8   :  { %v681_v63 = vpack.c.bf16 %v666_v61, %v665_v59  ;;  %v595_v0 = vadd.f32 %v1033_v62, %v1245_v34  ;;  %v586_v1 = vpop.f32.mrb[21].mxu1  ;;  %v836_v61 = vld [vmem:[%s1410_s1 + $0x18] sm:$0xff] }
 0x2a9   :  { %v587_v2 = vadd.f32 %v586_v1, %v1245_v34  ;;  %v1034_v3 = vpop.f32.mrb[22].mxu1  ;;  %v834_v1 = vld [vmem:[%s1410_s1 + $0x8] sm:$0xff] }
 0x2aa   :  { %v655_v4 = vmul.f32 0.2, %v595_v0  ;;  %v598_v5 = vadd.f32 %v1034_v3, %v1245_v34  ;;  %v589_v6 = vpop.f32.mrb[23].mxu1  ;;  %1047 = vmatprep.mubr.msk.bf16.mxu0 %vm313_vm6, %v681_v63  ;;  %vm639_vm9 = vcmp.ge.f32.partialorder %v595_v0, 0.0 }
 0x2ab   :  { %v653_v7 = vmul.f32 0.2, %v587_v2  ;;  %v590_v8 = vadd.f32 %v589_v6, %v1245_v34  ;;  %1048 = vmatmul.mubr.msk.bf16.vlgmr.msra.gmra.mrb[16].mxu0 %vm313_vm6, %v682_v60  ;;  %vm637_vm10 = vcmp.ge.f32.partialorder %v587_v2, 0.0 }
 0x2ac   :  { %vm640_vm11 = vcmp.ge.f32.partialorder %v598_v5, 0.0  ;;  %v656_v9 = vmul.f32 0.2, %v598_v5  ;;  %v671_v11 = vsel %vm639_vm9, %v595_v0, %v655_v4 }
 0x2ad   :  { %vm638_vm12 = vcmp.ge.f32.partialorder %v590_v8, 0.0  ;;  %v654_v10 = vmul.f32 0.2, %v590_v8  ;;  %v669_v13 = vsel %vm637_vm10, %v587_v2, %v653_v7  ;;  %v839_v7 = vld [vmem:[%s1410_s1 + $0x30] sm:$0xff] }
 0x2ae   :  { %v672_v12 = vsel %vm640_vm11, %v598_v5, %v656_v9 }
 0x2af   :  { %v684_v14 = vpack.c.bf16 %v672_v12, %v671_v11  ;;  %v670_v15 = vsel %vm638_vm12, %v590_v8, %v654_v10  ;;  %v1037_v17 = vpop.f32.mrb[24].mxu1  ;;  %v837_v10 = vld [vmem:[%s1410_s1 + $0x20] sm:$0xff] }
 0x2b0   :  { %v683_v20 = vpack.c.bf16 %v670_v15, %v669_v13  ;;  %v611_v21 = vadd.f32 %v1037_v17, %v1245_v34  ;;  %v602_v22 = vpop.f32.mrb[25].mxu1  ;;  %v840_v13 = vld [vmem:[%s1410_s1 + $0x38] sm:$0xff] }
 0x2b1   :  { %v603_v23 = vadd.f32 %v602_v22, %v1245_v34  ;;  %v1038_v24 = vpop.f32.mrb[26].mxu1 }
 0x2b2   :  { %v659_v25 = vmul.f32 0.2, %v611_v21  ;;  %v614_v26 = vadd.f32 %v1038_v24, %v1245_v34  ;;  %v605_v27 = vpop.f32.mrb[27].mxu1  ;;  %1051 = vmatprep.mubr.msk.bf16.mxu0 %vm313_vm6, %v683_v20  ;;  %vm643_vm13 = vcmp.ge.f32.partialorder %v611_v21, 0.0  ;;  %v838_v20 = vld [vmem:[%s1410_s1 + $0x28] sm:$0xff] }
 0x2b3   :  { %v657_v28 = vmul.f32 0.2, %v603_v23  ;;  %v606_v29 = vadd.f32 %v605_v27, %v1245_v34  ;;  %1052 = vmatmul.mubr.msk.bf16.gmra.mrb[20].mxu0 %vm313_vm6, %v684_v14  ;;  %vm641_vm14 = vcmp.ge.f32.partialorder %v603_v23, 0.0 }
 0x2b4   :  { %vm644_vm15 = vcmp.ge.f32.partialorder %v614_v26, 0.0  ;;  %v660_v30 = vmul.f32 0.2, %v614_v26  ;;  %v675_v19 = vsel %vm643_vm13, %v611_v21, %v659_v25 }
 0x2b5   :  { %vm642_vm0 = vcmp.ge.f32.partialorder %v606_v29, 0.0  ;;  %v658_v31 = vmul.f32 0.2, %v606_v29  ;;  %v673_v33 = vsel %vm641_vm14, %v603_v23, %v657_v28 }
 0x2b6   :  { %v676_v32 = vsel %vm644_vm15, %v614_v26, %v660_v30  ;;  %v843_v26 = vld [vmem:[%s1410_s1 + $0x50] sm:$0xff] }
 0x2b7   :  { %v686_v35 = vpack.c.bf16 %v676_v32, %v675_v19  ;;  %v674_v36 = vsel %vm642_vm0, %v606_v29, %v658_v31  ;;  %v1041_v37 = vpop.f32.mrb[28].mxu1  ;;  %v841_v29 = vld [vmem:[%s1410_s1 + $0x40] sm:$0xff]  ;;  %v844_v19 = vld [vmem:[%s1410_s1 + $0x58] sm:$0xff] }
 0x2b8   :  { %v685_v38 = vpack.c.bf16 %v674_v36, %v673_v33  ;;  %v627_v39 = vadd.f32 %v1041_v37, %v1245_v34  ;;  %v618_v40 = vpop.f32.mrb[29].mxu1  ;;  %v842_v36 = vld [vmem:[%s1410_s1 + $0x48] sm:$0xff] }
 0x2b9   :  { %v619_v41 = vadd.f32 %v618_v40, %v1245_v34  ;;  %v1042_v42 = vpop.f32.mrb[30].mxu1 }
 0x2ba   :  { %v663_v43 = vmul.f32 0.2, %v627_v39  ;;  %v630_v44 = vadd.f32 %v1042_v42, %v1245_v34  ;;  %v621_v45 = vpop.f32.mrb[31].mxu1  ;;  %1055 = vmatprep.mubr.msk.bf16.mxu0 %vm313_vm6, %v685_v38  ;;  %vm647_vm1 = vcmp.ge.f32.partialorder %v627_v39, 0.0  ;;  %v847_v42 = vld [vmem:[%s1410_s1 + $0x70] sm:$0xff] }
 0x2bb   :  { %v661_v46 = vmul.f32 0.2, %v619_v41  ;;  %v622_v47 = vadd.f32 %v621_v45, %v1245_v34  ;;  %1056 = vmatmul.mubr.msk.bf16.gmra.mrb[24].mxu0 %vm313_vm6, %v686_v35  ;;  %vm645_vm2 = vcmp.ge.f32.partialorder %v619_v41, 0.0  ;;  %v1274_v34 = vld [vmem:[%s1409_s6] ss:$0 sm:$0xff] }
 0x2bc   :  { %vm648_vm3 = vcmp.ge.f32.partialorder %v630_v44, 0.0  ;;  %v664_v48 = vmul.f32 0.2, %v630_v44  ;;  %v679_v50 = vsel %vm647_vm1, %v627_v39, %v663_v43  ;;  %v845_v45 = vld [vmem:[%s1410_s1 + $0x60] sm:$0xff] }
 0x2bd   :  { %vm646_vm4 = vcmp.ge.f32.partialorder %v622_v47, 0.0  ;;  %v662_v49 = vmul.f32 0.2, %v622_v47  ;;  %v677_v52 = vsel %vm645_vm2, %v619_v41, %v661_v46 }
 0x2be   :  { %v680_v51 = vsel %vm648_vm3, %v630_v44, %v664_v48  ;;  %v848_v48 = vld [vmem:[%s1410_s1 + $0x78] sm:$0xff] }
 0x2bf   :  { %v688_v53 = vpack.c.bf16 %v680_v51, %v679_v50  ;;  %v678_v54 = vsel %vm646_vm4, %v622_v47, %v662_v49 }
 0x2c0   :  { %v687_v55 = vpack.c.bf16 %v678_v54, %v677_v52  ;;  %v846_v52 = vld [vmem:[%s1410_s1 + $0x68] sm:$0xff] }
 0x2c2   :  { %1059 = vmatprep.mubr.msk.bf16.mxu0 %vm313_vm6, %v687_v55 }
 0x2c3   :  { %1060 = vmatmul.mubr.msk.bf16.gmra.mrb[28].mxu0 %vm313_vm6, %v688_v53 }
 0x37e   :  { %v1049_v56 = vpop.f32.mrb[16].mxu0 }
 0x37f   :  { %v779_v18 = vadd.f32 %v1049_v56, %v1274_v34  ;;  %v770_v57 = vpop.f32.mrb[17].mxu0 }
 0x380   :  { %v771_v59 = vadd.f32 %v1274_v34, %v770_v57  ;;  %v1050_v60 = vpop.f32.mrb[18].mxu0 }
 0x381   :  { %v851_v62 = vadd.f32 %v835_v16, %v779_v18  ;;  %v782_v63 = vadd.f32 %v1050_v60, %v1274_v34  ;;  %v773_v0 = vpop.f32.mrb[19].mxu0 }
 0x382   :  { %v849_v2 = vadd.f32 %v833_v58, %v771_v59  ;;  %v774_v3 = vadd.f32 %v1274_v34, %v773_v0 }
 0x383   :  { %868 = vst.msk [vmem:[%s1411_s7 + $0x10] sm:$0xff] %vm865_vm5, %v851_v62  ;;  %v852_v4 = vadd.f32 %v836_v61, %v782_v63 }
 0x384   :  { %866 = vst.msk [vmem:[%s1411_s7] sm:$0xff] %vm865_vm5, %v849_v2  ;;  %v850_v5 = vadd.f32 %v834_v1, %v774_v3 }
 0x385   :  { %869 = vst.msk [vmem:[%s1411_s7 + $0x18] sm:$0xff] %vm865_vm5, %v852_v4 }
 0x386   :  { %867 = vst.msk [vmem:[%s1411_s7 + $0x8] sm:$0xff] %vm865_vm5, %v850_v5  ;;  %v1053_v6 = vpop.f32.mrb[20].mxu0 }
 0x387   :  { %v795_v8 = vadd.f32 %v1053_v6, %v1274_v34  ;;  %v786_v9 = vpop.f32.mrb[21].mxu0 }
 0x388   :  { %v787_v11 = vadd.f32 %v1274_v34, %v786_v9  ;;  %v1054_v12 = vpop.f32.mrb[22].mxu0 }
 0x389   :  { %v855_v14 = vadd.f32 %v839_v7, %v795_v8  ;;  %v798_v15 = vadd.f32 %v1054_v12, %v1274_v34  ;;  %v789_v17 = vpop.f32.mrb[23].mxu0 }
 0x38a   :  { %v853_v21 = vadd.f32 %v837_v10, %v787_v11  ;;  %v790_v22 = vadd.f32 %v1274_v34, %v789_v17 }
 0x38b   :  { %872 = vst.msk [vmem:[%s1411_s7 + $0x30] sm:$0xff] %vm865_vm5, %v855_v14  ;;  %v856_v23 = vadd.f32 %v840_v13, %v798_v15 }
 0x38c   :  { %870 = vst.msk [vmem:[%s1411_s7 + $0x20] sm:$0xff] %vm865_vm5, %v853_v21  ;;  %v854_v24 = vadd.f32 %v838_v20, %v790_v22 }
 0x38d   :  { %873 = vst.msk [vmem:[%s1411_s7 + $0x38] sm:$0xff] %vm865_vm5, %v856_v23 }
 0x38e   :  { %871 = vst.msk [vmem:[%s1411_s7 + $0x28] sm:$0xff] %vm865_vm5, %v854_v24  ;;  %v1057_v25 = vpop.f32.mrb[24].mxu0 }
 0x38f   :  { %v811_v27 = vadd.f32 %v1057_v25, %v1274_v34  ;;  %v802_v28 = vpop.f32.mrb[25].mxu0 }
 0x390   :  { %v803_v30 = vadd.f32 %v1274_v34, %v802_v28  ;;  %v1058_v31 = vpop.f32.mrb[26].mxu0 }
 0x391   :  { %v859_v32 = vadd.f32 %v843_v26, %v811_v27  ;;  %v814_v33 = vadd.f32 %v1058_v31, %v1274_v34  ;;  %v805_v35 = vpop.f32.mrb[27].mxu0 }
 0x392   :  { %v857_v37 = vadd.f32 %v841_v29, %v803_v30  ;;  %v806_v38 = vadd.f32 %v1274_v34, %v805_v35 }
 0x393   :  { %876 = vst.msk [vmem:[%s1411_s7 + $0x50] sm:$0xff] %vm865_vm5, %v859_v32  ;;  %v860_v39 = vadd.f32 %v844_v19, %v814_v33 }
 0x394   :  { %874 = vst.msk [vmem:[%s1411_s7 + $0x40] sm:$0xff] %vm865_vm5, %v857_v37  ;;  %v858_v40 = vadd.f32 %v842_v36, %v806_v38 }
 0x395   :  { %877 = vst.msk [vmem:[%s1411_s7 + $0x58] sm:$0xff] %vm865_vm5, %v860_v39 }
 0x396   :  { %875 = vst.msk [vmem:[%s1411_s7 + $0x48] sm:$0xff] %vm865_vm5, %v858_v40  ;;  %v1061_v41 = vpop.f32.mrb[28].mxu0 }
 0x397   :  { %v827_v43 = vadd.f32 %v1061_v41, %v1274_v34  ;;  %v818_v44 = vpop.f32.mrb[29].mxu0 }
 0x398   :  { %v819_v46 = vadd.f32 %v1274_v34, %v818_v44  ;;  %v1062_v47 = vpop.f32.mrb[30].mxu0 }
 0x399   :  { %v863_v49 = vadd.f32 %v847_v42, %v827_v43  ;;  %v830_v50 = vadd.f32 %v1062_v47, %v1274_v34  ;;  %v821_v51 = vpop.f32.mrb[31].mxu0 }
 0x39a   :  { %v861_v53 = vadd.f32 %v845_v45, %v819_v46  ;;  %v822_v54 = vadd.f32 %v1274_v34, %v821_v51 }
 0x39b   :  { %880 = vst.msk [vmem:[%s1411_s7 + $0x70] sm:$0xff] %vm865_vm5, %v863_v49  ;;  %v864_v55 = vadd.f32 %v848_v48, %v830_v50 }
 0x39c   :  { %878 = vst.msk [vmem:[%s1411_s7 + $0x60] sm:$0xff] %vm865_vm5, %v861_v53  ;;  %v862_v56 = vadd.f32 %v846_v52, %v822_v54 }
 0x39d   :  { %881 = vst.msk [vmem:[%s1411_s7 + $0x78] sm:$0xff] %vm865_vm5, %v864_v55 }
 0x39e   :  { %879 = vst.msk [vmem:[%s1411_s7 + $0x68] sm:$0xff] %vm865_vm5, %v862_v56 }

// kernel: deepgcnii_forward.14
= control target key start
LH: loop header
LB: loop body
LE: loop exit
PB: predicated region body
PF: predicated region fallthrough
CT: control target
= control target key end

     0   :  { %vm108_vm0 = vcmask 359424   ;;  %vm133_vm1 = vcmask 1045504   ;;  %v47_v15 = vlaneseq  ;;  %vm310_vm6 = vcmask 261120   ;;  %s1656_s1 = inlined_call_operand.vmem [shape: bf16[44,32], index: 1, kind: input, shape index: {}]   ;;  %s1657_s0 = inlined_call_operand.vmem [shape: bf16[128,44], index: 0, kind: input, shape index: {}]   ;;  %s1658_s3 = inlined_call_operand.vmem [shape: bf16[2,32,32], index: 3, kind: input, shape index: {}]   ;;  %s1659_s2 = inlined_call_operand.vmem [shape: f32[3,32], index: 2, kind: input, shape index: {}]   ;;  %s1660_s4 = inlined_call_operand.vmem [shape: bf16[32,21], index: 4, kind: input, shape index: {}]   ;;  %s1661_s5 = inlined_call_operand.vmem [shape: f32[1,21], index: 5, kind: input, shape index: {}]   ;;  %s1662_s6 = inlined_call_operand.vmem [shape: f32[128,20], index: 6, kind: output, shape index: {}]  }
   0x1   :  { %v1240_v0 = vld [vmem:[%s1656_s1] sm:$0xff]   ;;  %v1241_v1 = vld [vmem:[%s1656_s1 + $0x8] sm:$0xff]   ;;  %v1242_v3 = vld [vmem:[%s1656_s1 + $0x10] sm:$0x3f]  }
   0x2   :  { %1154 = vmatprep.subr.bf16.mxu0 %v1240_v0  ;;  %v1243_v2 = vld [vmem:[%s1657_s0] sm:$0xff]   ;;  %v135_v4 = vsel %vm133_vm1, %v1242_v3, 0  ;;  %v1244_v5 = vld [vmem:[%s1657_s0 + $0x8] sm:$0xff]   ;;  %v1245_v6 = vld [vmem:[%s1657_s0 + $0x10] sm:$0xff]   ;;  %v1407_v16 = vshrl.u32 %v47_v15, 7 }
   0x3   :  { %1155 = vmatpush3.bf16.msra.mxu0 %v1240_v0  ;;  %1160 = vmatprep.mubr.msk.bf16.mxu0 %vm108_vm0, %v1243_v2  ;;  %v1246_v7 = vld [vmem:[%s1657_s0 + $0x18] sm:$0xff]   ;;  %v1247_v8 = vld [vmem:[%s1657_s0 + $0x20] sm:$0xff]   ;;  %v1248_v9 = vld [vmem:[%s1657_s0 + $0x28] sm:$0xff]  }
   0x4   :  { %1156 = vmatprep.subr.bf16.mxu0 %v1241_v1  ;;  %v1249_v10 = vld [vmem:[%s1657_s0 + $0x30] sm:$0xff]   ;;  %v1250_v11 = vld [vmem:[%s1657_s0 + $0x38] sm:$0xff]   ;;  %v1251_v12 = vld [vmem:[%s1658_s3] sm:$0xff]   ;;  %v49_v17 = vsub.s32 0, %v1407_v16 }
   0x5   :  { %1176 = vmatprep.subr.bf16.mxu1 %v1251_v12  ;;  %v1252_v13 = vld [vmem:[%s1658_s3 + $0x8] sm:$0xff]   ;;  %v1253_v14 = vld [vmem:[%s1658_s3 + $0x10] sm:$0xff]   ;;  %v1413_v18 = vld [vmem:[%s1659_s2] sm:$0x7] }
   0x6   :  { %1177 = vmatpush3.bf16.msra.mxu1 %v1251_v12  ;;  %v1416_v19 = vrot.slane %v1413_v18, %v49_v17  ;;  %v1254_v43 = vld [vmem:[%s1658_s3 + $0x18] sm:$0xff]  }
   0x7   :  { %1157 = vmatpush3.bf16.msra.mxu0 %v1241_v1  ;;  %1178 = vmatprep.subr.bf16.mxu1 %v1252_v13 }
   0x8   :  { %1236 = vmatprep.subr.msk.bf16.mxu0 %vm133_vm1, %v1242_v3 }
   0xa   :  { %1179 = vmatpush3.bf16.msra.mxu1 %v1252_v13 }
   0xb   :  { %1159 = vmatpush3.bf16.msra.mxu0 %v135_v4  ;;  %1196 = vmatprep.subr.bf16.mxu1 %v1253_v14 }
   0xe   :  { %1161 = vmatmul.mubr.msk.bf16.vlgmr.msra.gmra.mrb[0].mxu0 %vm108_vm0, %v1244_v5 }
   0xf   :  { %1164 = vmatprep.mubr.msk.bf16.mxu0 %vm108_vm0, %v1245_v6 }
  0x16   :  { %1165 = vmatmul.mubr.msk.bf16.gmra.mrb[4].mxu0 %vm108_vm0, %v1246_v7 }
  0x17   :  { %1168 = vmatprep.mubr.msk.bf16.mxu0 %vm108_vm0, %v1247_v8 }
  0x1e   :  { %1169 = vmatmul.mubr.msk.bf16.gmra.mrb[8].mxu0 %vm108_vm0, %v1248_v9 }
  0x1f   :  { %1172 = vmatprep.mubr.msk.bf16.mxu0 %vm108_vm0, %v1249_v10 }
  0x26   :  { %1173 = vmatmul.mubr.msk.bf16.gmra.mrb[12].mxu0 %vm108_vm0, %v1250_v11 }
  0xe1   :  { %v1162_v20 = vpop.f32.mrb[0].mxu0 }
  0xe2   :  { %v180_v21 = vadd.f32 %v1162_v20, %v1416_v19  ;;  %v171_v22 = vpop.f32.mrb[1].mxu0 }
  0xe3   :  { %v172_v23 = vadd.f32 %v171_v22, %v1416_v19  ;;  %v1163_v24 = vpop.f32.mrb[2].mxu0 }
  0xe4   :  { %v252_v25 = vmul.f32 0.2, %v180_v21  ;;  %v183_v26 = vadd.f32 %v1163_v24, %v1416_v19  ;;  %v174_v27 = vpop.f32.mrb[3].mxu0  ;;  %vm236_vm2 = vcmp.ge.f32.partialorder %v180_v21, 0.0 }
  0xe5   :  { %v250_v28 = vmul.f32 0.2, %v172_v23  ;;  %v175_v29 = vadd.f32 %v174_v27, %v1416_v19  ;;  %vm234_vm4 = vcmp.ge.f32.partialorder %v172_v23, 0.0 }
  0xe6   :  { %vm237_vm3 = vcmp.ge.f32.partialorder %v183_v26, 0.0  ;;  %v253_v30 = vmul.f32 0.2, %v183_v26  ;;  %v268_v32 = vsel %vm236_vm2, %v180_v21, %v252_v25 }
  0xe7   :  { %v251_v31 = vmul.f32 0.2, %v175_v29  ;;  %vm235_vm5 = vcmp.ge.f32.partialorder %v175_v29, 0.0  ;;  %v266_v36 = vsel %vm234_vm4, %v172_v23, %v250_v28 }
  0xe8   :  { %v269_v33 = vsel %vm237_vm3, %v183_v26, %v253_v30 }
  0xe9   :  { %v283_v34 = vpack.c.bf16 %v269_v33, %v268_v32  ;;  %v1166_v35 = vpop.f32.mrb[4].mxu0  ;;  %v267_v37 = vsel %vm235_vm5, %v175_v29, %v251_v31  ;;  %v1256_v32 = vld [vmem:[%s1660_s4 + $0x8] sm:$0xff]   ;;  %v296_v33 = vsub.s32 1, %v1407_v16 }
  0xea   :  { %v196_v38 = vadd.f32 %v1166_v35, %v1416_v19  ;;  %v187_v39 = vpop.f32.mrb[5].mxu0  ;;  %v282_v40 = vpack.c.bf16 %v267_v37, %v266_v36 }
  0xeb   :  { %v188_v41 = vadd.f32 %v187_v39, %v1416_v19  ;;  %v1167_v42 = vpop.f32.mrb[6].mxu0 }
  0xec   :  { %v256_v44 = vmul.f32 0.2, %v196_v38  ;;  %v199_v45 = vadd.f32 %v1167_v42, %v1416_v19  ;;  %v190_v46 = vpop.f32.mrb[7].mxu0  ;;  %1180 = vmatprep.mubr.msk.bf16.mxu1 %vm310_vm6, %v282_v40  ;;  %vm240_vm7 = vcmp.ge.f32.partialorder %v196_v38, 0.0 }
  0xed   :  { %v254_v47 = vmul.f32 0.2, %v188_v41  ;;  %v191_v48 = vadd.f32 %v190_v46, %v1416_v19  ;;  %1181 = vmatmul.mubr.msk.bf16.vlgmr.msra.gmra.mrb[0].mxu1 %vm310_vm6, %v283_v34  ;;  %vm238_vm8 = vcmp.ge.f32.partialorder %v188_v41, 0.0  ;;  %v1453_v34 = vrot.slane %v1413_v18, %v296_v33 }
  0xee   :  { %vm241_vm9 = vcmp.ge.f32.partialorder %v199_v45, 0.0  ;;  %v257_v49 = vmul.f32 0.2, %v199_v45  ;;  %1197 = vmatpush3.bf16.msra.mxu1 %v1253_v14  ;;  %v272_v51 = vsel %vm240_vm7, %v196_v38, %v256_v44 }
  0xef   :  { %vm239_vm10 = vcmp.ge.f32.partialorder %v191_v48, 0.0  ;;  %v255_v50 = vmul.f32 0.2, %v191_v48  ;;  %1198 = vmatprep.subr.bf16.mxu1 %v1254_v43  ;;  %v270_v53 = vsel %vm238_vm8, %v188_v41, %v254_v47 }
  0xf0   :  { %v273_v52 = vsel %vm241_vm9, %v199_v45, %v257_v49 }
  0xf1   :  { %v285_v54 = vpack.c.bf16 %v273_v52, %v272_v51  ;;  %v271_v55 = vsel %vm239_vm10, %v191_v48, %v255_v50  ;;  %v1170_v56 = vpop.f32.mrb[8].mxu0 }
  0xf2   :  { %v284_v57 = vpack.c.bf16 %v271_v55, %v270_v53  ;;  %v212_v58 = vadd.f32 %v1170_v56, %v1416_v19  ;;  %v203_v59 = vpop.f32.mrb[9].mxu0  ;;  %1199 = vmatpush3.bf16.msra.mxu1 %v1254_v43 }
  0xf3   :  { %v204_v60 = vadd.f32 %v203_v59, %v1416_v19  ;;  %v1171_v61 = vpop.f32.mrb[10].mxu0 }
  0xf4   :  { %v260_v62 = vmul.f32 0.2, %v212_v58  ;;  %v215_v63 = vadd.f32 %v1171_v61, %v1416_v19  ;;  %v206_v0 = vpop.f32.mrb[11].mxu0  ;;  %1184 = vmatprep.mubr.msk.bf16.mxu1 %vm310_vm6, %v284_v57  ;;  %vm244_vm11 = vcmp.ge.f32.partialorder %v212_v58, 0.0 }
  0xf5   :  { %v258_v1 = vmul.f32 0.2, %v204_v60  ;;  %v207_v2 = vadd.f32 %v206_v0, %v1416_v19  ;;  %1185 = vmatmul.mubr.msk.bf16.gmra.mrb[4].mxu1 %vm310_vm6, %v285_v54  ;;  %vm242_vm12 = vcmp.ge.f32.partialorder %v204_v60, 0.0 }
  0xf6   :  { %vm245_vm13 = vcmp.ge.f32.partialorder %v215_v63, 0.0  ;;  %v261_v3 = vmul.f32 0.2, %v215_v63  ;;  %v276_v5 = vsel %vm244_vm11, %v212_v58, %v260_v62 }
  0xf7   :  { %vm243_vm14 = vcmp.ge.f32.partialorder %v207_v2, 0.0  ;;  %v259_v4 = vmul.f32 0.2, %v207_v2  ;;  %v274_v7 = vsel %vm242_vm12, %v204_v60, %v258_v1 }
  0xf8   :  { %v277_v6 = vsel %vm245_vm13, %v215_v63, %v261_v3 }
  0xf9   :  { %v287_v8 = vpack.c.bf16 %v277_v6, %v276_v5  ;;  %v275_v9 = vsel %vm243_vm14, %v207_v2, %v259_v4  ;;  %v1174_v10 = vpop.f32.mrb[12].mxu0 }
  0xfa   :  { %v286_v11 = vpack.c.bf16 %v275_v9, %v274_v7  ;;  %v228_v12 = vadd.f32 %v1174_v10, %v1416_v19  ;;  %v219_v13 = vpop.f32.mrb[13].mxu0 }
  0xfb   :  { %v220_v14 = vadd.f32 %v219_v13, %v1416_v19  ;;  %v1175_v15 = vpop.f32.mrb[14].mxu0 }
  0xfc   :  { %v264_v17 = vmul.f32 0.2, %v228_v12  ;;  %v231_v20 = vadd.f32 %v1175_v15, %v1416_v19  ;;  %v222_v21 = vpop.f32.mrb[15].mxu0  ;;  %1188 = vmatprep.mubr.msk.bf16.mxu1 %vm310_vm6, %v286_v11  ;;  %vm248_vm15 = vcmp.ge.f32.partialorder %v228_v12, 0.0 }
  0xfd   :  { %v262_v22 = vmul.f32 0.2, %v220_v14  ;;  %v223_v23 = vadd.f32 %v222_v21, %v1416_v19  ;;  %1189 = vmatmul.mubr.msk.bf16.gmra.mrb[8].mxu1 %vm310_vm6, %v287_v8  ;;  %vm246_vm0 = vcmp.ge.f32.partialorder %v220_v14, 0.0  ;;  %v1255_v19 = vld [vmem:[%s1660_s4] sm:$0xff]  }
  0xfe   :  { %vm249_vm1 = vcmp.ge.f32.partialorder %v231_v20, 0.0  ;;  %v265_v24 = vmul.f32 0.2, %v231_v20  ;;  %v280_v26 = vsel %vm248_vm15, %v228_v12, %v264_v17  ;;  %1216 = vmatprep.subr.bf16.mxu0 %v1255_v19 }
  0xff   :  { %vm247_vm2 = vcmp.ge.f32.partialorder %v223_v23, 0.0  ;;  %v263_v25 = vmul.f32 0.2, %v223_v23  ;;  %v278_v28 = vsel %vm246_vm0, %v220_v14, %v262_v22  ;;  %1217 = vmatpush3.bf16.msra.mxu0 %v1255_v19 }
 0x100   :  { %v281_v27 = vsel %vm249_vm1, %v231_v20, %v265_v24  ;;  %1218 = vmatprep.subr.bf16.mxu0 %v1256_v32 }
 0x101   :  { %v289_v29 = vpack.c.bf16 %v281_v27, %v280_v26  ;;  %v279_v30 = vsel %vm247_vm2, %v223_v23, %v263_v25 }
 0x102   :  { %v288_v31 = vpack.c.bf16 %v279_v30, %v278_v28 }
 0x103   :  { %1219 = vmatpush3.bf16.msra.mxu0 %v1256_v32 }
 0x104   :  { %1192 = vmatprep.mubr.msk.bf16.mxu1 %vm310_vm6, %v288_v31 }
 0x105   :  { %1193 = vmatmul.mubr.msk.bf16.gmra.mrb[12].mxu1 %vm310_vm6, %v289_v29 }
 0x1c0   :  { %v1182_v35 = vpop.f32.mrb[0].mxu1 }
 0x1c1   :  { %v378_v36 = vadd.f32 %v1182_v35, %v1453_v34  ;;  %v369_v37 = vpop.f32.mrb[1].mxu1 }
 0x1c2   :  { %v370_v38 = vadd.f32 %v369_v37, %v1453_v34  ;;  %v1183_v39 = vpop.f32.mrb[2].mxu1 }
 0x1c3   :  { %v450_v40 = vmul.f32 0.2, %v378_v36  ;;  %v381_v41 = vadd.f32 %v1183_v39, %v1453_v34  ;;  %v372_v42 = vpop.f32.mrb[3].mxu1  ;;  %vm434_vm3 = vcmp.ge.f32.partialorder %v378_v36, 0.0 }
 0x1c4   :  { %v448_v43 = vmul.f32 0.2, %v370_v38  ;;  %v373_v44 = vadd.f32 %v372_v42, %v1453_v34  ;;  %vm432_vm4 = vcmp.ge.f32.partialorder %v370_v38, 0.0 }
 0x1c5   :  { %vm435_vm5 = vcmp.ge.f32.partialorder %v381_v41, 0.0  ;;  %v451_v45 = vmul.f32 0.2, %v381_v41  ;;  %v466_v47 = vsel %vm434_vm3, %v378_v36, %v450_v40 }
 0x1c6   :  { %vm433_vm7 = vcmp.ge.f32.partialorder %v373_v44, 0.0  ;;  %v449_v46 = vmul.f32 0.2, %v373_v44  ;;  %v464_v49 = vsel %vm432_vm4, %v370_v38, %v448_v43 }
 0x1c7   :  { %v467_v48 = vsel %vm435_vm5, %v381_v41, %v451_v45 }
 0x1c8   :  { %v481_v50 = vpack.c.bf16 %v467_v48, %v466_v47  ;;  %v465_v51 = vsel %vm433_vm7, %v373_v44, %v449_v46  ;;  %v1186_v52 = vpop.f32.mrb[4].mxu1  ;;  %v495_v46 = vsub.s32 2, %v1407_v16 }
 0x1c9   :  { %v480_v53 = vpack.c.bf16 %v465_v51, %v464_v49  ;;  %v394_v54 = vadd.f32 %v1186_v52, %v1453_v34  ;;  %v385_v55 = vpop.f32.mrb[5].mxu1 }
 0x1ca   :  { %v386_v56 = vadd.f32 %v385_v55, %v1453_v34  ;;  %v1187_v57 = vpop.f32.mrb[6].mxu1 }
 0x1cb   :  { %v454_v58 = vmul.f32 0.2, %v394_v54  ;;  %v397_v59 = vadd.f32 %v1187_v57, %v1453_v34  ;;  %v388_v60 = vpop.f32.mrb[7].mxu1  ;;  %1200 = vmatprep.mubr.msk.bf16.mxu1 %vm310_vm6, %v480_v53  ;;  %vm438_vm8 = vcmp.ge.f32.partialorder %v394_v54, 0.0 }
 0x1cc   :  { %v452_v61 = vmul.f32 0.2, %v386_v56  ;;  %v389_v62 = vadd.f32 %v388_v60, %v1453_v34  ;;  %1201 = vmatmul.mubr.msk.bf16.vlgmr.msra.gmra.mrb[16].mxu1 %vm310_vm6, %v481_v50  ;;  %vm436_vm9 = vcmp.ge.f32.partialorder %v386_v56, 0.0 }
 0x1cd   :  { %vm439_vm10 = vcmp.ge.f32.partialorder %v397_v59, 0.0  ;;  %v455_v63 = vmul.f32 0.2, %v397_v59  ;;  %v470_v1 = vsel %vm438_vm8, %v394_v54, %v454_v58 }
 0x1ce   :  { %vm437_vm11 = vcmp.ge.f32.partialorder %v389_v62, 0.0  ;;  %v453_v0 = vmul.f32 0.2, %v389_v62  ;;  %v468_v3 = vsel %vm436_vm9, %v386_v56, %v452_v61 }
 0x1cf   :  { %v471_v2 = vsel %vm439_vm10, %v397_v59, %v455_v63 }
 0x1d0   :  { %v483_v4 = vpack.c.bf16 %v471_v2, %v470_v1  ;;  %v469_v5 = vsel %vm437_vm11, %v389_v62, %v453_v0  ;;  %v1190_v6 = vpop.f32.mrb[8].mxu1 }
 0x1d1   :  { %v482_v7 = vpack.c.bf16 %v469_v5, %v468_v3  ;;  %v410_v8 = vadd.f32 %v1190_v6, %v1453_v34  ;;  %v401_v9 = vpop.f32.mrb[9].mxu1 }
 0x1d2   :  { %v402_v10 = vadd.f32 %v401_v9, %v1453_v34  ;;  %v1191_v11 = vpop.f32.mrb[10].mxu1 }
 0x1d3   :  { %v458_v12 = vmul.f32 0.2, %v410_v8  ;;  %v413_v13 = vadd.f32 %v1191_v11, %v1453_v34  ;;  %v404_v14 = vpop.f32.mrb[11].mxu1  ;;  %1204 = vmatprep.mubr.msk.bf16.mxu1 %vm310_vm6, %v482_v7  ;;  %vm442_vm12 = vcmp.ge.f32.partialorder %v410_v8, 0.0 }
 0x1d4   :  { %v456_v15 = vmul.f32 0.2, %v402_v10  ;;  %v405_v17 = vadd.f32 %v404_v14, %v1453_v34  ;;  %1205 = vmatmul.mubr.msk.bf16.gmra.mrb[20].mxu1 %vm310_vm6, %v483_v4  ;;  %vm440_vm13 = vcmp.ge.f32.partialorder %v402_v10, 0.0 }
 0x1d5   :  { %vm443_vm14 = vcmp.ge.f32.partialorder %v413_v13, 0.0  ;;  %v459_v20 = vmul.f32 0.2, %v413_v13  ;;  %v474_v22 = vsel %vm442_vm12, %v410_v8, %v458_v12 }
 0x1d6   :  { %vm441_vm15 = vcmp.ge.f32.partialorder %v405_v17, 0.0  ;;  %v457_v21 = vmul.f32 0.2, %v405_v17  ;;  %v472_v24 = vsel %vm440_vm13, %v402_v10, %v456_v15 }
 0x1d7   :  { %v475_v23 = vsel %vm443_vm14, %v413_v13, %v459_v20 }
 0x1d8   :  { %v485_v25 = vpack.c.bf16 %v475_v23, %v474_v22  ;;  %v473_v26 = vsel %vm441_vm15, %v405_v17, %v457_v21  ;;  %v1194_v27 = vpop.f32.mrb[12].mxu1 }
 0x1d9   :  { %v484_v28 = vpack.c.bf16 %v473_v26, %v472_v24  ;;  %v426_v29 = vadd.f32 %v1194_v27, %v1453_v34  ;;  %v417_v30 = vpop.f32.mrb[13].mxu1 }
 0x1da   :  { %v418_v31 = vadd.f32 %v417_v30, %v1453_v34  ;;  %v1195_v19 = vpop.f32.mrb[14].mxu1 }
 0x1db   :  { %v462_v32 = vmul.f32 0.2, %v426_v29  ;;  %v429_v33 = vadd.f32 %v1195_v19, %v1453_v34  ;;  %v420_v35 = vpop.f32.mrb[15].mxu1  ;;  %1208 = vmatprep.mubr.msk.bf16.mxu1 %vm310_vm6, %v484_v28  ;;  %vm446_vm0 = vcmp.ge.f32.partialorder %v426_v29, 0.0 }
 0x1dc   :  { %v460_v36 = vmul.f32 0.2, %v418_v31  ;;  %v421_v37 = vadd.f32 %v420_v35, %v1453_v34  ;;  %1209 = vmatmul.mubr.msk.bf16.gmra.mrb[24].mxu1 %vm310_vm6, %v485_v25  ;;  %vm444_vm1 = vcmp.ge.f32.partialorder %v418_v31, 0.0  ;;  %v1481_v34 = vrot.slane %v1413_v18, %v495_v46 }
 0x1dd   :  { %vm447_vm2 = vcmp.ge.f32.partialorder %v429_v33, 0.0  ;;  %v463_v38 = vmul.f32 0.2, %v429_v33  ;;  %v478_v40 = vsel %vm446_vm0, %v426_v29, %v462_v32 }
 0x1de   :  { %vm445_vm3 = vcmp.ge.f32.partialorder %v421_v37, 0.0  ;;  %v461_v39 = vmul.f32 0.2, %v421_v37  ;;  %v476_v42 = vsel %vm444_vm1, %v418_v31, %v460_v36 }
 0x1df   :  { %v479_v41 = vsel %vm447_vm2, %v429_v33, %v463_v38 }
 0x1e0   :  { %v487_v43 = vpack.c.bf16 %v479_v41, %v478_v40  ;;  %v477_v44 = vsel %vm445_vm3, %v421_v37, %v461_v39 }
 0x1e1   :  { %v486_v45 = vpack.c.bf16 %v477_v44, %v476_v42 }
 0x1e3   :  { %1212 = vmatprep.mubr.msk.bf16.mxu1 %vm310_vm6, %v486_v45 }
 0x1e4   :  { %1213 = vmatmul.mubr.msk.bf16.gmra.mrb[28].mxu1 %vm310_vm6, %v487_v43 }
 0x29f   :  { %v1202_v47 = vpop.f32.mrb[16].mxu1 }
 0x2a0   :  { %v576_v48 = vadd.f32 %v1202_v47, %v1481_v34  ;;  %v567_v49 = vpop.f32.mrb[17].mxu1 }
 0x2a1   :  { %v568_v50 = vadd.f32 %v567_v49, %v1481_v34  ;;  %v1203_v51 = vpop.f32.mrb[18].mxu1 }
 0x2a2   :  { %v648_v52 = vmul.f32 0.2, %v576_v48  ;;  %v579_v53 = vadd.f32 %v1203_v51, %v1481_v34  ;;  %v570_v54 = vpop.f32.mrb[19].mxu1  ;;  %vm632_vm4 = vcmp.ge.f32.partialorder %v576_v48, 0.0 }
 0x2a3   :  { %v646_v55 = vmul.f32 0.2, %v568_v50  ;;  %v571_v56 = vadd.f32 %v570_v54, %v1481_v34  ;;  %vm630_vm5 = vcmp.ge.f32.partialorder %v568_v50, 0.0 }
 0x2a4   :  { %vm633_vm7 = vcmp.ge.f32.partialorder %v579_v53, 0.0  ;;  %v649_v16 = vmul.f32 0.2, %v579_v53  ;;  %v664_v57 = vsel %vm632_vm4, %v576_v48, %v648_v52 }
 0x2a5   :  { %vm631_vm8 = vcmp.ge.f32.partialorder %v571_v56, 0.0  ;;  %v647_v18 = vmul.f32 0.2, %v571_v56  ;;  %v662_v59 = vsel %vm630_vm5, %v568_v50, %v646_v55 }
 0x2a6   :  { %v665_v58 = vsel %vm633_vm7, %v579_v53, %v649_v16 }
 0x2a7   :  { %v679_v60 = vpack.c.bf16 %v665_v58, %v664_v57  ;;  %v663_v61 = vsel %vm631_vm8, %v571_v56, %v647_v18  ;;  %v1206_v62 = vpop.f32.mrb[20].mxu1  ;;  %v1321_v56 = vmov 20  }
 0x2a8   :  { %v678_v63 = vpack.c.bf16 %v663_v61, %v662_v59  ;;  %v592_v0 = vadd.f32 %v1206_v62, %v1481_v34  ;;  %v583_v1 = vpop.f32.mrb[21].mxu1  ;;  %1238 = vset.pattern.permute.xlu1 %v1321_v56  ;;  %1239 = vset.pattern.permute.xlu0 %v1321_v56 }
 0x2a9   :  { %v584_v2 = vadd.f32 %v583_v1, %v1481_v34  ;;  %v1207_v3 = vpop.f32.mrb[22].mxu1 }
 0x2aa   :  { %v652_v4 = vmul.f32 0.2, %v592_v0  ;;  %v595_v5 = vadd.f32 %v1207_v3, %v1481_v34  ;;  %v586_v6 = vpop.f32.mrb[23].mxu1  ;;  %1220 = vmatprep.mubr.msk.bf16.mxu0 %vm310_vm6, %v678_v63  ;;  %vm636_vm9 = vcmp.ge.f32.partialorder %v592_v0, 0.0 }
 0x2ab   :  { %v650_v7 = vmul.f32 0.2, %v584_v2  ;;  %v587_v8 = vadd.f32 %v586_v6, %v1481_v34  ;;  %1221 = vmatmul.mubr.msk.bf16.vlgmr.msra.gmra.mrb[16].mxu0 %vm310_vm6, %v679_v60  ;;  %vm634_vm10 = vcmp.ge.f32.partialorder %v584_v2, 0.0 }
 0x2ac   :  { %vm637_vm11 = vcmp.ge.f32.partialorder %v595_v5, 0.0  ;;  %v653_v9 = vmul.f32 0.2, %v595_v5  ;;  %v668_v11 = vsel %vm636_vm9, %v592_v0, %v652_v4 }
 0x2ad   :  { %vm635_vm12 = vcmp.ge.f32.partialorder %v587_v8, 0.0  ;;  %v651_v10 = vmul.f32 0.2, %v587_v8  ;;  %v666_v13 = vsel %vm634_vm10, %v584_v2, %v650_v7 }
 0x2ae   :  { %v669_v12 = vsel %vm637_vm11, %v595_v5, %v653_v9 }
 0x2af   :  { %v681_v14 = vpack.c.bf16 %v669_v12, %v668_v11  ;;  %v667_v15 = vsel %vm635_vm12, %v587_v8, %v651_v10  ;;  %v1210_v17 = vpop.f32.mrb[24].mxu1 }
 0x2b0   :  { %v680_v20 = vpack.c.bf16 %v667_v15, %v666_v13  ;;  %v608_v21 = vadd.f32 %v1210_v17, %v1481_v34  ;;  %v599_v22 = vpop.f32.mrb[25].mxu1 }
 0x2b1   :  { %v600_v23 = vadd.f32 %v599_v22, %v1481_v34  ;;  %v1211_v24 = vpop.f32.mrb[26].mxu1 }
 0x2b2   :  { %v656_v25 = vmul.f32 0.2, %v608_v21  ;;  %v611_v26 = vadd.f32 %v1211_v24, %v1481_v34  ;;  %v602_v27 = vpop.f32.mrb[27].mxu1  ;;  %1224 = vmatprep.mubr.msk.bf16.mxu0 %vm310_vm6, %v680_v20  ;;  %vm640_vm13 = vcmp.ge.f32.partialorder %v608_v21, 0.0 }
 0x2b3   :  { %v654_v28 = vmul.f32 0.2, %v600_v23  ;;  %v603_v29 = vadd.f32 %v602_v27, %v1481_v34  ;;  %1225 = vmatmul.mubr.msk.bf16.gmra.mrb[20].mxu0 %vm310_vm6, %v681_v14  ;;  %vm638_vm14 = vcmp.ge.f32.partialorder %v600_v23, 0.0 }
 0x2b4   :  { %vm641_vm15 = vcmp.ge.f32.partialorder %v611_v26, 0.0  ;;  %v657_v30 = vmul.f32 0.2, %v611_v26  ;;  %v672_v19 = vsel %vm640_vm13, %v608_v21, %v656_v25 }
 0x2b5   :  { %vm639_vm0 = vcmp.ge.f32.partialorder %v603_v29, 0.0  ;;  %v655_v31 = vmul.f32 0.2, %v603_v29  ;;  %v670_v33 = vsel %vm638_vm14, %v600_v23, %v654_v28 }
 0x2b6   :  { %v673_v32 = vsel %vm641_vm15, %v611_v26, %v657_v30 }
 0x2b7   :  { %v683_v35 = vpack.c.bf16 %v673_v32, %v672_v19  ;;  %v671_v36 = vsel %vm639_vm0, %v603_v29, %v655_v31  ;;  %v1214_v37 = vpop.f32.mrb[28].mxu1 }
 0x2b8   :  { %v682_v38 = vpack.c.bf16 %v671_v36, %v670_v33  ;;  %v624_v39 = vadd.f32 %v1214_v37, %v1481_v34  ;;  %v615_v40 = vpop.f32.mrb[29].mxu1 }
 0x2b9   :  { %v616_v41 = vadd.f32 %v615_v40, %v1481_v34  ;;  %v1215_v42 = vpop.f32.mrb[30].mxu1 }
 0x2ba   :  { %v660_v43 = vmul.f32 0.2, %v624_v39  ;;  %v627_v44 = vadd.f32 %v1215_v42, %v1481_v34  ;;  %v618_v45 = vpop.f32.mrb[31].mxu1  ;;  %1228 = vmatprep.mubr.msk.bf16.mxu0 %vm310_vm6, %v682_v38  ;;  %vm644_vm1 = vcmp.ge.f32.partialorder %v624_v39, 0.0 }
 0x2bb   :  { %v658_v46 = vmul.f32 0.2, %v616_v41  ;;  %v619_v47 = vadd.f32 %v618_v45, %v1481_v34  ;;  %1229 = vmatmul.mubr.msk.bf16.gmra.mrb[24].mxu0 %vm310_vm6, %v683_v35  ;;  %vm642_vm2 = vcmp.ge.f32.partialorder %v616_v41, 0.0  ;;  %v1510_v34 = vld [vmem:[%s1661_s5] ss:$0 sm:$0xff] }
 0x2bc   :  { %vm645_vm3 = vcmp.ge.f32.partialorder %v627_v44, 0.0  ;;  %v661_v48 = vmul.f32 0.2, %v627_v44  ;;  %v676_v50 = vsel %vm644_vm1, %v624_v39, %v660_v43 }
 0x2bd   :  { %vm643_vm4 = vcmp.ge.f32.partialorder %v619_v47, 0.0  ;;  %v659_v49 = vmul.f32 0.2, %v619_v47  ;;  %v674_v52 = vsel %vm642_vm2, %v616_v41, %v658_v46 }
 0x2be   :  { %v677_v51 = vsel %vm645_vm3, %v627_v44, %v661_v48 }
 0x2bf   :  { %v685_v53 = vpack.c.bf16 %v677_v51, %v676_v50  ;;  %v675_v54 = vsel %vm643_vm4, %v619_v47, %v659_v49 }
 0x2c0   :  { %v684_v55 = vpack.c.bf16 %v675_v54, %v674_v52 }
 0x2c2   :  { %1232 = vmatprep.mubr.msk.bf16.mxu0 %vm310_vm6, %v684_v55 }
 0x2c3   :  { %1233 = vmatmul.mubr.msk.bf16.gmra.mrb[28].mxu0 %vm310_vm6, %v685_v53  ;;  %vm1022_vm6 = vcmask 162816  }
 0x37e   :  { %v1222_v16 = vpop.f32.mrb[16].mxu0 }
 0x37f   :  { %v1513_v18 = vadd.f32 %v1222_v16, %v1510_v34  ;;  %v767_v57 = vpop.f32.mrb[17].mxu0 }
 0x380   :  { %v1516_v58 = vadd.f32 %v1510_v34, %v767_v57  ;;  %v1223_v59 = vpop.f32.mrb[18].mxu0 }
 0x381   :  { %v1099_v60 = vmul.f32 -1.442695, %v1513_v18  ;;  %v1520_v61 = vadd.f32 %v1223_v59, %v1510_v34  ;;  %v770_v62 = vpop.f32.mrb[19].mxu0 }
 0x382   :  { %v1097_v63 = vmul.f32 -1.442695, %v1516_v58  ;;  %v1524_v0 = vadd.f32 %v1510_v34, %v770_v62 }
 0x383   :  { %1257 = vpow2.f32 %v1099_v60  ;;  %v1100_v1 = vmul.f32 -1.442695, %v1520_v61 }
 0x384   :  { %1259 = vpow2.f32 %v1097_v63  ;;  %v1098_v2 = vmul.f32 -1.442695, %v1524_v0 }
 0x385   :  { %1261 = vpow2.f32 %v1100_v1 }
 0x386   :  { %1263 = vpow2.f32 %v1098_v2  ;;  %v1226_v3 = vpop.f32.mrb[20].mxu0 }
 0x387   :  { %v1529_v4 = vadd.f32 %v1226_v3, %v1510_v34  ;;  %v783_v5 = vpop.f32.mrb[21].mxu0 }
 0x388   :  { %v1532_v6 = vadd.f32 %v1510_v34, %v783_v5  ;;  %v1227_v7 = vpop.f32.mrb[22].mxu0 }
 0x389   :  { %v1103_v8 = vmul.f32 -1.442695, %v1529_v4  ;;  %v1536_v9 = vadd.f32 %v1227_v7, %v1510_v34  ;;  %v786_v10 = vpop.f32.mrb[23].mxu0 }
 0x38a   :  { %v1101_v11 = vmul.f32 -1.442695, %v1532_v6  ;;  %v1540_v12 = vadd.f32 %v1510_v34, %v786_v10 }
 0x38b   :  { %1265 = vpow2.f32 %v1103_v8  ;;  %v1104_v13 = vmul.f32 -1.442695, %v1536_v9 }
 0x38c   :  { %1267 = vpow2.f32 %v1101_v11  ;;  %v1102_v14 = vmul.f32 -1.442695, %v1540_v12 }
 0x38d   :  { %v1258_v15 = vpop.eup %1257  ;;  %1269 = vpow2.f32 %v1104_v13 }
 0x38e   :  { %v1260_v17 = vpop.eup %1259  ;;  %v880_v20 = vadd.f32 1.0, %v1258_v15  ;;  %1271 = vpow2.f32 %v1102_v14  ;;  %v1230_v21 = vpop.f32.mrb[24].mxu0 }
 0x38f   :  { %v1262_v22 = vpop.eup %1261  ;;  %v878_v23 = vadd.f32 1.0, %v1260_v17  ;;  %v1545_v24 = vadd.f32 %v1230_v21, %v1510_v34  ;;  %v799_v25 = vpop.f32.mrb[25].mxu0 }
 0x390   :  { %v1264_v26 = vpop.eup %1263  ;;  %1273 = vrcp.f32 %v880_v20  ;;  %v881_v27 = vadd.f32 1.0, %v1262_v22  ;;  %v1548_v28 = vadd.f32 %v1510_v34, %v799_v25  ;;  %v1231_v29 = vpop.f32.mrb[26].mxu0 }
 0x391   :  { %1275 = vrcp.f32 %v878_v23  ;;  %v879_v30 = vadd.f32 1.0, %v1264_v26  ;;  %v1107_v31 = vmul.f32 -1.442695, %v1545_v24  ;;  %v1552_v19 = vadd.f32 %v1231_v29, %v1510_v34  ;;  %v802_v32 = vpop.f32.mrb[27].mxu0 }
 0x392   :  { %1277 = vrcp.f32 %v881_v27  ;;  %v1105_v33 = vmul.f32 -1.442695, %v1548_v28  ;;  %v1556_v35 = vadd.f32 %v1510_v34, %v802_v32 }
 0x393   :  { %1279 = vrcp.f32 %v879_v30  ;;  %v1108_v36 = vmul.f32 -1.442695, %v1552_v19 }
 0x394   :  { %1281 = vpow2.f32 %v1107_v31  ;;  %v1106_v37 = vmul.f32 -1.442695, %v1556_v35 }
 0x395   :  { %v1266_v38 = vpop.eup %1265  ;;  %1283 = vpow2.f32 %v1105_v33 }
 0x396   :  { %v1268_v39 = vpop.eup %1267  ;;  %v884_v40 = vadd.f32 1.0, %v1266_v38  ;;  %1285 = vpow2.f32 %v1108_v36  ;;  %v1234_v41 = vpop.f32.mrb[28].mxu0 }
 0x397   :  { %v1270_v42 = vpop.eup %1269  ;;  %v882_v43 = vadd.f32 1.0, %v1268_v39  ;;  %1287 = vpow2.f32 %v1106_v37  ;;  %v1561_v44 = vadd.f32 %v1234_v41, %v1510_v34  ;;  %v815_v45 = vpop.f32.mrb[29].mxu0 }
 0x398   :  { %v1272_v46 = vpop.eup %1271  ;;  %1289 = vrcp.f32 %v884_v40  ;;  %v885_v47 = vadd.f32 1.0, %v1270_v42  ;;  %v1564_v48 = vadd.f32 %v1510_v34, %v815_v45  ;;  %v1235_v49 = vpop.f32.mrb[30].mxu0 }
 0x399   :  { %1291 = vrcp.f32 %v882_v43  ;;  %v883_v50 = vadd.f32 1.0, %v1272_v46  ;;  %v1111_v51 = vmul.f32 -1.442695, %v1561_v44  ;;  %v1568_v52 = vadd.f32 %v1235_v49, %v1510_v34  ;;  %v818_v53 = vpop.f32.mrb[31].mxu0 }
 0x39a   :  { %v1274_v54 = vpop.eup %1273  ;;  %1293 = vrcp.f32 %v885_v47  ;;  %v1109_v55 = vmul.f32 -1.442695, %v1564_v48  ;;  %v1572_v56 = vadd.f32 %v1510_v34, %v818_v53 }
 0x39b   :  { %v1276_v16 = vpop.eup %1275  ;;  %1295 = vrcp.f32 %v883_v50  ;;  %v1112_v57 = vmul.f32 -1.442695, %v1568_v52  ;;  %938 = vperm.xlu1 %1238, %v1274_v54  }
 0x39c   :  { %v1278_v59 = vpop.eup %1277  ;;  %1297 = vpow2.f32 %v1111_v51  ;;  %v1110_v60 = vmul.f32 -1.442695, %v1572_v56  ;;  %928 = vperm.xlu0 %1239, %v1276_v16  }
 0x39d   :  { %v1280_v62 = vpop.eup %1279  ;;  %1299 = vpow2.f32 %v1109_v55 }
 0x39e   :  { %v1282_v63 = vpop.eup %1281  ;;  %1301 = vpow2.f32 %v1112_v57 }
 0x39f   :  { %v1284_v1 = vpop.eup %1283  ;;  %v888_v2 = vadd.f32 1.0, %v1282_v63  ;;  %1303 = vpow2.f32 %v1110_v60  ;;  %943 = vperm.xlu1 %1238, %v1278_v59  }
 0x3a0   :  { %v1286_v34 = vpop.eup %1285  ;;  %933 = vperm.xlu0 %1239, %v1280_v62   ;;  %v886_v5 = vadd.f32 1.0, %v1284_v1 }
 0x3a1   :  { %v1288_v3 = vpop.eup %1287  ;;  %1305 = vrcp.f32 %v888_v2  ;;  %v889_v7 = vadd.f32 1.0, %v1286_v34 }
 0x3a2   :  { %v1290_v8 = vpop.eup %1289  ;;  %v887_v11 = vadd.f32 1.0, %v1288_v3 }
 0x3a3   :  { %v1292_v10 = vpop.eup %1291  ;;  %1307 = vrcp.f32 %v889_v7 }
 0x3a4   :  { %v1294_v13 = vpop.eup %1293  ;;  %958 = vperm.xlu0 %1239, %v1290_v8   ;;  %1309 = vrcp.f32 %v886_v5 }
 0x3a5   :  { %v1296_v14 = vpop.eup %1295  ;;  %963 = vperm.xlu1 %1238, %v1294_v13   ;;  %1311 = vrcp.f32 %v887_v11 }
 0x3a6   :  { %v1298_v15 = vpop.eup %1297 }
 0x3a7   :  { %v1300_v17 = vpop.eup %1299  ;;  %v892_v23 = vadd.f32 1.0, %v1298_v15 }
 0x3a8   :  { %v1302_v20 = vpop.eup %1301  ;;  %v890_v21 = vadd.f32 1.0, %v1300_v17  ;;  %948 = vperm.xlu0 %1239, %v1292_v10  }
 0x3a9   :  { %v1304_v22 = vpop.eup %1303  ;;  %953 = vperm.xlu1 %1238, %v1296_v14   ;;  %v893_v27 = vadd.f32 1.0, %v1302_v20 }
 0x3aa   :  { %1313 = vrcp.f32 %v890_v21  ;;  %v891_v25 = vadd.f32 1.0, %v1304_v22 }
 0x3ab   :  { %v1306_v26 = vpop.eup %1305 }
 0x3ac   :  { %1315 = vrcp.f32 %v891_v25  ;;  %978 = vperm.xlu0 %1239, %v1306_v26  }
 0x3ad   :  { %v1308_v29 = vpop.eup %1307  ;;  %1317 = vrcp.f32 %v892_v23 }
 0x3ae   :  { %983 = vperm.xlu1 %1238, %v1308_v29   ;;  %v1310_v30 = vpop.eup %1309  ;;  %1319 = vrcp.f32 %v893_v27 }
 0x3af   :  { %v1312_v31 = vpop.eup %1311 }
 0x3b0   :  { %968 = vperm.xlu0 %1239, %v1310_v30  }
 0x3b2   :  { %973 = vperm.xlu1 %1238, %v1312_v31  }
 0x3b4   :  { %v1314_v32 = vpop.eup %1313 }
 0x3b5   :  { %988 = vperm.xlu0 %1239, %v1314_v32  }
 0x3b6   :  { %v1316_v33 = vpop.eup %1315 }
 0x3b7   :  { %993 = vperm.xlu1 %1238, %v1316_v33   ;;  %v1318_v36 = vpop.eup %1317 }
 0x3b8   :  { %v1320_v37 = vpop.eup %1319 }
 0x3b9   :  { %998 = vperm.xlu0 %1239, %v1318_v36  }
 0x3bb   :  { %1003 = vperm.xlu1 %1238, %v1320_v37  }
 0x41a   :  { %v939_v38 = vpop.permute.xlu1 %938 }
 0x41b   :  { %v1008_v39 = vmul.f32 %v939_v38, %v1513_v18  ;;  %v929_v40 = vpop.permute.xlu0 %928 }
 0x41c   :  { %v1006_v41 = vmul.f32 %v929_v40, %v1516_v58 }
 0x41d   :  { %1025 = vst.msk [vmem:[%s1662_s6 + $0x10] sm:$0xff] %vm1022_vm6, %v1008_v39 }
 0x41e   :  { %1023 = vst.msk [vmem:[%s1662_s6] sm:$0xff] %vm1022_vm6, %v1006_v41  ;;  %v944_v42 = vpop.permute.xlu1 %943 }
 0x41f   :  { %v1009_v43 = vmul.f32 %v944_v42, %v1520_v61  ;;  %v934_v45 = vpop.permute.xlu0 %933 }
 0x420   :  { %v1007_v46 = vmul.f32 %v934_v45, %v1524_v0 }
 0x421   :  { %1026 = vst.msk [vmem:[%s1662_s6 + $0x18] sm:$0xff] %vm1022_vm6, %v1009_v43 }
 0x422   :  { %1024 = vst.msk [vmem:[%s1662_s6 + $0x8] sm:$0xff] %vm1022_vm6, %v1007_v46 }
 0x423   :  { %v959_v18 = vpop.permute.xlu0 %958 }
 0x424   :  { %v1012_v58 = vmul.f32 %v959_v18, %v1529_v4  ;;  %v964_v47 = vpop.permute.xlu1 %963 }
 0x425   :  { %v1013_v49 = vmul.f32 %v964_v47, %v1536_v9 }
 0x426   :  { %1029 = vst.msk [vmem:[%s1662_s6 + $0x30] sm:$0xff] %vm1022_vm6, %v1012_v58 }
 0x427   :  { %1030 = vst.msk [vmem:[%s1662_s6 + $0x38] sm:$0xff] %vm1022_vm6, %v1013_v49  ;;  %v949_v61 = vpop.permute.xlu0 %948 }
 0x428   :  { %v1010_v0 = vmul.f32 %v949_v61, %v1532_v6  ;;  %v954_v50 = vpop.permute.xlu1 %953 }
 0x429   :  { %v1011_v51 = vmul.f32 %v954_v50, %v1540_v12 }
 0x42a   :  { %1027 = vst.msk [vmem:[%s1662_s6 + $0x20] sm:$0xff] %vm1022_vm6, %v1010_v0 }
 0x42b   :  { %1028 = vst.msk [vmem:[%s1662_s6 + $0x28] sm:$0xff] %vm1022_vm6, %v1011_v51  ;;  %v979_v4 = vpop.permute.xlu0 %978 }
 0x42c   :  { %v1016_v9 = vmul.f32 %v979_v4, %v1545_v24 }
 0x42d   :  { %v984_v53 = vpop.permute.xlu1 %983 }
 0x42e   :  { %1033 = vst.msk [vmem:[%s1662_s6 + $0x50] sm:$0xff] %vm1022_vm6, %v1016_v9  ;;  %v1017_v6 = vmul.f32 %v984_v53, %v1552_v19 }
 0x42f   :  { %v969_v12 = vpop.permute.xlu0 %968 }
 0x430   :  { %1034 = vst.msk [vmem:[%s1662_s6 + $0x58] sm:$0xff] %vm1022_vm6, %v1017_v6  ;;  %v1014_v54 = vmul.f32 %v969_v12, %v1548_v28 }
 0x431   :  { %v974_v55 = vpop.permute.xlu1 %973 }
 0x432   :  { %1031 = vst.msk [vmem:[%s1662_s6 + $0x40] sm:$0xff] %vm1022_vm6, %v1014_v54  ;;  %v1015_v24 = vmul.f32 %v974_v55, %v1556_v35 }
 0x434   :  { %1032 = vst.msk [vmem:[%s1662_s6 + $0x48] sm:$0xff] %vm1022_vm6, %v1015_v24  ;;  %v989_v19 = vpop.permute.xlu0 %988 }
 0x435   :  { %v1018_v16 = vmul.f32 %v989_v19, %v1564_v48 }
 0x436   :  { %v994_v57 = vpop.permute.xlu1 %993 }
 0x437   :  { %1035 = vst.msk [vmem:[%s1662_s6 + $0x60] sm:$0xff] %vm1022_vm6, %v1018_v16  ;;  %v1019_v28 = vmul.f32 %v994_v57, %v1572_v56 }
 0x438   :  { %v999_v59 = vpop.permute.xlu0 %998 }
 0x439   :  { %1036 = vst.msk [vmem:[%s1662_s6 + $0x68] sm:$0xff] %vm1022_vm6, %v1019_v28  ;;  %v1020_v35 = vmul.f32 %v999_v59, %v1561_v44 }
 0x43a   :  { %v1004_v60 = vpop.permute.xlu1 %1003 }
 0x43b   :  { %1037 = vst.msk [vmem:[%s1662_s6 + $0x70] sm:$0xff] %vm1022_vm6, %v1020_v35  ;;  %v1021_v48 = vmul.f32 %v1004_v60, %v1568_v52 }
 0x43d   :  { %1038 = vst.msk [vmem:[%s1662_s6 + $0x78] sm:$0xff] %vm1022_vm6, %v1021_v48 }

// kernel: deepgcnii_forward.15
= control target key start
LH: loop header
LB: loop body
LE: loop exit
PB: predicated region body
PF: predicated region fallthrough
CT: control target
= control target key end

     0   :  { %vm105_vm0 = vcmask 293888   ;;  %vm130_vm1 = vcmask 1041408   ;;  %v46_v15 = vlaneseq  ;;  %vm307_vm6 = vcmask 261120   ;;  %s1295_s1 = inlined_call_operand.vmem [shape: bf16[36,32], index: 1, kind: input, shape index: {}]   ;;  %s1296_s0 = inlined_call_operand.vmem [shape: bf16[128,36], index: 0, kind: input, shape index: {}]   ;;  %s1297_s3 = inlined_call_operand.vmem [shape: bf16[2,32,32], index: 3, kind: input, shape index: {}]   ;;  %s1298_s2 = inlined_call_operand.vmem [shape: f32[3,32], index: 2, kind: input, shape index: {}]   ;;  %s1299_s4 = inlined_call_operand.vmem [shape: bf16[32,8], index: 4, kind: input, shape index: {}]   ;;  %s1300_s5 = inlined_call_operand.vmem [shape: f32[1,8], index: 5, kind: input, shape index: {}]   ;;  %s1301_s6 = inlined_call_operand.vmem [shape: f32[128,8], index: 6, kind: output, shape index: {}]  }
   0x1   :  { %v1026_v0 = vld [vmem:[%s1295_s1] sm:$0xff]   ;;  %v1027_v1 = vld [vmem:[%s1295_s1 + $0x8] sm:$0xff]   ;;  %v1028_v2 = vld [vmem:[%s1295_s1 + $0x10] ss:$0 sps:$4 sm:$0x33]  }
   0x2   :  { %943 = vmatprep.subr.bf16.mxu0 %v1026_v0  ;;  %v1029_v3 = vld [vmem:[%s1296_s0] sm:$0xff]   ;;  %v132_v4 = vsel %vm130_vm1, %v1028_v2, 0  ;;  %v1030_v5 = vld [vmem:[%s1296_s0 + $0x8] sm:$0xff]   ;;  %v1031_v6 = vld [vmem:[%s1296_s0 + $0x10] sm:$0xff]   ;;  %v1128_v16 = vshrl.u32 %v46_v15, 7 }
   0x3   :  { %944 = vmatpush3.bf16.msra.mxu0 %v1026_v0  ;;  %949 = vmatprep.mubr.msk.bf16.mxu0 %vm105_vm0, %v1029_v3  ;;  %v1032_v7 = vld [vmem:[%s1296_s0 + $0x18] sm:$0xff]   ;;  %v1033_v8 = vld [vmem:[%s1296_s0 + $0x20] sm:$0xff]   ;;  %v1034_v9 = vld [vmem:[%s1296_s0 + $0x28] sm:$0xff]  }
   0x4   :  { %945 = vmatprep.subr.bf16.mxu0 %v1027_v1  ;;  %v1035_v10 = vld [vmem:[%s1296_s0 + $0x30] sm:$0xff]   ;;  %v1036_v11 = vld [vmem:[%s1296_s0 + $0x38] sm:$0xff]   ;;  %v1037_v12 = vld [vmem:[%s1297_s3] sm:$0xff]   ;;  %v48_v17 = vsub.s32 0, %v1128_v16 }
   0x5   :  { %965 = vmatprep.subr.bf16.mxu1 %v1037_v12  ;;  %v1038_v13 = vld [vmem:[%s1297_s3 + $0x8] sm:$0xff]   ;;  %v1039_v14 = vld [vmem:[%s1297_s3 + $0x10] sm:$0xff]   ;;  %v1134_v18 = vld [vmem:[%s1298_s2] sm:$0x7] }
   0x6   :  { %966 = vmatpush3.bf16.msra.mxu1 %v1037_v12  ;;  %v1137_v19 = vrot.slane %v1134_v18, %v48_v17  ;;  %v1040_v43 = vld [vmem:[%s1297_s3 + $0x18] sm:$0xff]  }
   0x7   :  { %946 = vmatpush3.bf16.msra.mxu0 %v1027_v1  ;;  %967 = vmatprep.subr.bf16.mxu1 %v1038_v13 }
   0x8   :  { %1025 = vmatprep.subr.msk.bf16.mxu0 %vm130_vm1, %v1028_v2 }
   0xa   :  { %968 = vmatpush3.bf16.msra.mxu1 %v1038_v13 }
   0xb   :  { %948 = vmatpush3.bf16.msra.mxu0 %v132_v4  ;;  %985 = vmatprep.subr.bf16.mxu1 %v1039_v14 }
   0xe   :  { %950 = vmatmul.mubr.msk.bf16.vlgmr.msra.gmra.mrb[0].mxu0 %vm105_vm0, %v1030_v5 }
   0xf   :  { %953 = vmatprep.mubr.msk.bf16.mxu0 %vm105_vm0, %v1031_v6 }
  0x16   :  { %954 = vmatmul.mubr.msk.bf16.gmra.mrb[4].mxu0 %vm105_vm0, %v1032_v7 }
  0x17   :  { %957 = vmatprep.mubr.msk.bf16.mxu0 %vm105_vm0, %v1033_v8 }
  0x1e   :  { %958 = vmatmul.mubr.msk.bf16.gmra.mrb[8].mxu0 %vm105_vm0, %v1034_v9 }
  0x1f   :  { %961 = vmatprep.mubr.msk.bf16.mxu0 %vm105_vm0, %v1035_v10 }
  0x26   :  { %962 = vmatmul.mubr.msk.bf16.gmra.mrb[12].mxu0 %vm105_vm0, %v1036_v11 }
  0xe1   :  { %v951_v20 = vpop.f32.mrb[0].mxu0 }
  0xe2   :  { %v177_v21 = vadd.f32 %v951_v20, %v1137_v19  ;;  %v168_v22 = vpop.f32.mrb[1].mxu0 }
  0xe3   :  { %v169_v23 = vadd.f32 %v168_v22, %v1137_v19  ;;  %v952_v24 = vpop.f32.mrb[2].mxu0 }
  0xe4   :  { %v249_v25 = vmul.f32 0.2, %v177_v21  ;;  %v180_v26 = vadd.f32 %v952_v24, %v1137_v19  ;;  %v171_v27 = vpop.f32.mrb[3].mxu0  ;;  %vm233_vm2 = vcmp.ge.f32.partialorder %v177_v21, 0.0 }
  0xe5   :  { %v247_v28 = vmul.f32 0.2, %v169_v23  ;;  %v172_v29 = vadd.f32 %v171_v27, %v1137_v19  ;;  %vm231_vm4 = vcmp.ge.f32.partialorder %v169_v23, 0.0 }
  0xe6   :  { %vm234_vm3 = vcmp.ge.f32.partialorder %v180_v26, 0.0  ;;  %v250_v30 = vmul.f32 0.2, %v180_v26  ;;  %v265_v32 = vsel %vm233_vm2, %v177_v21, %v249_v25 }
  0xe7   :  { %v248_v31 = vmul.f32 0.2, %v172_v29  ;;  %vm232_vm5 = vcmp.ge.f32.partialorder %v172_v29, 0.0  ;;  %v263_v36 = vsel %vm231_vm4, %v169_v23, %v247_v28 }
  0xe8   :  { %v266_v33 = vsel %vm234_vm3, %v180_v26, %v250_v30 }
  0xe9   :  { %v280_v34 = vpack.c.bf16 %v266_v33, %v265_v32  ;;  %v955_v35 = vpop.f32.mrb[4].mxu0  ;;  %v264_v37 = vsel %vm232_vm5, %v172_v29, %v248_v31  ;;  %v1042_v32 = vld [vmem:[%s1299_s4 + $0x8] sm:$0xff]   ;;  %v293_v33 = vsub.s32 1, %v1128_v16 }
  0xea   :  { %v193_v38 = vadd.f32 %v955_v35, %v1137_v19  ;;  %v184_v39 = vpop.f32.mrb[5].mxu0  ;;  %v279_v40 = vpack.c.bf16 %v264_v37, %v263_v36 }
  0xeb   :  { %v185_v41 = vadd.f32 %v184_v39, %v1137_v19  ;;  %v956_v42 = vpop.f32.mrb[6].mxu0 }
  0xec   :  { %v253_v44 = vmul.f32 0.2, %v193_v38  ;;  %v196_v45 = vadd.f32 %v956_v42, %v1137_v19  ;;  %v187_v46 = vpop.f32.mrb[7].mxu0  ;;  %969 = vmatprep.mubr.msk.bf16.mxu1 %vm307_vm6, %v279_v40  ;;  %vm237_vm7 = vcmp.ge.f32.partialorder %v193_v38, 0.0 }
  0xed   :  { %v251_v47 = vmul.f32 0.2, %v185_v41  ;;  %v188_v48 = vadd.f32 %v187_v46, %v1137_v19  ;;  %970 = vmatmul.mubr.msk.bf16.vlgmr.msra.gmra.mrb[0].mxu1 %vm307_vm6, %v280_v34  ;;  %vm235_vm8 = vcmp.ge.f32.partialorder %v185_v41, 0.0  ;;  %v1174_v34 = vrot.slane %v1134_v18, %v293_v33 }
  0xee   :  { %vm238_vm9 = vcmp.ge.f32.partialorder %v196_v45, 0.0  ;;  %v254_v49 = vmul.f32 0.2, %v196_v45  ;;  %986 = vmatpush3.bf16.msra.mxu1 %v1039_v14  ;;  %v269_v51 = vsel %vm237_vm7, %v193_v38, %v253_v44 }
  0xef   :  { %vm236_vm10 = vcmp.ge.f32.partialorder %v188_v48, 0.0  ;;  %v252_v50 = vmul.f32 0.2, %v188_v48  ;;  %987 = vmatprep.subr.bf16.mxu1 %v1040_v43  ;;  %v267_v53 = vsel %vm235_vm8, %v185_v41, %v251_v47 }
  0xf0   :  { %v270_v52 = vsel %vm238_vm9, %v196_v45, %v254_v49 }
  0xf1   :  { %v282_v54 = vpack.c.bf16 %v270_v52, %v269_v51  ;;  %v268_v55 = vsel %vm236_vm10, %v188_v48, %v252_v50  ;;  %v959_v56 = vpop.f32.mrb[8].mxu0 }
  0xf2   :  { %v281_v57 = vpack.c.bf16 %v268_v55, %v267_v53  ;;  %v209_v58 = vadd.f32 %v959_v56, %v1137_v19  ;;  %v200_v59 = vpop.f32.mrb[9].mxu0  ;;  %988 = vmatpush3.bf16.msra.mxu1 %v1040_v43 }
  0xf3   :  { %v201_v60 = vadd.f32 %v200_v59, %v1137_v19  ;;  %v960_v61 = vpop.f32.mrb[10].mxu0 }
  0xf4   :  { %v257_v62 = vmul.f32 0.2, %v209_v58  ;;  %v212_v63 = vadd.f32 %v960_v61, %v1137_v19  ;;  %v203_v0 = vpop.f32.mrb[11].mxu0  ;;  %973 = vmatprep.mubr.msk.bf16.mxu1 %vm307_vm6, %v281_v57  ;;  %vm241_vm11 = vcmp.ge.f32.partialorder %v209_v58, 0.0 }
  0xf5   :  { %v255_v1 = vmul.f32 0.2, %v201_v60  ;;  %v204_v2 = vadd.f32 %v203_v0, %v1137_v19  ;;  %974 = vmatmul.mubr.msk.bf16.gmra.mrb[4].mxu1 %vm307_vm6, %v282_v54  ;;  %vm239_vm12 = vcmp.ge.f32.partialorder %v201_v60, 0.0 }
  0xf6   :  { %vm242_vm13 = vcmp.ge.f32.partialorder %v212_v63, 0.0  ;;  %v258_v3 = vmul.f32 0.2, %v212_v63  ;;  %v273_v5 = vsel %vm241_vm11, %v209_v58, %v257_v62 }
  0xf7   :  { %vm240_vm14 = vcmp.ge.f32.partialorder %v204_v2, 0.0  ;;  %v256_v4 = vmul.f32 0.2, %v204_v2  ;;  %v271_v7 = vsel %vm239_vm12, %v201_v60, %v255_v1 }
  0xf8   :  { %v274_v6 = vsel %vm242_vm13, %v212_v63, %v258_v3 }
  0xf9   :  { %v284_v8 = vpack.c.bf16 %v274_v6, %v273_v5  ;;  %v272_v9 = vsel %vm240_vm14, %v204_v2, %v256_v4  ;;  %v963_v10 = vpop.f32.mrb[12].mxu0 }
  0xfa   :  { %v283_v11 = vpack.c.bf16 %v272_v9, %v271_v7  ;;  %v225_v12 = vadd.f32 %v963_v10, %v1137_v19  ;;  %v216_v13 = vpop.f32.mrb[13].mxu0 }
  0xfb   :  { %v217_v14 = vadd.f32 %v216_v13, %v1137_v19  ;;  %v964_v15 = vpop.f32.mrb[14].mxu0 }
  0xfc   :  { %v261_v17 = vmul.f32 0.2, %v225_v12  ;;  %v228_v20 = vadd.f32 %v964_v15, %v1137_v19  ;;  %v219_v21 = vpop.f32.mrb[15].mxu0  ;;  %977 = vmatprep.mubr.msk.bf16.mxu1 %vm307_vm6, %v283_v11  ;;  %vm245_vm15 = vcmp.ge.f32.partialorder %v225_v12, 0.0 }
  0xfd   :  { %v259_v22 = vmul.f32 0.2, %v217_v14  ;;  %v220_v23 = vadd.f32 %v219_v21, %v1137_v19  ;;  %978 = vmatmul.mubr.msk.bf16.gmra.mrb[8].mxu1 %vm307_vm6, %v284_v8  ;;  %vm243_vm0 = vcmp.ge.f32.partialorder %v217_v14, 0.0  ;;  %v1041_v19 = vld [vmem:[%s1299_s4] sm:$0xff]  }
  0xfe   :  { %vm246_vm1 = vcmp.ge.f32.partialorder %v228_v20, 0.0  ;;  %v262_v24 = vmul.f32 0.2, %v228_v20  ;;  %v277_v26 = vsel %vm245_vm15, %v225_v12, %v261_v17  ;;  %1005 = vmatprep.subr.bf16.mxu0 %v1041_v19 }
  0xff   :  { %vm244_vm2 = vcmp.ge.f32.partialorder %v220_v23, 0.0  ;;  %v260_v25 = vmul.f32 0.2, %v220_v23  ;;  %v275_v28 = vsel %vm243_vm0, %v217_v14, %v259_v22  ;;  %1006 = vmatpush3.bf16.msra.mxu0 %v1041_v19 }
 0x100   :  { %v278_v27 = vsel %vm246_vm1, %v228_v20, %v262_v24  ;;  %1007 = vmatprep.subr.bf16.mxu0 %v1042_v32 }
 0x101   :  { %v286_v29 = vpack.c.bf16 %v278_v27, %v277_v26  ;;  %v276_v30 = vsel %vm244_vm2, %v220_v23, %v260_v25 }
 0x102   :  { %v285_v31 = vpack.c.bf16 %v276_v30, %v275_v28 }
 0x103   :  { %1008 = vmatpush3.bf16.msra.mxu0 %v1042_v32 }
 0x104   :  { %981 = vmatprep.mubr.msk.bf16.mxu1 %vm307_vm6, %v285_v31 }
 0x105   :  { %982 = vmatmul.mubr.msk.bf16.gmra.mrb[12].mxu1 %vm307_vm6, %v286_v29 }
 0x1c0   :  { %v971_v35 = vpop.f32.mrb[0].mxu1 }
 0x1c1   :  { %v375_v36 = vadd.f32 %v971_v35, %v1174_v34  ;;  %v366_v37 = vpop.f32.mrb[1].mxu1 }
 0x1c2   :  { %v367_v38 = vadd.f32 %v366_v37, %v1174_v34  ;;  %v972_v39 = vpop.f32.mrb[2].mxu1 }
 0x1c3   :  { %v447_v40 = vmul.f32 0.2, %v375_v36  ;;  %v378_v41 = vadd.f32 %v972_v39, %v1174_v34  ;;  %v369_v42 = vpop.f32.mrb[3].mxu1  ;;  %vm431_vm3 = vcmp.ge.f32.partialorder %v375_v36, 0.0 }
 0x1c4   :  { %v445_v43 = vmul.f32 0.2, %v367_v38  ;;  %v370_v44 = vadd.f32 %v369_v42, %v1174_v34  ;;  %vm429_vm4 = vcmp.ge.f32.partialorder %v367_v38, 0.0 }
 0x1c5   :  { %vm432_vm5 = vcmp.ge.f32.partialorder %v378_v41, 0.0  ;;  %v448_v45 = vmul.f32 0.2, %v378_v41  ;;  %v463_v47 = vsel %vm431_vm3, %v375_v36, %v447_v40 }
 0x1c6   :  { %vm430_vm7 = vcmp.ge.f32.partialorder %v370_v44, 0.0  ;;  %v446_v46 = vmul.f32 0.2, %v370_v44  ;;  %v461_v49 = vsel %vm429_vm4, %v367_v38, %v445_v43 }
 0x1c7   :  { %v464_v48 = vsel %vm432_vm5, %v378_v41, %v448_v45 }
 0x1c8   :  { %v478_v50 = vpack.c.bf16 %v464_v48, %v463_v47  ;;  %v462_v51 = vsel %vm430_vm7, %v370_v44, %v446_v46  ;;  %v975_v52 = vpop.f32.mrb[4].mxu1  ;;  %v492_v46 = vsub.s32 2, %v1128_v16 }
 0x1c9   :  { %v477_v53 = vpack.c.bf16 %v462_v51, %v461_v49  ;;  %v391_v54 = vadd.f32 %v975_v52, %v1174_v34  ;;  %v382_v55 = vpop.f32.mrb[5].mxu1 }
 0x1ca   :  { %v383_v56 = vadd.f32 %v382_v55, %v1174_v34  ;;  %v976_v57 = vpop.f32.mrb[6].mxu1 }
 0x1cb   :  { %v451_v58 = vmul.f32 0.2, %v391_v54  ;;  %v394_v59 = vadd.f32 %v976_v57, %v1174_v34  ;;  %v385_v60 = vpop.f32.mrb[7].mxu1  ;;  %989 = vmatprep.mubr.msk.bf16.mxu1 %vm307_vm6, %v477_v53  ;;  %vm435_vm8 = vcmp.ge.f32.partialorder %v391_v54, 0.0 }
 0x1cc   :  { %v449_v61 = vmul.f32 0.2, %v383_v56  ;;  %v386_v62 = vadd.f32 %v385_v60, %v1174_v34  ;;  %990 = vmatmul.mubr.msk.bf16.vlgmr.msra.gmra.mrb[16].mxu1 %vm307_vm6, %v478_v50  ;;  %vm433_vm9 = vcmp.ge.f32.partialorder %v383_v56, 0.0 }
 0x1cd   :  { %vm436_vm10 = vcmp.ge.f32.partialorder %v394_v59, 0.0  ;;  %v452_v63 = vmul.f32 0.2, %v394_v59  ;;  %v467_v1 = vsel %vm435_vm8, %v391_v54, %v451_v58 }
 0x1ce   :  { %vm434_vm11 = vcmp.ge.f32.partialorder %v386_v62, 0.0  ;;  %v450_v0 = vmul.f32 0.2, %v386_v62  ;;  %v465_v3 = vsel %vm433_vm9, %v383_v56, %v449_v61 }
 0x1cf   :  { %v468_v2 = vsel %vm436_vm10, %v394_v59, %v452_v63 }
 0x1d0   :  { %v480_v4 = vpack.c.bf16 %v468_v2, %v467_v1  ;;  %v466_v5 = vsel %vm434_vm11, %v386_v62, %v450_v0  ;;  %v979_v6 = vpop.f32.mrb[8].mxu1 }
 0x1d1   :  { %v479_v7 = vpack.c.bf16 %v466_v5, %v465_v3  ;;  %v407_v8 = vadd.f32 %v979_v6, %v1174_v34  ;;  %v398_v9 = vpop.f32.mrb[9].mxu1 }
 0x1d2   :  { %v399_v10 = vadd.f32 %v398_v9, %v1174_v34  ;;  %v980_v11 = vpop.f32.mrb[10].mxu1 }
 0x1d3   :  { %v455_v12 = vmul.f32 0.2, %v407_v8  ;;  %v410_v13 = vadd.f32 %v980_v11, %v1174_v34  ;;  %v401_v14 = vpop.f32.mrb[11].mxu1  ;;  %993 = vmatprep.mubr.msk.bf16.mxu1 %vm307_vm6, %v479_v7  ;;  %vm439_vm12 = vcmp.ge.f32.partialorder %v407_v8, 0.0 }
 0x1d4   :  { %v453_v15 = vmul.f32 0.2, %v399_v10  ;;  %v402_v17 = vadd.f32 %v401_v14, %v1174_v34  ;;  %994 = vmatmul.mubr.msk.bf16.gmra.mrb[20].mxu1 %vm307_vm6, %v480_v4  ;;  %vm437_vm13 = vcmp.ge.f32.partialorder %v399_v10, 0.0 }
 0x1d5   :  { %vm440_vm14 = vcmp.ge.f32.partialorder %v410_v13, 0.0  ;;  %v456_v20 = vmul.f32 0.2, %v410_v13  ;;  %v471_v22 = vsel %vm439_vm12, %v407_v8, %v455_v12 }
 0x1d6   :  { %vm438_vm15 = vcmp.ge.f32.partialorder %v402_v17, 0.0  ;;  %v454_v21 = vmul.f32 0.2, %v402_v17  ;;  %v469_v24 = vsel %vm437_vm13, %v399_v10, %v453_v15 }
 0x1d7   :  { %v472_v23 = vsel %vm440_vm14, %v410_v13, %v456_v20 }
 0x1d8   :  { %v482_v25 = vpack.c.bf16 %v472_v23, %v471_v22  ;;  %v470_v26 = vsel %vm438_vm15, %v402_v17, %v454_v21  ;;  %v983_v27 = vpop.f32.mrb[12].mxu1 }
 0x1d9   :  { %v481_v28 = vpack.c.bf16 %v470_v26, %v469_v24  ;;  %v423_v29 = vadd.f32 %v983_v27, %v1174_v34  ;;  %v414_v30 = vpop.f32.mrb[13].mxu1 }
 0x1da   :  { %v415_v31 = vadd.f32 %v414_v30, %v1174_v34  ;;  %v984_v19 = vpop.f32.mrb[14].mxu1 }
 0x1db   :  { %v459_v32 = vmul.f32 0.2, %v423_v29  ;;  %v426_v33 = vadd.f32 %v984_v19, %v1174_v34  ;;  %v417_v35 = vpop.f32.mrb[15].mxu1  ;;  %997 = vmatprep.mubr.msk.bf16.mxu1 %vm307_vm6, %v481_v28  ;;  %vm443_vm0 = vcmp.ge.f32.partialorder %v423_v29, 0.0 }
 0x1dc   :  { %v457_v36 = vmul.f32 0.2, %v415_v31  ;;  %v418_v37 = vadd.f32 %v417_v35, %v1174_v34  ;;  %998 = vmatmul.mubr.msk.bf16.gmra.mrb[24].mxu1 %vm307_vm6, %v482_v25  ;;  %vm441_vm1 = vcmp.ge.f32.partialorder %v415_v31, 0.0  ;;  %v1202_v34 = vrot.slane %v1134_v18, %v492_v46 }
 0x1dd   :  { %vm444_vm2 = vcmp.ge.f32.partialorder %v426_v33, 0.0  ;;  %v460_v38 = vmul.f32 0.2, %v426_v33  ;;  %v475_v40 = vsel %vm443_vm0, %v423_v29, %v459_v32 }
 0x1de   :  { %vm442_vm3 = vcmp.ge.f32.partialorder %v418_v37, 0.0  ;;  %v458_v39 = vmul.f32 0.2, %v418_v37  ;;  %v473_v42 = vsel %vm441_vm1, %v415_v31, %v457_v36 }
 0x1df   :  { %v476_v41 = vsel %vm444_vm2, %v426_v33, %v460_v38 }
 0x1e0   :  { %v484_v43 = vpack.c.bf16 %v476_v41, %v475_v40  ;;  %v474_v44 = vsel %vm442_vm3, %v418_v37, %v458_v39 }
 0x1e1   :  { %v483_v45 = vpack.c.bf16 %v474_v44, %v473_v42 }
 0x1e3   :  { %1001 = vmatprep.mubr.msk.bf16.mxu1 %vm307_vm6, %v483_v45 }
 0x1e4   :  { %1002 = vmatmul.mubr.msk.bf16.gmra.mrb[28].mxu1 %vm307_vm6, %v484_v43 }
 0x29f   :  { %v991_v47 = vpop.f32.mrb[16].mxu1 }
 0x2a0   :  { %v573_v48 = vadd.f32 %v991_v47, %v1202_v34  ;;  %v564_v49 = vpop.f32.mrb[17].mxu1 }
 0x2a1   :  { %v565_v50 = vadd.f32 %v564_v49, %v1202_v34  ;;  %v992_v51 = vpop.f32.mrb[18].mxu1 }
 0x2a2   :  { %v645_v52 = vmul.f32 0.2, %v573_v48  ;;  %v576_v53 = vadd.f32 %v992_v51, %v1202_v34  ;;  %v567_v54 = vpop.f32.mrb[19].mxu1  ;;  %vm629_vm4 = vcmp.ge.f32.partialorder %v573_v48, 0.0 }
 0x2a3   :  { %v643_v55 = vmul.f32 0.2, %v565_v50  ;;  %v568_v56 = vadd.f32 %v567_v54, %v1202_v34  ;;  %vm627_vm5 = vcmp.ge.f32.partialorder %v565_v50, 0.0 }
 0x2a4   :  { %vm630_vm7 = vcmp.ge.f32.partialorder %v576_v53, 0.0  ;;  %v646_v16 = vmul.f32 0.2, %v576_v53  ;;  %v661_v57 = vsel %vm629_vm4, %v573_v48, %v645_v52 }
 0x2a5   :  { %vm628_vm8 = vcmp.ge.f32.partialorder %v568_v56, 0.0  ;;  %v644_v18 = vmul.f32 0.2, %v568_v56  ;;  %v659_v59 = vsel %vm627_vm5, %v565_v50, %v643_v55  ;;  %vm827_vm5 = vcmask 64512  }
 0x2a6   :  { %v662_v58 = vsel %vm630_vm7, %v576_v53, %v646_v16 }
 0x2a7   :  { %v676_v60 = vpack.c.bf16 %v662_v58, %v661_v57  ;;  %v660_v61 = vsel %vm628_vm8, %v568_v56, %v644_v18  ;;  %v995_v62 = vpop.f32.mrb[20].mxu1 }
 0x2a8   :  { %v675_v63 = vpack.c.bf16 %v660_v61, %v659_v59  ;;  %v589_v0 = vadd.f32 %v995_v62, %v1202_v34  ;;  %v580_v1 = vpop.f32.mrb[21].mxu1 }
 0x2a9   :  { %v581_v2 = vadd.f32 %v580_v1, %v1202_v34  ;;  %v996_v3 = vpop.f32.mrb[22].mxu1 }
 0x2aa   :  { %v649_v4 = vmul.f32 0.2, %v589_v0  ;;  %v592_v5 = vadd.f32 %v996_v3, %v1202_v34  ;;  %v583_v6 = vpop.f32.mrb[23].mxu1  ;;  %1009 = vmatprep.mubr.msk.bf16.mxu0 %vm307_vm6, %v675_v63  ;;  %vm633_vm9 = vcmp.ge.f32.partialorder %v589_v0, 0.0 }
 0x2ab   :  { %v647_v7 = vmul.f32 0.2, %v581_v2  ;;  %v584_v8 = vadd.f32 %v583_v6, %v1202_v34  ;;  %1010 = vmatmul.mubr.msk.bf16.vlgmr.msra.gmra.mrb[16].mxu0 %vm307_vm6, %v676_v60  ;;  %vm631_vm10 = vcmp.ge.f32.partialorder %v581_v2, 0.0 }
 0x2ac   :  { %vm634_vm11 = vcmp.ge.f32.partialorder %v592_v5, 0.0  ;;  %v650_v9 = vmul.f32 0.2, %v592_v5  ;;  %v665_v11 = vsel %vm633_vm9, %v589_v0, %v649_v4 }
 0x2ad   :  { %vm632_vm12 = vcmp.ge.f32.partialorder %v584_v8, 0.0  ;;  %v648_v10 = vmul.f32 0.2, %v584_v8  ;;  %v663_v13 = vsel %vm631_vm10, %v581_v2, %v647_v7 }
 0x2ae   :  { %v666_v12 = vsel %vm634_vm11, %v592_v5, %v650_v9 }
 0x2af   :  { %v678_v14 = vpack.c.bf16 %v666_v12, %v665_v11  ;;  %v664_v15 = vsel %vm632_vm12, %v584_v8, %v648_v10  ;;  %v999_v17 = vpop.f32.mrb[24].mxu1 }
 0x2b0   :  { %v677_v20 = vpack.c.bf16 %v664_v15, %v663_v13  ;;  %v605_v21 = vadd.f32 %v999_v17, %v1202_v34  ;;  %v596_v22 = vpop.f32.mrb[25].mxu1 }
 0x2b1   :  { %v597_v23 = vadd.f32 %v596_v22, %v1202_v34  ;;  %v1000_v24 = vpop.f32.mrb[26].mxu1 }
 0x2b2   :  { %v653_v25 = vmul.f32 0.2, %v605_v21  ;;  %v608_v26 = vadd.f32 %v1000_v24, %v1202_v34  ;;  %v599_v27 = vpop.f32.mrb[27].mxu1  ;;  %1013 = vmatprep.mubr.msk.bf16.mxu0 %vm307_vm6, %v677_v20  ;;  %vm637_vm13 = vcmp.ge.f32.partialorder %v605_v21, 0.0 }
 0x2b3   :  { %v651_v28 = vmul.f32 0.2, %v597_v23  ;;  %v600_v29 = vadd.f32 %v599_v27, %v1202_v34  ;;  %1014 = vmatmul.mubr.msk.bf16.gmra.mrb[20].mxu0 %vm307_vm6, %v678_v14  ;;  %vm635_vm14 = vcmp.ge.f32.partialorder %v597_v23, 0.0 }
 0x2b4   :  { %vm638_vm15 = vcmp.ge.f32.partialorder %v608_v26, 0.0  ;;  %v654_v30 = vmul.f32 0.2, %v608_v26  ;;  %v669_v19 = vsel %vm637_vm13, %v605_v21, %v653_v25 }
 0x2b5   :  { %vm636_vm0 = vcmp.ge.f32.partialorder %v600_v29, 0.0  ;;  %v652_v31 = vmul.f32 0.2, %v600_v29  ;;  %v667_v33 = vsel %vm635_vm14, %v597_v23, %v651_v28 }
 0x2b6   :  { %v670_v32 = vsel %vm638_vm15, %v608_v26, %v654_v30 }
 0x2b7   :  { %v680_v35 = vpack.c.bf16 %v670_v32, %v669_v19  ;;  %v668_v36 = vsel %vm636_vm0, %v600_v29, %v652_v31  ;;  %v1003_v37 = vpop.f32.mrb[28].mxu1 }
 0x2b8   :  { %v679_v38 = vpack.c.bf16 %v668_v36, %v667_v33  ;;  %v621_v39 = vadd.f32 %v1003_v37, %v1202_v34  ;;  %v612_v40 = vpop.f32.mrb[29].mxu1 }
 0x2b9   :  { %v613_v41 = vadd.f32 %v612_v40, %v1202_v34  ;;  %v1004_v42 = vpop.f32.mrb[30].mxu1 }
 0x2ba   :  { %v657_v43 = vmul.f32 0.2, %v621_v39  ;;  %v624_v44 = vadd.f32 %v1004_v42, %v1202_v34  ;;  %v615_v45 = vpop.f32.mrb[31].mxu1  ;;  %1017 = vmatprep.mubr.msk.bf16.mxu0 %vm307_vm6, %v679_v38  ;;  %vm641_vm1 = vcmp.ge.f32.partialorder %v621_v39, 0.0 }
 0x2bb   :  { %v655_v46 = vmul.f32 0.2, %v613_v41  ;;  %v616_v47 = vadd.f32 %v615_v45, %v1202_v34  ;;  %1018 = vmatmul.mubr.msk.bf16.gmra.mrb[24].mxu0 %vm307_vm6, %v680_v35  ;;  %vm639_vm2 = vcmp.ge.f32.partialorder %v613_v41, 0.0  ;;  %v891_v34 = vld [vmem:[%s1300_s5] ss:$0 sm:$0xff] }
 0x2bc   :  { %vm642_vm3 = vcmp.ge.f32.partialorder %v624_v44, 0.0  ;;  %v658_v48 = vmul.f32 0.2, %v624_v44  ;;  %v673_v50 = vsel %vm641_vm1, %v621_v39, %v657_v43 }
 0x2bd   :  { %vm640_vm4 = vcmp.ge.f32.partialorder %v616_v47, 0.0  ;;  %v656_v49 = vmul.f32 0.2, %v616_v47  ;;  %v671_v52 = vsel %vm639_vm2, %v613_v41, %v655_v46 }
 0x2be   :  { %v674_v51 = vsel %vm642_vm3, %v624_v44, %v658_v48 }
 0x2bf   :  { %v682_v53 = vpack.c.bf16 %v674_v51, %v673_v50  ;;  %v672_v54 = vsel %vm640_vm4, %v616_v47, %v656_v49 }
 0x2c0   :  { %v681_v55 = vpack.c.bf16 %v672_v54, %v671_v52 }
 0x2c2   :  { %1021 = vmatprep.mubr.msk.bf16.mxu0 %vm307_vm6, %v681_v55 }
 0x2c3   :  { %1022 = vmatmul.mubr.msk.bf16.gmra.mrb[28].mxu0 %vm307_vm6, %v682_v53 }
 0x37e   :  { %v1011_v56 = vpop.f32.mrb[16].mxu0 }
 0x37f   :  { %v773_v16 = vadd.f32 %v1011_v56, %v891_v34  ;;  %v764_v18 = vpop.f32.mrb[17].mxu0 }
 0x380   :  { %v765_v57 = vadd.f32 %v891_v34, %v764_v18  ;;  %v1012_v58 = vpop.f32.mrb[18].mxu0 }
 0x381   :  { %830 = vst.msk [vmem:[%s1301_s6 + $0x10] sm:$0xff] %vm827_vm5, %v773_v16  ;;  %v776_v59 = vadd.f32 %v1012_v58, %v891_v34  ;;  %v767_v60 = vpop.f32.mrb[19].mxu0 }
 0x382   :  { %828 = vst.msk [vmem:[%s1301_s6] sm:$0xff] %vm827_vm5, %v765_v57  ;;  %v768_v61 = vadd.f32 %v891_v34, %v767_v60 }
 0x383   :  { %831 = vst.msk [vmem:[%s1301_s6 + $0x18] sm:$0xff] %vm827_vm5, %v776_v59 }
 0x384   :  { %829 = vst.msk [vmem:[%s1301_s6 + $0x8] sm:$0xff] %vm827_vm5, %v768_v61 }
 0x386   :  { %v1015_v62 = vpop.f32.mrb[20].mxu0 }
 0x387   :  { %v789_v63 = vadd.f32 %v1015_v62, %v891_v34  ;;  %v780_v0 = vpop.f32.mrb[21].mxu0 }
 0x388   :  { %v781_v1 = vadd.f32 %v891_v34, %v780_v0  ;;  %v1016_v2 = vpop.f32.mrb[22].mxu0 }
 0x389   :  { %834 = vst.msk [vmem:[%s1301_s6 + $0x30] sm:$0xff] %vm827_vm5, %v789_v63  ;;  %v792_v3 = vadd.f32 %v1016_v2, %v891_v34  ;;  %v783_v4 = vpop.f32.mrb[23].mxu0 }
 0x38a   :  { %832 = vst.msk [vmem:[%s1301_s6 + $0x20] sm:$0xff] %vm827_vm5, %v781_v1  ;;  %v784_v5 = vadd.f32 %v891_v34, %v783_v4 }
 0x38b   :  { %835 = vst.msk [vmem:[%s1301_s6 + $0x38] sm:$0xff] %vm827_vm5, %v792_v3 }
 0x38c   :  { %833 = vst.msk [vmem:[%s1301_s6 + $0x28] sm:$0xff] %vm827_vm5, %v784_v5 }
 0x38e   :  { %v1019_v6 = vpop.f32.mrb[24].mxu0 }
 0x38f   :  { %v805_v7 = vadd.f32 %v1019_v6, %v891_v34  ;;  %v796_v8 = vpop.f32.mrb[25].mxu0 }
 0x390   :  { %v797_v9 = vadd.f32 %v891_v34, %v796_v8  ;;  %v1020_v10 = vpop.f32.mrb[26].mxu0 }
 0x391   :  { %838 = vst.msk [vmem:[%s1301_s6 + $0x50] sm:$0xff] %vm827_vm5, %v805_v7  ;;  %v808_v11 = vadd.f32 %v1020_v10, %v891_v34  ;;  %v799_v12 = vpop.f32.mrb[27].mxu0 }
 0x392   :  { %836 = vst.msk [vmem:[%s1301_s6 + $0x40] sm:$0xff] %vm827_vm5, %v797_v9  ;;  %v800_v13 = vadd.f32 %v891_v34, %v799_v12 }
 0x393   :  { %839 = vst.msk [vmem:[%s1301_s6 + $0x58] sm:$0xff] %vm827_vm5, %v808_v11 }
 0x394   :  { %837 = vst.msk [vmem:[%s1301_s6 + $0x48] sm:$0xff] %vm827_vm5, %v800_v13 }
 0x396   :  { %v1023_v14 = vpop.f32.mrb[28].mxu0 }
 0x397   :  { %v821_v15 = vadd.f32 %v1023_v14, %v891_v34  ;;  %v812_v17 = vpop.f32.mrb[29].mxu0 }
 0x398   :  { %v813_v20 = vadd.f32 %v891_v34, %v812_v17  ;;  %v1024_v21 = vpop.f32.mrb[30].mxu0 }
 0x399   :  { %842 = vst.msk [vmem:[%s1301_s6 + $0x70] sm:$0xff] %vm827_vm5, %v821_v15  ;;  %v824_v22 = vadd.f32 %v1024_v21, %v891_v34  ;;  %v815_v23 = vpop.f32.mrb[31].mxu0 }
 0x39a   :  { %840 = vst.msk [vmem:[%s1301_s6 + $0x60] sm:$0xff] %vm827_vm5, %v813_v20  ;;  %v816_v24 = vadd.f32 %v891_v34, %v815_v23 }
 0x39b   :  { %843 = vst.msk [vmem:[%s1301_s6 + $0x78] sm:$0xff] %vm827_vm5, %v824_v22 }
 0x39c   :  { %841 = vst.msk [vmem:[%s1301_s6 + $0x68] sm:$0xff] %vm827_vm5, %v816_v24 }

</bundles_post_ra>
